<compile_context>
chip_gen: v7x
topology: tpu7x:2x2x1
jax: 0.10.0
libtpu: 0.0.40
codegen_flags: <defaults>
</compile_context>

<pallas_src>
import jax
import jax.numpy as jnp
from jax.experimental import pallas as pl
from jax.experimental.pallas import tpu as pltpu


def _round_up(x, m):
    return (x + m - 1) // m * m


def _choose_tile(M, tm_max):
    """Pick a tile size so row padding is tiny and (when worthwhile) the
    parallel grid has >=2 steps for megacore sharding."""
    n = pl.cdiv(M, tm_max)
    if n == 1 and M >= 256:
        n = 2
    tm = _round_up(pl.cdiv(M, n), 8)
    Mp = _round_up(M, tm)
    return tm, Mp


def _pad_axis(x, axis, size):
    if x.shape[axis] == size:
        return x
    pads = [(0, 0)] * x.ndim
    pads[axis] = (0, size - x.shape[axis])
    return jnp.pad(x, pads)


# ---------------------------------------------------------------------------
# Pallas kernels
# ---------------------------------------------------------------------------
def _conv_pool_kernel(taps_ref, w_ref, b_ref, o_ref):
    """Fused conv (im2col matmul) + bias + 2x2 max pool for one M-tile.

    taps_ref is (4, tm, K): the strided im2col patches of the 4 pool taps.
    max over the four tap matmuls == max pool of the conv output (the bias is
    tap-invariant, so it is added after the max)."""
    w = w_ref[...]
    y = jnp.dot(taps_ref[0], w, preferred_element_type=jnp.float32)
    for t in range(1, 4):
        y = jnp.maximum(
            y, jnp.dot(taps_ref[t], w, preferred_element_type=jnp.float32))
    o_ref[...] = (y + b_ref[...]).astype(o_ref.dtype)


def conv_pool_matmul(taps, w_mat, b, *, tm_max=2048):
    """(4, M, K) bf16 tap patches -> (M, Cout) bf16 pooled conv output."""
    _, M, K = taps.shape
    Cout = w_mat.shape[1]
    tm, Mp = _choose_tile(M, tm_max)
    taps = _pad_axis(taps, 1, Mp)

    flops = 4 * 2 * Mp * K * Cout
    bytes_accessed = 4 * Mp * K * 2 + K * Cout * 2 + Mp * Cout * 2

    out = pl.pallas_call(
        _conv_pool_kernel,
        out_shape=jax.ShapeDtypeStruct((Mp, Cout), jnp.bfloat16),
        grid=(Mp // tm,),
        in_specs=[
            pl.BlockSpec((4, tm, K), lambda i: (0, i, 0)),
            pl.BlockSpec((K, Cout), lambda i: (0, 0)),
            pl.BlockSpec((1, Cout), lambda i: (0, 0)),
        ],
        out_specs=pl.BlockSpec((tm, Cout), lambda i: (i, 0)),
        compiler_params=pltpu.CompilerParams(
            dimension_semantics=("parallel",),
            vmem_limit_bytes=32 * 1024 * 1024),
        cost_estimate=pl.CostEstimate(flops=flops, transcendentals=0,
                                      bytes_accessed=bytes_accessed),
    )(taps, w_mat, b.reshape(1, Cout))
    return out[:M]


def _fc_head_kernel(x_ref, w1_ref, b1_ref, w2_ref, b2_ref, ans_ref):
    """fc1 + ReLU + (eval) dropout + fc2 + softmax + (1-p3)*(1-p4)."""
    h = jnp.dot(x_ref[...], w1_ref[...], preferred_element_type=jnp.float32)
    h = jnp.maximum(h + b1_ref[...], 0.0)
    # F.dropout(p=0.5, training=self.training): identity in eval mode.
    # TODO(synk): training-mode stochastic dropout not modeled.
    logits = jnp.dot(h.astype(w2_ref.dtype), w2_ref[...],
                     preferred_element_type=jnp.float32) + b2_ref[...]
    m = jnp.max(logits, axis=1, keepdims=True)
    e = jnp.exp(logits - m)
    probs = e / jnp.sum(e, axis=1, keepdims=True)             # softmax(dim=1)
    idx = jax.lax.broadcasted_iota(jnp.int32, probs.shape, 1)
    p3 = jnp.sum(jnp.where(idx == 3, probs, 0.0), axis=1, keepdims=True)
    p4 = jnp.sum(jnp.where(idx == 4, probs, 0.0), axis=1, keepdims=True)
    # Scallop rule: answer() = not digit(3) /\ not digit(4)
    ans_ref[...] = (1.0 - p3) * (1.0 - p4)


def fc_head(x, w1, b1, w2, b2, *, tm_max=1024):
    M, K = x.shape
    N1 = w1.shape[1]
    N2 = w2.shape[1]
    tm, Mp = _choose_tile(M, tm_max)
    xp = _pad_axis(x, 0, Mp)

    flops = 2 * Mp * (K * N1 + N1 * N2)
    bytes_accessed = Mp * K * 2 + K * N1 * 2 + N1 * N2 * 2 + Mp * 4

    ans = pl.pallas_call(
        _fc_head_kernel,
        out_shape=jax.ShapeDtypeStruct((Mp, 1), jnp.float32),
        grid=(Mp // tm,),
        in_specs=[
            pl.BlockSpec((tm, K), lambda i: (i, 0)),
            pl.BlockSpec((K, N1), lambda i: (0, 0)),
            pl.BlockSpec((1, N1), lambda i: (0, 0)),
            pl.BlockSpec((N1, N2), lambda i: (0, 0)),
            pl.BlockSpec((1, N2), lambda i: (0, 0)),
        ],
        out_specs=pl.BlockSpec((tm, 1), lambda i: (i, 0)),
        compiler_params=pltpu.CompilerParams(
            dimension_semantics=("parallel",),
            vmem_limit_bytes=32 * 1024 * 1024),
        cost_estimate=pl.CostEstimate(flops=flops, transcendentals=Mp * N2,
                                      bytes_accessed=bytes_accessed),
    )(xp, w1, b1.reshape(1, N1), w2, b2.reshape(1, N2))
    return ans[:M, 0]


# ---------------------------------------------------------------------------
# Glue: strided im2col per pool tap, layout plumbing, param prep
# ---------------------------------------------------------------------------
def _pool_tap_patches(x, kh, kw):
    """x: NHWC (bf16).  Build one (4, B*PH*PW, Cin*kh*kw) array of strided
    im2col patches (one slab per 2x2 pool tap).  Feature order (cin, ki, kj)
    matches torch w.reshape(Cout, Cin*KH*KW)."""
    B, H, W, Cin = x.shape
    OH, OW = H - kh + 1, W - kw + 1
    # Tap-max == 2x2/stride-2 max pool only when the conv output dims are even.
    assert OH % 2 == 0 and OW % 2 == 0, (OH, OW)
    PH, PW = OH // 2, OW // 2
    taps = []
    for di in (0, 1):
        for dj in (0, 1):
            cols = []
            for ki in range(kh):
                for kj in range(kw):
                    i0, j0 = di + ki, dj + kj
                    cols.append(x[:, i0:i0 + 2 * PH:2, j0:j0 + 2 * PW:2, :])
            p = jnp.stack(cols, axis=-1)                 # (B,PH,PW,Cin,kh*kw)
            taps.append(p.reshape(B * PH * PW, Cin * kh * kw))
    return jnp.stack(taps, axis=0), (B, PH, PW)


def prepare_params(params):
    """One-time conversion of PyTorch-layout params to kernel layout:
    conv weights -> (Cin*KH*KW, Cout) bf16; fc weights pre-transposed (K,N);
    fc1's input dim additionally permuted (C,H,W) -> (H,W,C) so the NHWC
    conv2 activation can be flattened without a per-forward transpose."""
    def cw(w):  # (Cout, Cin, KH, KW) -> (Cin*KH*KW, Cout)
        return w.reshape(w.shape[0], -1).T.astype(jnp.bfloat16)

    w1 = params["fc1_w"]                                   # (1024, 1024)=(N,K)
    w1 = w1.reshape(1024, 64, 4, 4)                        # (N, C, H, W)
    w1 = jnp.transpose(w1, (2, 3, 1, 0)).reshape(1024, 1024)   # (K_hwc, N)

    return {
        "conv1_w": cw(params["conv1_w"]),
        "conv1_b": params["conv1_b"].astype(jnp.float32),
        "conv2_w": cw(params["conv2_w"]),
        "conv2_b": params["conv2_b"].astype(jnp.float32),
        "fc1_w": w1.astype(jnp.bfloat16),                  # (1024, 1024)
        "fc1_b": params["fc1_b"].astype(jnp.float32),
        "fc2_w": params["fc2_w"].T.astype(jnp.bfloat16),   # (1024, 10)
        "fc2_b": params["fc2_b"].astype(jnp.float32),
    }


def mnist_not3or4_forward(kp, x_nchw):
    x = jnp.transpose(x_nchw, (0, 2, 3, 1)).astype(jnp.bfloat16)  # NHWC bf16
    # conv1 (1->32, k=5) + 2x2 maxpool, fused
    taps, (B, PH, PW) = _pool_tap_patches(x, 5, 5)
    y = conv_pool_matmul(taps, kp["conv1_w"], kp["conv1_b"],
                         tm_max=2048)                       # (B*144, 32) bf16
    y = y.reshape(B, PH, PW, 32)                            # (B,12,12,32)
    # conv2 (32->64, k=5) + 2x2 maxpool, fused
    taps, (B, PH, PW) = _pool_tap_patches(y, 5, 5)
    y = conv_pool_matmul(taps, kp["conv2_w"], kp["conv2_b"],
                         tm_max=1024)                       # (B*16, 64) bf16
    y = y.reshape(B, PH, PW, 64)                            # (B,4,4,64)
    # fc1_w's input dim was pre-permuted to (H,W,C), so flatten NHWC directly.
    feat = y.reshape(B, 1024)
    # fc1 + ReLU + dropout(eval) + fc2 + softmax + (1-p3)(1-p4), fused.
    # TODO(synk): exact Scallop provenance/top-k proof bookkeeping beyond the
    # product-of-complements probability is not modeled.
    return fc_head(feat, kp["fc1_w"], kp["fc1_b"], kp["fc2_w"], kp["fc2_b"])


# ---------------------------------------------------------------------------
# PyTorch-style init and pure-JAX reference (for self-check)
# ---------------------------------------------------------------------------
def init_params(key):
    ks = jax.random.split(key, 8)

    def u(k, shape, fan_in):
        bound = 1.0 / (fan_in ** 0.5)
        return jax.random.uniform(k, shape, jnp.float32, -bound, bound)

    return {
        "conv1_w": u(ks[0], (32, 1, 5, 5), 1 * 25),
        "conv1_b": u(ks[1], (32,), 1 * 25),
        "conv2_w": u(ks[2], (64, 32, 5, 5), 32 * 25),
        "conv2_b": u(ks[3], (64,), 32 * 25),
        "fc1_w": u(ks[4], (1024, 1024), 1024),
        "fc1_b": u(ks[5], (1024,), 1024),
        "fc2_w": u(ks[6], (10, 1024), 1024),
        "fc2_b": u(ks[7], (10,), 1024),
    }


def reference_forward(params, x_nchw):
    """Pure-JAX reference of MNISTNot3Or4Net.forward (eval mode)."""
    def conv(x, w, b):
        y = jax.lax.conv_general_dilated(
            x, w, window_strides=(1, 1), padding="VALID",
            dimension_numbers=("NCHW", "OIHW", "NCHW"))
        return y + b[None, :, None, None]

    def pool(x):  # 2x2 / stride-2 max pool on NCHW
        return jnp.maximum(
            jnp.maximum(x[:, :, 0::2, 0::2], x[:, :, 0::2, 1::2]),
            jnp.maximum(x[:, :, 1::2, 0::2], x[:, :, 1::2, 1::2]))

    y = pool(conv(x_nchw, params["conv1_w"], params["conv1_b"]))
    y = pool(conv(y, params["conv2_w"], params["conv2_b"]))
    f = y.reshape(y.shape[0], -1)
    h = jnp.maximum(f @ params["fc1_w"].T + params["fc1_b"], 0.0)
    logits = h @ params["fc2_w"].T + params["fc2_b"]
    probs = jax.nn.softmax(logits, axis=1)
    return (1.0 - probs[:, 3]) * (1.0 - probs[:, 4])


if __name__ == "__main__":
    key = jax.random.PRNGKey(0)
    pkey, xkey = jax.random.split(key)
    params = init_params(pkey)
    kparams = prepare_params(params)        # one-time weight layout prep
    # MNIST-shaped input: fc1 expects 1024 = 64*4*4, which requires 28x28.
    x = jax.random.normal(xkey, (2, 1, 28, 28), dtype=jnp.float32)

    out = jax.jit(mnist_not3or4_forward)(kparams, x)
    out = jax.block_until_ready(out)

    ref = reference_forward(params, x)
    assert out.shape == (2,)
    assert bool(jnp.all(jnp.isfinite(out)))
    assert bool(jnp.all((out >= 0.0) & (out <= 1.0)))
    assert bool(jnp.max(jnp.abs(out - jnp.asarray(ref))) < 5e-2), (out, ref)
    print("KERNEL_OK")
</pallas_src>

<mosaic_0001>
module attributes {stable_mosaic.version = 11 : i64} {
  func.func @_conv_pool_kernel(%arg0: i32, %arg1: memref<4x144x25xbf16, #tpu.memory_space<vmem>>, %arg2: memref<25x32xbf16, #tpu.memory_space<vmem>>, %arg3: memref<1x32xf32, #tpu.memory_space<vmem>>, %arg4: memref<144x32xbf16, #tpu.memory_space<vmem>>) attributes {dimension_semantics = [#tpu.dimension_semantics<parallel>], iteration_bounds = array<i64: 2>, scalar_prefetch = 0 : i64, scratch_operands = 0 : i64, tpu.core_type = #tpu.core_type<tc>, window_params = [{transform_indices = @transform_0, window_bounds = array<i64: 4, 144, 25>}, {pipeline_mode = #tpu.pipeline_mode<synchronous>, transform_indices = @transform_1, window_bounds = array<i64: 25, 32>}, {pipeline_mode = #tpu.pipeline_mode<synchronous>, transform_indices = @transform_2, window_bounds = array<i64: 1, 32>}, {transform_indices = @transform_3, window_bounds = array<i64: 144, 32>}]} {
    %c0 = arith.constant 0 : index
    %c0_0 = arith.constant 0 : index
    %0 = vector.load %arg2[%c0, %c0_0] : memref<25x32xbf16, #tpu.memory_space<vmem>>, vector<25x32xbf16>
    %c0_1 = arith.constant 0 : index
    %c0_2 = arith.constant 0 : index
    %c0_3 = arith.constant 0 : index
    %1 = vector.load %arg1[%c0_1, %c0_2, %c0_3] : memref<4x144x25xbf16, #tpu.memory_space<vmem>>, vector<1x144x25xbf16>
    %2 = vector.shape_cast %1 : vector<1x144x25xbf16> to vector<144x25xbf16>
    %cst = arith.constant dense<0.000000e+00> : vector<144x32xf32>
    %3 = tpu.matmul %2, %0, %cst {dimension_numbers = #tpu.dot_dimension_numbers<[1], [0], [0], [1], [0, 0, 1, 1], [], []>} : vector<144x25xbf16>, vector<25x32xbf16>, vector<144x32xf32> -> vector<144x32xf32>
    %c1 = arith.constant 1 : index
    %c0_4 = arith.constant 0 : index
    %c0_5 = arith.constant 0 : index
    %4 = vector.load %arg1[%c1, %c0_4, %c0_5] : memref<4x144x25xbf16, #tpu.memory_space<vmem>>, vector<1x144x25xbf16>
    %5 = vector.shape_cast %4 : vector<1x144x25xbf16> to vector<144x25xbf16>
    %cst_6 = arith.constant dense<0.000000e+00> : vector<144x32xf32>
    %6 = tpu.matmul %5, %0, %cst_6 {dimension_numbers = #tpu.dot_dimension_numbers<[1], [0], [0], [1], [0, 0, 1, 1], [], []>} : vector<144x25xbf16>, vector<25x32xbf16>, vector<144x32xf32> -> vector<144x32xf32>
    %7 = arith.maximumf %3, %6 : vector<144x32xf32>
    %c2 = arith.constant 2 : index
    %c0_7 = arith.constant 0 : index
    %c0_8 = arith.constant 0 : index
    %8 = vector.load %arg1[%c2, %c0_7, %c0_8] : memref<4x144x25xbf16, #tpu.memory_space<vmem>>, vector<1x144x25xbf16>
    %9 = vector.shape_cast %8 : vector<1x144x25xbf16> to vector<144x25xbf16>
    %cst_9 = arith.constant dense<0.000000e+00> : vector<144x32xf32>
    %10 = tpu.matmul %9, %0, %cst_9 {dimension_numbers = #tpu.dot_dimension_numbers<[1], [0], [0], [1], [0, 0, 1, 1], [], []>} : vector<144x25xbf16>, vector<25x32xbf16>, vector<144x32xf32> -> vector<144x32xf32>
    %11 = arith.maximumf %7, %10 : vector<144x32xf32>
    %c3 = arith.constant 3 : index
    %c0_10 = arith.constant 0 : index
    %c0_11 = arith.constant 0 : index
    %12 = vector.load %arg1[%c3, %c0_10, %c0_11] : memref<4x144x25xbf16, #tpu.memory_space<vmem>>, vector<1x144x25xbf16>
    %13 = vector.shape_cast %12 : vector<1x144x25xbf16> to vector<144x25xbf16>
    %cst_12 = arith.constant dense<0.000000e+00> : vector<144x32xf32>
    %14 = tpu.matmul %13, %0, %cst_12 {dimension_numbers = #tpu.dot_dimension_numbers<[1], [0], [0], [1], [0, 0, 1, 1], [], []>} : vector<144x25xbf16>, vector<25x32xbf16>, vector<144x32xf32> -> vector<144x32xf32>
    %15 = arith.maximumf %11, %14 : vector<144x32xf32>
    %c0_13 = arith.constant 0 : index
    %c0_14 = arith.constant 0 : index
    %16 = vector.load %arg3[%c0_13, %c0_14] : memref<1x32xf32, #tpu.memory_space<vmem>>, vector<1x32xf32>
    %17 = vector.broadcast %16 : vector<1x32xf32> to vector<144x32xf32>
    %18 = arith.addf %15, %17 : vector<144x32xf32>
    %19 = arith.truncf %18 : vector<144x32xf32> to vector<144x32xbf16>
    %c0_15 = arith.constant 0 : index
    %c0_16 = arith.constant 0 : index
    %20 = vector.load %arg4[%c0_15, %c0_16] : memref<144x32xbf16, #tpu.memory_space<vmem>>, vector<144x32xbf16>
    tpu.vector_store %arg4[%c0_15, %c0_16], %19 {strides = array<i32>} : memref<144x32xbf16, #tpu.memory_space<vmem>>, vector<144x32xbf16>,
    return
  }
  func.func @transform_0(%arg0: i32) -> (i32, i32, i32) {
    %c0_i32 = arith.constant 0 : i32
    %c0_i32_0 = arith.constant 0 : i32
    %c0_i32_1 = arith.constant 0 : i32
    return %c0_i32, %arg0, %c0_i32_0 : i32, i32, i32
  }
  func.func @transform_1(%arg0: i32) -> (i32, i32) {
    %c0_i32 = arith.constant 0 : i32
    %c0_i32_0 = arith.constant 0 : i32
    %c0_i32_1 = arith.constant 0 : i32
    return %c0_i32, %c0_i32_0 : i32, i32
  }
  func.func @transform_2(%arg0: i32) -> (i32, i32) {
    %c0_i32 = arith.constant 0 : i32
    %c0_i32_0 = arith.constant 0 : i32
    %c0_i32_1 = arith.constant 0 : i32
    return %c0_i32, %c0_i32_0 : i32, i32
  }
  func.func @transform_3(%arg0: i32) -> (i32, i32) {
    %c0_i32 = arith.constant 0 : i32
    %c0_i32_0 = arith.constant 0 : i32
    return %arg0, %c0_i32 : i32, i32
  }
}

module attributes {stable_mosaic.version = 11 : i64} {
  func.func @_conv_pool_kernel(%arg0: i32, %arg1: memref<4x32x800xbf16, #tpu.memory_space<vmem>>, %arg2: memref<800x64xbf16, #tpu.memory_space<vmem>>, %arg3: memref<1x64xf32, #tpu.memory_space<vmem>>, %arg4: memref<32x64xbf16, #tpu.memory_space<vmem>>) attributes {dimension_semantics = [#tpu.dimension_semantics<parallel>], iteration_bounds = array<i64: 1>, scalar_prefetch = 0 : i64, scratch_operands = 0 : i64, tpu.core_type = #tpu.core_type<tc>, window_params = [{transform_indices = @transform_0, window_bounds = array<i64: 4, 32, 800>}, {pipeline_mode = #tpu.pipeline_mode<synchronous>, transform_indices = @transform_1, window_bounds = array<i64: 800, 64>}, {pipeline_mode = #tpu.pipeline_mode<synchronous>, transform_indices = @transform_2, window_bounds = array<i64: 1, 64>}, {transform_indices = @transform_3, window_bounds = array<i64: 32, 64>}]} {
    %c0 = arith.constant 0 : index
    %c0_0 = arith.constant 0 : index
    %0 = vector.load %arg2[%c0, %c0_0] : memref<800x64xbf16, #tpu.memory_space<vmem>>, vector<800x64xbf16>
    %c0_1 = arith.constant 0 : index
    %c0_2 = arith.constant 0 : index
    %c0_3 = arith.constant 0 : index
    %1 = vector.load %arg1[%c0_1, %c0_2, %c0_3] : memref<4x32x800xbf16, #tpu.memory_space<vmem>>, vector<1x32x800xbf16>
    %2 = vector.shape_cast %1 : vector<1x32x800xbf16> to vector<32x800xbf16>
    %cst = arith.constant dense<0.000000e+00> : vector<32x64xf32>
    %3 = tpu.matmul %2, %0, %cst {dimension_numbers = #tpu.dot_dimension_numbers<[1], [0], [0], [1], [0, 0, 1, 1], [], []>} : vector<32x800xbf16>, vector<800x64xbf16>, vector<32x64xf32> -> vector<32x64xf32>
    %c1 = arith.constant 1 : index
    %c0_4 = arith.constant 0 : index
    %c0_5 = arith.constant 0 : index
    %4 = vector.load %arg1[%c1, %c0_4, %c0_5] : memref<4x32x800xbf16, #tpu.memory_space<vmem>>, vector<1x32x800xbf16>
    %5 = vector.shape_cast %4 : vector<1x32x800xbf16> to vector<32x800xbf16>
    %cst_6 = arith.constant dense<0.000000e+00> : vector<32x64xf32>
    %6 = tpu.matmul %5, %0, %cst_6 {dimension_numbers = #tpu.dot_dimension_numbers<[1], [0], [0], [1], [0, 0, 1, 1], [], []>} : vector<32x800xbf16>, vector<800x64xbf16>, vector<32x64xf32> -> vector<32x64xf32>
    %7 = arith.maximumf %3, %6 : vector<32x64xf32>
    %c2 = arith.constant 2 : index
    %c0_7 = arith.constant 0 : index
    %c0_8 = arith.constant 0 : index
    %8 = vector.load %arg1[%c2, %c0_7, %c0_8] : memref<4x32x800xbf16, #tpu.memory_space<vmem>>, vector<1x32x800xbf16>
    %9 = vector.shape_cast %8 : vector<1x32x800xbf16> to vector<32x800xbf16>
    %cst_9 = arith.constant dense<0.000000e+00> : vector<32x64xf32>
    %10 = tpu.matmul %9, %0, %cst_9 {dimension_numbers = #tpu.dot_dimension_numbers<[1], [0], [0], [1], [0, 0, 1, 1], [], []>} : vector<32x800xbf16>, vector<800x64xbf16>, vector<32x64xf32> -> vector<32x64xf32>
    %11 = arith.maximumf %7, %10 : vector<32x64xf32>
    %c3 = arith.constant 3 : index
    %c0_10 = arith.constant 0 : index
    %c0_11 = arith.constant 0 : index
    %12 = vector.load %arg1[%c3, %c0_10, %c0_11] : memref<4x32x800xbf16, #tpu.memory_space<vmem>>, vector<1x32x800xbf16>
    %13 = vector.shape_cast %12 : vector<1x32x800xbf16> to vector<32x800xbf16>
    %cst_12 = arith.constant dense<0.000000e+00> : vector<32x64xf32>
    %14 = tpu.matmul %13, %0, %cst_12 {dimension_numbers = #tpu.dot_dimension_numbers<[1], [0], [0], [1], [0, 0, 1, 1], [], []>} : vector<32x800xbf16>, vector<800x64xbf16>, vector<32x64xf32> -> vector<32x64xf32>
    %15 = arith.maximumf %11, %14 : vector<32x64xf32>
    %c0_13 = arith.constant 0 : index
    %c0_14 = arith.constant 0 : index
    %16 = vector.load %arg3[%c0_13, %c0_14] : memref<1x64xf32, #tpu.memory_space<vmem>>, vector<1x64xf32>
    %17 = vector.broadcast %16 : vector<1x64xf32> to vector<32x64xf32>
    %18 = arith.addf %15, %17 : vector<32x64xf32>
    %19 = arith.truncf %18 : vector<32x64xf32> to vector<32x64xbf16>
    %c0_15 = arith.constant 0 : index
    %c0_16 = arith.constant 0 : index
    %20 = vector.load %arg4[%c0_15, %c0_16] : memref<32x64xbf16, #tpu.memory_space<vmem>>, vector<32x64xbf16>
    tpu.vector_store %arg4[%c0_15, %c0_16], %19 {strides = array<i32>} : memref<32x64xbf16, #tpu.memory_space<vmem>>, vector<32x64xbf16>,
    return
  }
  func.func @transform_0(%arg0: i32) -> (i32, i32, i32) {
    %c0_i32 = arith.constant 0 : i32
    %c0_i32_0 = arith.constant 0 : i32
    %c0_i32_1 = arith.constant 0 : i32
    return %c0_i32, %arg0, %c0_i32_0 : i32, i32, i32
  }
  func.func @transform_1(%arg0: i32) -> (i32, i32) {
    %c0_i32 = arith.constant 0 : i32
    %c0_i32_0 = arith.constant 0 : i32
    %c0_i32_1 = arith.constant 0 : i32
    return %c0_i32, %c0_i32_0 : i32, i32
  }
  func.func @transform_2(%arg0: i32) -> (i32, i32) {
    %c0_i32 = arith.constant 0 : i32
    %c0_i32_0 = arith.constant 0 : i32
    %c0_i32_1 = arith.constant 0 : i32
    return %c0_i32, %c0_i32_0 : i32, i32
  }
  func.func @transform_3(%arg0: i32) -> (i32, i32) {
    %c0_i32 = arith.constant 0 : i32
    %c0_i32_0 = arith.constant 0 : i32
    return %arg0, %c0_i32 : i32, i32
  }
}

module attributes {stable_mosaic.version = 11 : i64} {
  func.func @_fc_head_kernel(%arg0: i32, %arg1: memref<8x1024xbf16, #tpu.memory_space<vmem>>, %arg2: memref<1024x1024xbf16, #tpu.memory_space<vmem>>, %arg3: memref<1x1024xf32, #tpu.memory_space<vmem>>, %arg4: memref<1024x10xbf16, #tpu.memory_space<vmem>>, %arg5: memref<1x10xf32, #tpu.memory_space<vmem>>, %arg6: memref<8x1xf32, #tpu.memory_space<vmem>>) attributes {dimension_semantics = [#tpu.dimension_semantics<parallel>], iteration_bounds = array<i64: 1>, scalar_prefetch = 0 : i64, scratch_operands = 0 : i64, tpu.core_type = #tpu.core_type<tc>, window_params = [{transform_indices = @transform_0, window_bounds = array<i64: 8, 1024>}, {pipeline_mode = #tpu.pipeline_mode<synchronous>, transform_indices = @transform_1, window_bounds = array<i64: 1024, 1024>}, {pipeline_mode = #tpu.pipeline_mode<synchronous>, transform_indices = @transform_2, window_bounds = array<i64: 1, 1024>}, {pipeline_mode = #tpu.pipeline_mode<synchronous>, transform_indices = @transform_3, window_bounds = array<i64: 1024, 10>}, {pipeline_mode = #tpu.pipeline_mode<synchronous>, transform_indices = @transform_4, window_bounds = array<i64: 1, 10>}, {transform_indices = @transform_5, window_bounds = array<i64: 8, 1>}]} {
    %c0 = arith.constant 0 : index
    %c0_0 = arith.constant 0 : index
    %0 = vector.load %arg1[%c0, %c0_0] : memref<8x1024xbf16, #tpu.memory_space<vmem>>, vector<8x1024xbf16>
    %c0_1 = arith.constant 0 : index
    %c0_2 = arith.constant 0 : index
    %1 = vector.load %arg2[%c0_1, %c0_2] : memref<1024x1024xbf16, #tpu.memory_space<vmem>>, vector<1024x1024xbf16>
    %cst = arith.constant dense<0.000000e+00> : vector<8x1024xf32>
    %2 = tpu.matmul %0, %1, %cst {dimension_numbers = #tpu.dot_dimension_numbers<[1], [0], [0], [1], [0, 0, 1, 1], [], []>} : vector<8x1024xbf16>, vector<1024x1024xbf16>, vector<8x1024xf32> -> vector<8x1024xf32>
    %c0_3 = arith.constant 0 : index
    %c0_4 = arith.constant 0 : index
    %3 = vector.load %arg3[%c0_3, %c0_4] : memref<1x1024xf32, #tpu.memory_space<vmem>>, vector<1x1024xf32>
    %4 = vector.broadcast %3 : vector<1x1024xf32> to vector<8x1024xf32>
    %5 = arith.addf %2, %4 : vector<8x1024xf32>
    %cst_5 = arith.constant 0.000000e+00 : f32
    %6 = vector.broadcast %cst_5 : f32 to vector<8x1024xf32>
    %7 = arith.maximumf %5, %6 : vector<8x1024xf32>
    %8 = arith.truncf %7 : vector<8x1024xf32> to vector<8x1024xbf16>
    %c0_6 = arith.constant 0 : index
    %c0_7 = arith.constant 0 : index
    %9 = vector.load %arg4[%c0_6, %c0_7] : memref<1024x10xbf16, #tpu.memory_space<vmem>>, vector<1024x10xbf16>
    %cst_8 = arith.constant dense<0.000000e+00> : vector<8x10xf32>
    %10 = tpu.matmul %8, %9, %cst_8 {dimension_numbers = #tpu.dot_dimension_numbers<[1], [0], [0], [1], [0, 0, 1, 1], [], []>} : vector<8x1024xbf16>, vector<1024x10xbf16>, vector<8x10xf32> -> vector<8x10xf32>
    %c0_9 = arith.constant 0 : index
    %c0_10 = arith.constant 0 : index
    %11 = vector.load %arg5[%c0_9, %c0_10] : memref<1x10xf32, #tpu.memory_space<vmem>>, vector<1x10xf32>
    %12 = vector.broadcast %11 : vector<1x10xf32> to vector<8x10xf32>
    %13 = arith.addf %10, %12 : vector<8x10xf32>
    %cst_11 = arith.constant dense<0xFF800000> : vector<8xf32>
    %14 = vector.multi_reduction <maximumf>, %13, %cst_11 [1] : vector<8x10xf32> to vector<8xf32>
    %15 = vector.shape_cast %14 : vector<8xf32> to vector<8x1xf32>
    %16 = vector.broadcast %15 : vector<8x1xf32> to vector<8x10xf32>
    %17 = arith.subf %13, %16 : vector<8x10xf32>
    %18 = math.exp %17 : vector<8x10xf32>
    %cst_12 = arith.constant dense<0.000000e+00> : vector<8xf32>
    %19 = vector.multi_reduction <add>, %18, %cst_12 [1] : vector<8x10xf32> to vector<8xf32>
    %20 = vector.shape_cast %19 : vector<8xf32> to vector<8x1xf32>
    %21 = vector.broadcast %20 : vector<8x1xf32> to vector<8x10xf32>
    %22 = arith.divf %18, %21 : vector<8x10xf32>
    %23 = tpu.iota {dimensions = array<i32: 1>} : vector<8x10xi32>
    %c3_i32 = arith.constant 3 : i32
    %24 = vector.broadcast %c3_i32 : i32 to vector<8x10xi32>
    %25 = arith.cmpi eq, %23, %24 : vector<8x10xi32>
    %cst_13 = arith.constant 0.000000e+00 : f32
    %26 = vector.broadcast %cst_13 : f32 to vector<8x10xf32>
    %27 = arith.select %25, %22, %26 : vector<8x10xi1>, vector<8x10xf32>
    %cst_14 = arith.constant dense<0.000000e+00> : vector<8xf32>
    %28 = vector.multi_reduction <add>, %27, %cst_14 [1] : vector<8x10xf32> to vector<8xf32>
    %29 = vector.shape_cast %28 : vector<8xf32> to vector<8x1xf32>
    %c4_i32 = arith.constant 4 : i32
    %30 = vector.broadcast %c4_i32 : i32 to vector<8x10xi32>
    %31 = arith.cmpi eq, %23, %30 : vector<8x10xi32>
    %cst_15 = arith.constant 0.000000e+00 : f32
    %32 = vector.broadcast %cst_15 : f32 to vector<8x10xf32>
    %33 = arith.select %31, %22, %32 : vector<8x10xi1>, vector<8x10xf32>
    %cst_16 = arith.constant dense<0.000000e+00> : vector<8xf32>
    %34 = vector.multi_reduction <add>, %33, %cst_16 [1] : vector<8x10xf32> to vector<8xf32>
    %35 = vector.shape_cast %34 : vector<8xf32> to vector<8x1xf32>
    %cst_17 = arith.constant 1.000000e+00 : f32
    %36 = vector.broadcast %cst_17 : f32 to vector<8x1xf32>
    %37 = arith.subf %36, %29 : vector<8x1xf32>
    %cst_18 = arith.constant 1.000000e+00 : f32
    %38 = vector.broadcast %cst_18 : f32 to vector<8x1xf32>
    %39 = arith.subf %38, %35 : vector<8x1xf32>
    %40 = arith.mulf %37, %39 : vector<8x1xf32>
    %c0_19 = arith.constant 0 : index
    %c0_20 = arith.constant 0 : index
    %41 = vector.load %arg6[%c0_19, %c0_20] : memref<8x1xf32, #tpu.memory_space<vmem>>, vector<8x1xf32>
    tpu.vector_store %arg6[%c0_19, %c0_20], %40 {strides = array<i32>} : memref<8x1xf32, #tpu.memory_space<vmem>>, vector<8x1xf32>,
    return
  }
  func.func @transform_0(%arg0: i32) -> (i32, i32) {
    %c0_i32 = arith.constant 0 : i32
    %c0_i32_0 = arith.constant 0 : i32
    return %arg0, %c0_i32 : i32, i32
  }
  func.func @transform_1(%arg0: i32) -> (i32, i32) {
    %c0_i32 = arith.constant 0 : i32
    %c0_i32_0 = arith.constant 0 : i32
    %c0_i32_1 = arith.constant 0 : i32
    return %c0_i32, %c0_i32_0 : i32, i32
  }
  func.func @transform_2(%arg0: i32) -> (i32, i32) {
    %c0_i32 = arith.constant 0 : i32
    %c0_i32_0 = arith.constant 0 : i32
    %c0_i32_1 = arith.constant 0 : i32
    return %c0_i32, %c0_i32_0 : i32, i32
  }
  func.func @transform_3(%arg0: i32) -> (i32, i32) {
    %c0_i32 = arith.constant 0 : i32
    %c0_i32_0 = arith.constant 0 : i32
    %c0_i32_1 = arith.constant 0 : i32
    return %c0_i32, %c0_i32_0 : i32, i32
  }
  func.func @transform_4(%arg0: i32) -> (i32, i32) {
    %c0_i32 = arith.constant 0 : i32
    %c0_i32_0 = arith.constant 0 : i32
    %c0_i32_1 = arith.constant 0 : i32
    return %c0_i32, %c0_i32_0 : i32, i32
  }
  func.func @transform_5(%arg0: i32) -> (i32, i32) {
    %c0_i32 = arith.constant 0 : i32
    %c0_i32_0 = arith.constant 0 : i32
    return %arg0, %c0_i32 : i32, i32
  }
}

</mosaic_0001>

<bundles_post_ra>
// kernel: mnist_not3or4_forward.3
= control target key start
LH: loop header
LB: loop body
LE: loop exit
PB: predicated region body
PF: predicated region fallthrough
CT: control target
= control target key end

     0   :  { %s2031_s12 = smov 0   ;;  %s2033_s13 = smov 0   ;;  %s2542_s0 = inlined_call_operand.vmem [shape: bf16[4,288,25], index: 0, kind: input, shape index: {}]   ;;  %s2543_s1 = inlined_call_operand.vmem [shape: bf16[25,32], index: 1, kind: input, shape index: {}]   ;;  %s2544_s2 = inlined_call_operand.vmem [shape: f32[1,32], index: 2, kind: input, shape index: {}]   ;;  %s2545_s3 = inlined_call_operand.vmem [shape: bf16[288,32], index: 3, kind: output, shape index: {}]  }
   0x1   :  { %s2035_s14 = smov 0  }
   0x2 LB: > { %s1538_s15 = sadd.s32 4294967295, %s2006_s14   ;;  %s2048_s16 = sadd.s32 1, %s2006_s14   ;;  %s2006_s14 = sphi %s2035_s14, %s2550_s14   ;;  %s2002_s13 = sphi %s2033_s13, %s2549_s13   ;;  %s1998_s12 = sphi %s2031_s12, %s2548_s12  }
   0x3   : > { %s17_s17 = ssub.s32 %s2006_s14, %s2048_s16  ;;  %s20_s18 = sadd.s32 1, %s2002_s13 }
   0x4   : > { %p18_p0 = scmp.eq.s32.totalorder %s17_s17, 0  ;;  %p27_p1 = scmp.ne.s32.totalorder %s2002_s13, %s1998_s12 }
   0x5   : > { %p28_p2 = scmp.eq.s32.totalorder %s2006_s14, 0  ;;  %p1541_p4 = scmp.ge.s32.totalorder %s2006_s14, 2 }
   0x6   : > { %s2057_s19 = scalar_select %p18_p0, %s2002_s13, %s20_s18  }
   0x7   : > { %p29_p3 = por %p28_p2, %p27_p1  ;;  %127 = sbr.rel (%p1541_p4) target bundleno = 37 (0x25), region = 24 }
   0xe   : > { %130 = sbr.rel (!%p29_p3) target bundleno = 37 (0x25), region = 28  ;;  %s132_s20 = sand.u32 (%p29_p3), 1, %s2002_s13  }
   0xf   : > { %s1694_s21 = smul.u32 (%p29_p3), 72, %s2006_s14 }
  0x10   : > { %s1917_s22 = smul.u32 (%p29_p3), 288, %s132_s20 }
  0x11   : > { %s2065_s25 = scalar_lea.vmem (%p29_p3), %s2542_s0, %s1694_s21 }
  0x12   : > { %v153_v0 = vld [vmem:[%s2065_s25] sm:$0xff] (%p29_p3)   ;;  %v157_v1 = vld [vmem:[%s2065_s25 + $0x8] sm:$0xff] (%p29_p3)   ;;  %v161_v2 = vld [vmem:[%s2065_s25 + $0x10] sm:$0xff] (%p29_p3)   ;;  %s2070_s26 = scalar_lea.vmem (%p29_p3), [#allocation2], %s1917_s22 }
  0x13   : > { %154 = vst [vmem:[%s2070_s26] sm:$0xff] (%p29_p3), %v153_v0   ;;  %158 = vst [vmem:[%s2070_s26 + $0x8] sm:$0xff] (%p29_p3), %v157_v1   ;;  %v165_v3 = vld [vmem:[%s2065_s25 + $0x18] sm:$0xff] (%p29_p3)   ;;  %v169_v4 = vld [vmem:[%s2065_s25 + $0x20] sm:$0xff] (%p29_p3)  }
  0x14   : > { %162 = vst [vmem:[%s2070_s26 + $0x10] sm:$0xff] (%p29_p3), %v161_v2   ;;  %v173_v5 = vld [vmem:[%s2065_s25 + $0x28] sm:$0xff] (%p29_p3)   ;;  %166 = vst [vmem:[%s2070_s26 + $0x18] sm:$0xff] (%p29_p3), %v165_v3   ;;  %v177_v6 = vld [vmem:[%s2065_s25 + $0x30] sm:$0xff] (%p29_p3)  }
  0x15   : > { %170 = vst [vmem:[%s2070_s26 + $0x20] sm:$0xff] %v169_v4   ;;  %174 = vst [vmem:[%s2070_s26 + $0x28] sm:$0xff] %v173_v5   ;;  %v181_v7 = vld [vmem:[%s2065_s25 + $0x38] sm:$0xff]   ;;  %v185_v8 = vld [vmem:[%s2065_s25 + $0x40] sm:$0xff]  }
  0x16   : > { %178 = vst [vmem:[%s2070_s26 + $0x30] sm:$0xff] %v177_v6   ;;  %182 = vst [vmem:[%s2070_s26 + $0x38] sm:$0xff] %v181_v7   ;;  %v189_v9 = vld [vmem:[%s2065_s25 + $0x90] sm:$0xff]   ;;  %v193_v10 = vld [vmem:[%s2065_s25 + $0x98] sm:$0xff]  }
  0x17   : > { %186 = vst [vmem:[%s2070_s26 + $0x40] sm:$0xff] %v185_v8   ;;  %v197_v11 = vld [vmem:[%s2065_s25 + $0xa0] sm:$0xff]   ;;  %190 = vst [vmem:[%s2070_s26 + $0x48] sm:$0xff] %v189_v9   ;;  %v201_v12 = vld [vmem:[%s2065_s25 + $0xa8] sm:$0xff]  }
  0x18   : > { %194 = vst [vmem:[%s2070_s26 + $0x50] sm:$0xff] %v193_v10   ;;  %198 = vst [vmem:[%s2070_s26 + $0x58] sm:$0xff] %v197_v11   ;;  %v205_v13 = vld [vmem:[%s2065_s25 + $0xb0] sm:$0xff]   ;;  %v209_v14 = vld [vmem:[%s2065_s25 + $0xb8] sm:$0xff]  }
  0x19   : > { %202 = vst [vmem:[%s2070_s26 + $0x60] sm:$0xff] %v201_v12   ;;  %206 = vst [vmem:[%s2070_s26 + $0x68] sm:$0xff] %v205_v13   ;;  %v213_v15 = vld [vmem:[%s2065_s25 + $0xc0] sm:$0xff]   ;;  %v217_v16 = vld [vmem:[%s2065_s25 + $0xc8] sm:$0xff]  }
  0x1a   : > { %210 = vst [vmem:[%s2070_s26 + $0x70] sm:$0xff] %v209_v14   ;;  %v221_v17 = vld [vmem:[%s2065_s25 + $0xd0] sm:$0xff]   ;;  %214 = vst [vmem:[%s2070_s26 + $0x78] sm:$0xff] %v213_v15   ;;  %v225_v18 = vld [vmem:[%s2065_s25 + $0x120] sm:$0xff]  }
  0x1b   : > { %218 = vst [vmem:[%s2070_s26 + $0x80] sm:$0xff] %v217_v16   ;;  %222 = vst [vmem:[%s2070_s26 + $0x88] sm:$0xff] %v221_v17   ;;  %v229_v19 = vld [vmem:[%s2065_s25 + $0x128] sm:$0xff]   ;;  %v233_v20 = vld [vmem:[%s2065_s25 + $0x130] sm:$0xff]  }
  0x1c   : > { %226 = vst [vmem:[%s2070_s26 + $0x90] sm:$0xff] %v225_v18   ;;  %230 = vst [vmem:[%s2070_s26 + $0x98] sm:$0xff] %v229_v19   ;;  %v237_v21 = vld [vmem:[%s2065_s25 + $0x138] sm:$0xff]   ;;  %v241_v22 = vld [vmem:[%s2065_s25 + $0x140] sm:$0xff]  }
  0x1d   : > { %234 = vst [vmem:[%s2070_s26 + $0xa0] sm:$0xff] %v233_v20   ;;  %v245_v23 = vld [vmem:[%s2065_s25 + $0x148] sm:$0xff]   ;;  %238 = vst [vmem:[%s2070_s26 + $0xa8] sm:$0xff] %v237_v21   ;;  %v249_v24 = vld [vmem:[%s2065_s25 + $0x150] sm:$0xff]  }
  0x1e   : > { %242 = vst [vmem:[%s2070_s26 + $0xb0] sm:$0xff] %v241_v22   ;;  %246 = vst [vmem:[%s2070_s26 + $0xb8] sm:$0xff] %v245_v23   ;;  %v253_v25 = vld [vmem:[%s2065_s25 + $0x158] sm:$0xff]   ;;  %v257_v26 = vld [vmem:[%s2065_s25 + $0x160] sm:$0xff]  }
  0x1f   : > { %250 = vst [vmem:[%s2070_s26 + $0xc0] sm:$0xff] %v249_v24   ;;  %254 = vst [vmem:[%s2070_s26 + $0xc8] sm:$0xff] %v253_v25   ;;  %v261_v27 = vld [vmem:[%s2065_s25 + $0x1b0] sm:$0xff]   ;;  %v265_v28 = vld [vmem:[%s2065_s25 + $0x1b8] sm:$0xff]  }
  0x20   : > { %258 = vst [vmem:[%s2070_s26 + $0xd0] sm:$0xff] %v257_v26   ;;  %v269_v29 = vld [vmem:[%s2065_s25 + $0x1c0] sm:$0xff]   ;;  %262 = vst [vmem:[%s2070_s26 + $0xd8] sm:$0xff] %v261_v27   ;;  %v273_v30 = vld [vmem:[%s2065_s25 + $0x1c8] sm:$0xff]  }
  0x21   : > { %266 = vst [vmem:[%s2070_s26 + $0xe0] sm:$0xff] %v265_v28   ;;  %270 = vst [vmem:[%s2070_s26 + $0xe8] sm:$0xff] %v269_v29   ;;  %v277_v31 = vld [vmem:[%s2065_s25 + $0x1d0] sm:$0xff]   ;;  %v281_v32 = vld [vmem:[%s2065_s25 + $0x1d8] sm:$0xff]  }
  0x22   : > { %274 = vst [vmem:[%s2070_s26 + $0xf0] sm:$0xff] %v273_v30   ;;  %278 = vst [vmem:[%s2070_s26 + $0xf8] sm:$0xff] %v277_v31   ;;  %v285_v33 = vld [vmem:[%s2065_s25 + $0x1e0] sm:$0xff]   ;;  %v289_v34 = vld [vmem:[%s2065_s25 + $0x1e8] sm:$0xff]  }
  0x23   : > { %282 = vst [vmem:[%s2070_s26 + $0x100] sm:$0xff] %v281_v32   ;;  %v293_v35 = vld [vmem:[%s2065_s25 + $0x1f0] sm:$0xff]   ;;  %286 = vst [vmem:[%s2070_s26 + $0x108] sm:$0xff] %v285_v33  }
  0x24   : > { %290 = vst [vmem:[%s2070_s26 + $0x110] sm:$0xff] %v289_v34   ;;  %294 = vst [vmem:[%s2070_s26 + $0x118] sm:$0xff] %v293_v35  }
  0x25 PF: > { %p1543_p5 = scmp.ge.s32.totalorder %s2006_s14, 1  ;;  %p462_p6 = scmp.lt.s32.totalorder %s2006_s14, 3 }
  0x27   : > { %p463_p7 = pnand %p1543_p5, %p462_p6 }
  0x28   : > { %v1946_v36 = vld [vmem:[%s2543_s1] sm:$0xff] (!%p463_p7)   ;;  %v2008_v37 = vmov (!%p463_p7), 0.0   ;;  %v1947_v38 = vld [vmem:[%s2543_s1 + $0x8] sm:$0x1f] (!%p463_p7)   ;;  %vm606_vm0 = vcmask (!%p463_p7), 1043456   ;;  %vm607_vm1 = vcmask (!%p463_p7), 1044480  }
  0x29   : > { %466 = sbr.rel (%p463_p7) target bundleno = 408 (0x198), region = 69  ;;  %1757 = vmatprep.subr.bf16.mxu0 (!%p463_p7), %v2008_v37  ;;  %1797 = vmatprep.subr.bf16.mxu1 (!%p463_p7), %v2008_v37  ;;  %s469_s4 = sand.u32 (!%p463_p7), 1, %s1998_s12   ;;  %v2009_v39 = vmov (!%p463_p7), 65535   ;;  %vm2010_vm2 = vmmov (!%p463_p7), 0   ;;  %vm578_vm3 = vcmask (!%p463_p7), 203776   ;;  %vm1457_vm4 = vcmask (!%p463_p7), 257024  }
  0x2a   : > { %1758 = vmatpush3.bf16.msra.mxu0 (!%p463_p7), %v1946_v36  ;;  %1798 = vmatpush3.bf16.msra.mxu1 (!%p463_p7), %v1946_v36  ;;  %v608_v40 = vsel (!%p463_p7), %vm606_vm0, 4294967295, %v2009_v39  ;;  %s1918_s5 = smul.u32 (!%p463_p7), 288, %s469_s4 }
  0x2b   : > { %1759 = vmatprep.subr.bf16.mxu0 (!%p463_p7), %v2008_v37  ;;  %1799 = vmatprep.subr.bf16.mxu1 (!%p463_p7), %v2008_v37  ;;  %v609_v41 = vsel (!%p463_p7), %vm607_vm1, %v608_v40, 0  ;;  %s493_s7 = smul.u32 (!%p463_p7), 18, %s1538_s15 }
  0x2c   : > { %1761 = vmatprep.mubr.msk.bf16.mxu0 (!%p463_p7), %vm2010_vm2, %v2008_v37  ;;  %1801 = vmatprep.mubr.msk.bf16.mxu1 (!%p463_p7), %vm2010_vm2, %v2008_v37  ;;  %v611_v42 = vand.u32 (!%p463_p7), %v1947_v38, %v609_v41  ;;  %s2158_s6 = scalar_lea.vmem (!%p463_p7), [#allocation2], %s1918_s5 }
  0x2d   : > { %v1948_v43 = vld [vmem:[%s2158_s6] sm:$0xff] (!%p463_p7)   ;;  %v1949_v44 = vld [vmem:[%s2158_s6 + $0x48] sm:$0xff] (!%p463_p7)   ;;  %v1951_v46 = vld [vmem:[%s2158_s6 + $0x50] sm:$0xff] (!%p463_p7)   ;;  %p494_p8 = scmp.lt.s32.totalorder (!%p463_p7), %s493_s7, 35 }
  0x2e   : > { %1760 = vmatpush3.bf16.msra.mxu0 (!%p463_p7), %v611_v42  ;;  %1800 = vmatpush3.bf16.msra.mxu1 (!%p463_p7), %v611_v42  ;;  %v1950_v45 = vld [vmem:[%s2158_s6 + $0x8] sm:$0xff] (!%p463_p7)   ;;  %v1952_v47 = vld [vmem:[%s2158_s6 + $0x10] sm:$0xff] (!%p463_p7)   ;;  %v1953_v48 = vld [vmem:[%s2158_s6 + $0x58] sm:$0xff] (!%p463_p7)  }
  0x2f   : > { %1837 = vmatprep.subr.bf16.mxu0 (!%p463_p7), %v2008_v37  ;;  %1877 = vmatprep.subr.bf16.mxu1 (!%p463_p7), %v2008_v37  ;;  %v1954_v49 = vld [vmem:[%s2158_s6 + $0x18] sm:$0xff] (!%p463_p7)   ;;  %v1955_v50 = vld [vmem:[%s2158_s6 + $0x60] sm:$0xff] (!%p463_p7)   ;;  %v1957_v52 = vld [vmem:[%s2158_s6 + $0x68] sm:$0xff] (!%p463_p7)  }
  0x30   : > { %v1956_v51 = vld [vmem:[%s2158_s6 + $0x20] sm:$0xff]   ;;  %v1958_v53 = vld [vmem:[%s2158_s6 + $0x28] sm:$0xff]   ;;  %v1959_v54 = vld [vmem:[%s2158_s6 + $0x70] sm:$0xff]   ;;  %s2552_s7 = smov (!%p494_p8, %s493_s7), 35 }
  0x31   : > { %1762 = vmatmul.mubr.msk.bf16.vlgmr.msra.gmra.mrb[0].mxu0 %vm578_vm3, %v1948_v43  ;;  %1802 = vmatmul.mubr.msk.bf16.vlgmr.msra.gmra.mrb[0].mxu1 %vm578_vm3, %v1949_v44  ;;  %v1960_v55 = vld [vmem:[%s2158_s6 + $0x30] sm:$0xff]   ;;  %v1961_v56 = vld [vmem:[%s2158_s6 + $0x78] sm:$0xff]   ;;  %v1963_v58 = vld [vmem:[%s2158_s6 + $0x80] sm:$0xff]   ;;  %s1544_s10 = sshll.u32 %s2552_s7, 2 }
  0x32   : > { %1838 = vmatpush3.bf16.msra.mxu0 %v1946_v36  ;;  %1878 = vmatpush3.bf16.msra.mxu1 %v1946_v36  ;;  %v1962_v57 = vld [vmem:[%s2158_s6 + $0x38] sm:$0xff]   ;;  %v1964_v59 = vld [vmem:[%s2158_s6 + $0x40] sm:$0xff]   ;;  %v1965_v60 = vld [vmem:[%s2158_s6 + $0x88] sm:$0xff]   ;;  %s2429_s14 = scalar_lea.vmem %s2545_s3, %s1544_s10 }
  0x33   : > { %1765 = vmatprep.mubr.msk.bf16.mxu0 %vm2010_vm2, %v2008_v37  ;;  %1805 = vmatprep.mubr.msk.bf16.mxu1 %vm2010_vm2, %v2008_v37  ;;  %v1966_v61 = vld [vmem:[%s2158_s6 + $0x90] sm:$0xff]   ;;  %v1967_v62 = vld [vmem:[%s2158_s6 + $0xd8] sm:$0xff]   ;;  %v1969_v0 = vld [vmem:[%s2158_s6 + $0xe0] sm:$0xff]  }
  0x34   : > { %1839 = vmatprep.subr.bf16.mxu0 %v2008_v37  ;;  %1879 = vmatprep.subr.bf16.mxu1 %v2008_v37  ;;  %v1968_v63 = vld [vmem:[%s2158_s6 + $0x98] sm:$0xff]   ;;  %v1970_v1 = vld [vmem:[%s2158_s6 + $0xa0] sm:$0xff]   ;;  %v1971_v2 = vld [vmem:[%s2158_s6 + $0xe8] sm:$0xff]  }
  0x35   : > { %v1972_v3 = vld [vmem:[%s2158_s6 + $0xa8] sm:$0xff]   ;;  %v1973_v4 = vld [vmem:[%s2158_s6 + $0xf0] sm:$0xff]   ;;  %v1975_v6 = vld [vmem:[%s2158_s6 + $0xf8] sm:$0xff]  }
  0x36   : > { %1840 = vmatpush3.bf16.msra.mxu0 %v611_v42  ;;  %1880 = vmatpush3.bf16.msra.mxu1 %v611_v42  ;;  %v1974_v5 = vld [vmem:[%s2158_s6 + $0xb0] sm:$0xff]   ;;  %v1976_v7 = vld [vmem:[%s2158_s6 + $0xb8] sm:$0xff]   ;;  %v1977_v8 = vld [vmem:[%s2158_s6 + $0x100] sm:$0xff]  }
  0x37   : > { %v1978_v9 = vld [vmem:[%s2158_s6 + $0xc0] sm:$0xff]   ;;  %v1979_v10 = vld [vmem:[%s2158_s6 + $0x108] sm:$0xff]   ;;  %v1981_v12 = vld [vmem:[%s2158_s6 + $0x110] sm:$0xff]  }
  0x38   : > { %v1980_v11 = vld [vmem:[%s2158_s6 + $0xc8] sm:$0xff]   ;;  %v1982_v13 = vld [vmem:[%s2158_s6 + $0xd0] sm:$0xff]   ;;  %v1983_v14 = vld [vmem:[%s2158_s6 + $0x118] sm:$0xff]  }
  0x39   : > { %1766 = vmatmul.mubr.msk.bf16.gmra.mrb[4].mxu0 %vm578_vm3, %v1950_v45  ;;  %1806 = vmatmul.mubr.msk.bf16.gmra.mrb[4].mxu1 %vm578_vm3, %v1951_v46 }
  0x3a   : > { %1769 = vmatprep.mubr.msk.bf16.mxu0 %vm2010_vm2, %v2008_v37  ;;  %1809 = vmatprep.mubr.msk.bf16.mxu1 %vm2010_vm2, %v2008_v37 }
  0x41   : > { %1770 = vmatmul.mubr.msk.bf16.gmra.mrb[8].mxu0 %vm578_vm3, %v1952_v47  ;;  %1810 = vmatmul.mubr.msk.bf16.gmra.mrb[8].mxu1 %vm578_vm3, %v1953_v48 }
  0x42   : > { %1773 = vmatprep.mubr.msk.bf16.mxu0 %vm2010_vm2, %v2008_v37  ;;  %1813 = vmatprep.mubr.msk.bf16.mxu1 %vm2010_vm2, %v2008_v37 }
  0x49   : > { %1774 = vmatmul.mubr.msk.bf16.gmra.mrb[12].mxu0 %vm578_vm3, %v1954_v49  ;;  %1814 = vmatmul.mubr.msk.bf16.gmra.mrb[12].mxu1 %vm578_vm3, %v1955_v50 }
  0x4a   : > { %1777 = vmatprep.mubr.msk.bf16.mxu0 %vm2010_vm2, %v2008_v37  ;;  %1817 = vmatprep.mubr.msk.bf16.mxu1 %vm2010_vm2, %v2008_v37 }
  0x51   : > { %1778 = vmatmul.mubr.msk.bf16.gmra.mrb[16].mxu0 %vm578_vm3, %v1956_v51  ;;  %1818 = vmatmul.mubr.msk.bf16.gmra.mrb[16].mxu1 %vm578_vm3, %v1957_v52 }
  0x52   : > { %1781 = vmatprep.mubr.msk.bf16.mxu0 %vm2010_vm2, %v2008_v37  ;;  %1821 = vmatprep.mubr.msk.bf16.mxu1 %vm2010_vm2, %v2008_v37 }
  0x59   : > { %1782 = vmatmul.mubr.msk.bf16.gmra.mrb[20].mxu0 %vm578_vm3, %v1958_v53  ;;  %1822 = vmatmul.mubr.msk.bf16.gmra.mrb[20].mxu1 %vm578_vm3, %v1959_v54 }
  0x5a   : > { %1785 = vmatprep.mubr.msk.bf16.mxu0 %vm2010_vm2, %v2008_v37  ;;  %1825 = vmatprep.mubr.msk.bf16.mxu1 %vm2010_vm2, %v2008_v37 }
  0x61   : > { %1786 = vmatmul.mubr.msk.bf16.gmra.mrb[24].mxu0 %vm578_vm3, %v1960_v55  ;;  %1826 = vmatmul.mubr.msk.bf16.gmra.mrb[24].mxu1 %vm578_vm3, %v1961_v56 }
  0x62   : > { %1789 = vmatprep.mubr.msk.bf16.mxu0 %vm2010_vm2, %v2008_v37  ;;  %1829 = vmatprep.mubr.msk.bf16.mxu1 %vm2010_vm2, %v2008_v37 }
  0x69   : > { %1790 = vmatmul.mubr.msk.bf16.gmra.mrb[28].mxu0 %vm578_vm3, %v1962_v57  ;;  %1830 = vmatmul.mubr.msk.bf16.gmra.mrb[28].mxu1 %vm578_vm3, %v1963_v58 }
  0x6a   : > { %1793 = vmatprep.mubr.msk.bf16.mxu0 %vm2010_vm2, %v2008_v37  ;;  %1833 = vmatprep.mubr.msk.bf16.mxu1 %vm2010_vm2, %v2008_v37 }
  0x71   : > { %1794 = vmatmul.mubr.msk.bf16.gmra.mrb[32].mxu0 %vm578_vm3, %v1964_v59  ;;  %1834 = vmatmul.mubr.msk.bf16.gmra.mrb[32].mxu1 %vm578_vm3, %v1965_v60 }
  0x72   : > { %1841 = vmatprep.mubr.msk.bf16.mxu0 %vm2010_vm2, %v2008_v37  ;;  %1881 = vmatprep.mubr.msk.bf16.mxu1 %vm2010_vm2, %v2008_v37 }
  0x79   : > { %1842 = vmatmul.mubr.msk.bf16.vlgmr.msra.gmra.mrb[36].mxu0 %vm578_vm3, %v1966_v61  ;;  %1882 = vmatmul.mubr.msk.bf16.vlgmr.msra.gmra.mrb[36].mxu1 %vm578_vm3, %v1967_v62 }
  0x7a   : > { %1845 = vmatprep.mubr.msk.bf16.mxu0 %vm2010_vm2, %v2008_v37  ;;  %1885 = vmatprep.mubr.msk.bf16.mxu1 %vm2010_vm2, %v2008_v37 }
  0x81   : > { %1846 = vmatmul.mubr.msk.bf16.gmra.mrb[40].mxu0 %vm578_vm3, %v1968_v63  ;;  %1886 = vmatmul.mubr.msk.bf16.gmra.mrb[40].mxu1 %vm578_vm3, %v1969_v0 }
  0x82   : > { %1849 = vmatprep.mubr.msk.bf16.mxu0 %vm2010_vm2, %v2008_v37  ;;  %1889 = vmatprep.mubr.msk.bf16.mxu1 %vm2010_vm2, %v2008_v37 }
  0x89   : > { %1850 = vmatmul.mubr.msk.bf16.gmra.mrb[44].mxu0 %vm578_vm3, %v1970_v1  ;;  %1890 = vmatmul.mubr.msk.bf16.gmra.mrb[44].mxu1 %vm578_vm3, %v1971_v2 }
  0x8a   : > { %1853 = vmatprep.mubr.msk.bf16.mxu0 %vm2010_vm2, %v2008_v37  ;;  %1893 = vmatprep.mubr.msk.bf16.mxu1 %vm2010_vm2, %v2008_v37 }
  0x91   : > { %1854 = vmatmul.mubr.msk.bf16.gmra.mrb[48].mxu0 %vm578_vm3, %v1972_v3  ;;  %1894 = vmatmul.mubr.msk.bf16.gmra.mrb[48].mxu1 %vm578_vm3, %v1973_v4 }
  0x92   : > { %1857 = vmatprep.mubr.msk.bf16.mxu0 %vm2010_vm2, %v2008_v37  ;;  %1897 = vmatprep.mubr.msk.bf16.mxu1 %vm2010_vm2, %v2008_v37 }
  0x99   : > { %1858 = vmatmul.mubr.msk.bf16.gmra.mrb[52].mxu0 %vm578_vm3, %v1974_v5  ;;  %1898 = vmatmul.mubr.msk.bf16.gmra.mrb[52].mxu1 %vm578_vm3, %v1975_v6 }
  0x9a   : > { %1861 = vmatprep.mubr.msk.bf16.mxu0 %vm2010_vm2, %v2008_v37  ;;  %1901 = vmatprep.mubr.msk.bf16.mxu1 %vm2010_vm2, %v2008_v37 }
  0xa1   : > { %1862 = vmatmul.mubr.msk.bf16.gmra.mrb[56].mxu0 %vm578_vm3, %v1976_v7  ;;  %1902 = vmatmul.mubr.msk.bf16.gmra.mrb[56].mxu1 %vm578_vm3, %v1977_v8 }
  0xa2   : > { %1865 = vmatprep.mubr.msk.bf16.mxu0 %vm2010_vm2, %v2008_v37  ;;  %1905 = vmatprep.mubr.msk.bf16.mxu1 %vm2010_vm2, %v2008_v37 }
  0xa9   : > { %1866 = vmatmul.mubr.msk.bf16.gmra.mrb[60].mxu0 %vm578_vm3, %v1978_v9  ;;  %1906 = vmatmul.mubr.msk.bf16.gmra.mrb[60].mxu1 %vm578_vm3, %v1979_v10 }
  0xaa   : > { %1869 = vmatprep.mubr.msk.bf16.mxu0 %vm2010_vm2, %v2008_v37  ;;  %1909 = vmatprep.mubr.msk.bf16.mxu1 %vm2010_vm2, %v2008_v37 }
  0xb1   : > { %1870 = vmatmul.mubr.msk.bf16.gmra.mrb[64].mxu0 %vm578_vm3, %v1980_v11  ;;  %1910 = vmatmul.mubr.msk.bf16.gmra.mrb[64].mxu1 %vm578_vm3, %v1981_v12 }
  0xb2   : > { %1873 = vmatprep.mubr.msk.bf16.mxu0 %vm2010_vm2, %v2008_v37  ;;  %1913 = vmatprep.mubr.msk.bf16.mxu1 %vm2010_vm2, %v2008_v37 }
  0xb9   : > { %1874 = vmatmul.mubr.msk.bf16.gmra.mrb[68].mxu0 %vm578_vm3, %v1982_v13  ;;  %1914 = vmatmul.mubr.msk.bf16.gmra.mrb[68].mxu1 %vm578_vm3, %v1983_v14 }
 0x104   : > { %v2304_v15 = vpop.f32.mrb[0].mxu0  ;;  %v2306_v16 = vpop.f32.mrb[0].mxu1 }
 0x105   : > { %v914_v17 = vmax.f32 %v2304_v15, %v2306_v16  ;;  %v1763_v18 = vpop.f32.mrb[1].mxu0  ;;  %v1803_v19 = vpop.f32.mrb[1].mxu1 }
 0x106   : > { %v2310_v20 = vpop.f32.mrb[2].mxu0  ;;  %v2312_v21 = vpop.f32.mrb[2].mxu1 }
 0x107   : > { %v915_v22 = vmax.f32 %v2310_v20, %v2312_v21  ;;  %v1764_v23 = vpop.f32.mrb[3].mxu0  ;;  %v1804_v24 = vpop.f32.mrb[3].mxu1 }
 0x10c   : > { %v2316_v25 = vpop.f32.mrb[4].mxu0  ;;  %v2318_v26 = vpop.f32.mrb[4].mxu1 }
 0x10d   : > { %v916_v27 = vmax.f32 %v2316_v25, %v2318_v26  ;;  %v1767_v28 = vpop.f32.mrb[5].mxu0  ;;  %v1807_v29 = vpop.f32.mrb[5].mxu1 }
 0x10e   : > { %v2322_v30 = vpop.f32.mrb[6].mxu0  ;;  %v2324_v31 = vpop.f32.mrb[6].mxu1 }
 0x10f   : > { %v917_v32 = vmax.f32 %v2322_v30, %v2324_v31  ;;  %v1768_v33 = vpop.f32.mrb[7].mxu0  ;;  %v1808_v34 = vpop.f32.mrb[7].mxu1 }
 0x114   : > { %v2328_v35 = vpop.f32.mrb[8].mxu0  ;;  %v2330_v36 = vpop.f32.mrb[8].mxu1 }
 0x115   : > { %v918_v37 = vmax.f32 %v2328_v35, %v2330_v36  ;;  %v1771_v38 = vpop.f32.mrb[9].mxu0  ;;  %v1811_v39 = vpop.f32.mrb[9].mxu1 }
 0x116   : > { %v2334_v40 = vpop.f32.mrb[10].mxu0  ;;  %v2336_v41 = vpop.f32.mrb[10].mxu1 }
 0x117   : > { %v919_v42 = vmax.f32 %v2334_v40, %v2336_v41  ;;  %v1772_v43 = vpop.f32.mrb[11].mxu0  ;;  %v1812_v44 = vpop.f32.mrb[11].mxu1 }
 0x11c   : > { %v2340_v45 = vpop.f32.mrb[12].mxu0  ;;  %v2342_v46 = vpop.f32.mrb[12].mxu1 }
 0x11d   : > { %v920_v47 = vmax.f32 %v2340_v45, %v2342_v46  ;;  %v1775_v48 = vpop.f32.mrb[13].mxu0  ;;  %v1815_v49 = vpop.f32.mrb[13].mxu1 }
 0x11e   : > { %v2346_v50 = vpop.f32.mrb[14].mxu0  ;;  %v2348_v51 = vpop.f32.mrb[14].mxu1 }
 0x11f   : > { %v921_v52 = vmax.f32 %v2346_v50, %v2348_v51  ;;  %v1776_v53 = vpop.f32.mrb[15].mxu0  ;;  %v1816_v54 = vpop.f32.mrb[15].mxu1 }
 0x124   : > { %v2352_v55 = vpop.f32.mrb[16].mxu0  ;;  %v2354_v56 = vpop.f32.mrb[16].mxu1 }
 0x125   : > { %v922_v57 = vmax.f32 %v2352_v55, %v2354_v56  ;;  %v1779_v58 = vpop.f32.mrb[17].mxu0  ;;  %v1819_v59 = vpop.f32.mrb[17].mxu1 }
 0x126   : > { %v2358_v60 = vpop.f32.mrb[18].mxu0  ;;  %v2360_v61 = vpop.f32.mrb[18].mxu1 }
 0x127   : > { %v923_v62 = vmax.f32 %v2358_v60, %v2360_v61  ;;  %v1780_v63 = vpop.f32.mrb[19].mxu0  ;;  %v1820_v0 = vpop.f32.mrb[19].mxu1 }
 0x12c   : > { %v2364_v1 = vpop.f32.mrb[20].mxu0  ;;  %v2366_v2 = vpop.f32.mrb[20].mxu1 }
 0x12d   : > { %v924_v3 = vmax.f32 %v2364_v1, %v2366_v2  ;;  %v1783_v4 = vpop.f32.mrb[21].mxu0  ;;  %v1823_v5 = vpop.f32.mrb[21].mxu1 }
 0x12e   : > { %v2370_v6 = vpop.f32.mrb[22].mxu0  ;;  %v2372_v7 = vpop.f32.mrb[22].mxu1 }
 0x12f   : > { %v925_v8 = vmax.f32 %v2370_v6, %v2372_v7  ;;  %v1784_v9 = vpop.f32.mrb[23].mxu0  ;;  %v1824_v10 = vpop.f32.mrb[23].mxu1 }
 0x134   : > { %v2376_v11 = vpop.f32.mrb[24].mxu0  ;;  %v2378_v12 = vpop.f32.mrb[24].mxu1 }
 0x135   : > { %v926_v13 = vmax.f32 %v2376_v11, %v2378_v12  ;;  %v1787_v14 = vpop.f32.mrb[25].mxu0  ;;  %v1827_v18 = vpop.f32.mrb[25].mxu1 }
 0x136   : > { %v2382_v19 = vpop.f32.mrb[26].mxu0  ;;  %v2384_v23 = vpop.f32.mrb[26].mxu1 }
 0x137   : > { %v927_v24 = vmax.f32 %v2382_v19, %v2384_v23  ;;  %v1788_v28 = vpop.f32.mrb[27].mxu0  ;;  %v1828_v29 = vpop.f32.mrb[27].mxu1 }
 0x13c   : > { %v2388_v33 = vpop.f32.mrb[28].mxu0  ;;  %v2390_v34 = vpop.f32.mrb[28].mxu1 }
 0x13d   : > { %v928_v38 = vmax.f32 %v2388_v33, %v2390_v34  ;;  %v1791_v39 = vpop.f32.mrb[29].mxu0  ;;  %v1831_v43 = vpop.f32.mrb[29].mxu1 }
 0x13e   : > { %v2394_v44 = vpop.f32.mrb[30].mxu0  ;;  %v2396_v48 = vpop.f32.mrb[30].mxu1 }
 0x13f   : > { %v929_v49 = vmax.f32 %v2394_v44, %v2396_v48  ;;  %v1792_v53 = vpop.f32.mrb[31].mxu0  ;;  %v1832_v54 = vpop.f32.mrb[31].mxu1 }
 0x140   : > { %v2420_v54 = vld [vmem:[%s2544_s2] ss:$0 sm:$0xff] }
 0x144   : > { %v2402_v58 = vpop.f32.mrb[32].mxu0  ;;  %v2404_v59 = vpop.f32.mrb[32].mxu1 }
 0x145   : > { %v1795_v0 = vpop.f32.mrb[33].mxu0  ;;  %v1835_v4 = vpop.f32.mrb[33].mxu1 }
 0x146   : > { %v2408_v5 = vpop.f32.mrb[34].mxu0  ;;  %v2410_v9 = vpop.f32.mrb[34].mxu1 }
 0x147   : > { %v1796_v14 = vpop.f32.mrb[35].mxu0  ;;  %v1836_v18 = vpop.f32.mrb[35].mxu1 }
 0x14c   : > { %v1057_v28 = vpop.f32.mrb[36].mxu0  ;;  %v1271_v29 = vpop.f32.mrb[36].mxu1 }
 0x14d   : > { %v1128_v39 = vmax.f32 %v914_v17, %v1057_v28  ;;  %v1843_v43 = vpop.f32.mrb[37].mxu0  ;;  %v1883_v53 = vpop.f32.mrb[37].mxu1 }
 0x14e   : > { %v1060_v0 = vpop.f32.mrb[38].mxu0  ;;  %v1274_v4 = vpop.f32.mrb[38].mxu1 }
 0x14f   : > { %v1342_v14 = vmax.f32 %v1128_v39, %v1271_v29  ;;  %v1129_v18 = vmax.f32 %v915_v22, %v1060_v0  ;;  %v1844_v10 = vpop.f32.mrb[39].mxu0  ;;  %v1884_v63 = vpop.f32.mrb[39].mxu1 }
 0x151   : > { %v1367_v15 = vadd.f32 %v2420_v54, %v1342_v14  ;;  %v1343_v16 = vmax.f32 %v1129_v18, %v1274_v4 }
 0x153   : > { %v1695_v17 = vpack.c.bf16 %v1367_v15, %v1367_v15  ;;  %v1368_v28 = vadd.f32 %v2420_v54, %v1343_v16 }
 0x154   : > { %v1065_v29 = vpop.f32.mrb[40].mxu0  ;;  %v1279_v39 = vpop.f32.mrb[40].mxu1 }
 0x155   : > { %1458 = vst.msk [vmem:[%s2429_s14] sm:$0xf] %vm1457_vm4, %v1695_v17  ;;  %v1696_v20 = vpack.c.bf16 %v1368_v28, %v1368_v28  ;;  %v1130_v21 = vmax.f32 %v916_v27, %v1065_v29  ;;  %v1847_v22 = vpop.f32.mrb[41].mxu0  ;;  %v1887_v63 = vpop.f32.mrb[41].mxu1 }
 0x156   : > { %v1068_v10 = vpop.f32.mrb[42].mxu0  ;;  %v1282_v43 = vpop.f32.mrb[42].mxu1 }
 0x157   : > { %1459 = vst.msk [vmem:[%s2429_s14 + $0x4] sm:$0xf] %vm1457_vm4, %v1696_v20  ;;  %v1344_v53 = vmax.f32 %v1130_v21, %v1279_v39  ;;  %v1131_v0 = vmax.f32 %v917_v32, %v1068_v10  ;;  %v1848_v4 = vpop.f32.mrb[43].mxu0  ;;  %v1888_v14 = vpop.f32.mrb[43].mxu1 }
 0x159   : > { %v1369_v18 = vadd.f32 %v2420_v54, %v1344_v53  ;;  %v1345_v15 = vmax.f32 %v1131_v0, %v1282_v43 }
 0x15b   : > { %v1697_v25 = vpack.c.bf16 %v1369_v18, %v1369_v18  ;;  %v1370_v26 = vadd.f32 %v2420_v54, %v1345_v15 }
 0x15c   : > { %v1073_v27 = vpop.f32.mrb[44].mxu0  ;;  %v1287_v16 = vpop.f32.mrb[44].mxu1 }
 0x15d   : > { %1460 = vst.msk [vmem:[%s2429_s14 + $0x8] sm:$0xf] %vm1457_vm4, %v1697_v25  ;;  %v1698_v17 = vpack.c.bf16 %v1370_v26, %v1370_v26  ;;  %v1132_v28 = vmax.f32 %v918_v37, %v1073_v27  ;;  %v1851_v30 = vpop.f32.mrb[45].mxu0  ;;  %v1891_v31 = vpop.f32.mrb[45].mxu1 }
 0x15e   : > { %v1076_v32 = vpop.f32.mrb[46].mxu0  ;;  %v1290_v29 = vpop.f32.mrb[46].mxu1 }
 0x15f   : > { %1461 = vst.msk [vmem:[%s2429_s14 + $0xc] sm:$0xf] %vm1457_vm4, %v1698_v17  ;;  %v1346_v39 = vmax.f32 %v1132_v28, %v1287_v16  ;;  %v1133_v20 = vmax.f32 %v919_v42, %v1076_v32  ;;  %v1852_v21 = vpop.f32.mrb[47].mxu0  ;;  %v1892_v22 = vpop.f32.mrb[47].mxu1 }
 0x161   : > { %v1371_v63 = vadd.f32 %v2420_v54, %v1346_v39  ;;  %v1347_v10 = vmax.f32 %v1133_v20, %v1290_v29 }
 0x163   : > { %v1699_v35 = vpack.c.bf16 %v1371_v63, %v1371_v63  ;;  %v1372_v36 = vadd.f32 %v2420_v54, %v1347_v10 }
 0x164   : > { %v1081_v37 = vpop.f32.mrb[48].mxu0  ;;  %v1295_v43 = vpop.f32.mrb[48].mxu1 }
 0x165   : > { %1462 = vst.msk [vmem:[%s2429_s14 + $0x10] sm:$0xf] %vm1457_vm4, %v1699_v35  ;;  %v1700_v53 = vpack.c.bf16 %v1372_v36, %v1372_v36  ;;  %v1134_v0 = vmax.f32 %v920_v47, %v1081_v37  ;;  %v1855_v40 = vpop.f32.mrb[49].mxu0  ;;  %v1895_v41 = vpop.f32.mrb[49].mxu1 }
 0x166   : > { %v1084_v42 = vpop.f32.mrb[50].mxu0  ;;  %v1298_v4 = vpop.f32.mrb[50].mxu1 }
 0x167   : > { %1463 = vst.msk [vmem:[%s2429_s14 + $0x14] sm:$0xf] %vm1457_vm4, %v1700_v53  ;;  %v1348_v14 = vmax.f32 %v1134_v0, %v1295_v43  ;;  %v1135_v18 = vmax.f32 %v921_v52, %v1084_v42  ;;  %v1856_v15 = vpop.f32.mrb[51].mxu0  ;;  %v1896_v25 = vpop.f32.mrb[51].mxu1 }
 0x169   : > { %v1373_v26 = vadd.f32 %v2420_v54, %v1348_v14  ;;  %v1349_v27 = vmax.f32 %v1135_v18, %v1298_v4 }
 0x16b   : > { %v1701_v45 = vpack.c.bf16 %v1373_v26, %v1373_v26  ;;  %v1374_v46 = vadd.f32 %v2420_v54, %v1349_v27 }
 0x16c   : > { %v1089_v47 = vpop.f32.mrb[52].mxu0  ;;  %v1303_v16 = vpop.f32.mrb[52].mxu1 }
 0x16d   : > { %1464 = vst.msk [vmem:[%s2429_s14 + $0x18] sm:$0xf] %vm1457_vm4, %v1701_v45  ;;  %v1702_v17 = vpack.c.bf16 %v1374_v46, %v1374_v46  ;;  %v1136_v28 = vmax.f32 %v922_v57, %v1089_v47  ;;  %v1859_v50 = vpop.f32.mrb[53].mxu0  ;;  %v1899_v51 = vpop.f32.mrb[53].mxu1 }
 0x16e   : > { %v1092_v52 = vpop.f32.mrb[54].mxu0  ;;  %v1306_v30 = vpop.f32.mrb[54].mxu1 }
 0x16f   : > { %1465 = vst.msk [vmem:[%s2429_s14 + $0x1c] sm:$0xf] %vm1457_vm4, %v1702_v17  ;;  %v1350_v31 = vmax.f32 %v1136_v28, %v1303_v16  ;;  %v1137_v32 = vmax.f32 %v923_v62, %v1092_v52  ;;  %v1860_v29 = vpop.f32.mrb[55].mxu0  ;;  %v1900_v39 = vpop.f32.mrb[55].mxu1 }
 0x170   : > { %v2546_v39 = vmax.f32 %v2402_v58, %v2404_v59 }
 0x171   : > { %v1375_v20 = vadd.f32 %v2420_v54, %v1350_v31  ;;  %v1351_v21 = vmax.f32 %v1137_v32, %v1306_v30 }
 0x173   : > { %v1703_v55 = vpack.c.bf16 %v1375_v20, %v1375_v20  ;;  %v1376_v56 = vadd.f32 %v2420_v54, %v1351_v21 }
 0x174   : > { %v1097_v57 = vpop.f32.mrb[56].mxu0  ;;  %v1311_v22 = vpop.f32.mrb[56].mxu1 }
 0x175   : > { %1466 = vst.msk [vmem:[%s2429_s14 + $0x20] sm:$0xf] %vm1457_vm4, %v1703_v55  ;;  %v1704_v63 = vpack.c.bf16 %v1376_v56, %v1376_v56  ;;  %v1138_v10 = vmax.f32 %v924_v3, %v1097_v57  ;;  %v1863_v60 = vpop.f32.mrb[57].mxu0  ;;  %v1903_v61 = vpop.f32.mrb[57].mxu1  ;;  %v2547_v56 = vmax.f32 %v2408_v5, %v2410_v9 }
 0x176   : > { %v1100_v62 = vpop.f32.mrb[58].mxu0  ;;  %v1314_v35 = vpop.f32.mrb[58].mxu1 }
 0x177   : > { %1467 = vst.msk [vmem:[%s2429_s14 + $0x24] sm:$0xf] %vm1457_vm4, %v1704_v63  ;;  %v1352_v36 = vmax.f32 %v1138_v10, %v1311_v22  ;;  %v1139_v37 = vmax.f32 %v925_v8, %v1100_v62  ;;  %v1864_v43 = vpop.f32.mrb[59].mxu0  ;;  %v1904_v53 = vpop.f32.mrb[59].mxu1 }
 0x179   : > { %v1377_v0 = vadd.f32 %v2420_v54, %v1352_v36  ;;  %v1353_v40 = vmax.f32 %v1139_v37, %v1314_v35 }
 0x17b   : > { %v1705_v1 = vpack.c.bf16 %v1377_v0, %v1377_v0  ;;  %v1378_v2 = vadd.f32 %v2420_v54, %v1353_v40 }
 0x17c   : > { %v1105_v3 = vpop.f32.mrb[60].mxu0  ;;  %v1319_v41 = vpop.f32.mrb[60].mxu1 }
 0x17d   : > { %1468 = vst.msk [vmem:[%s2429_s14 + $0x28] sm:$0xf] %vm1457_vm4, %v1705_v1  ;;  %v1706_v42 = vpack.c.bf16 %v1378_v2, %v1378_v2  ;;  %v1140_v4 = vmax.f32 %v926_v13, %v1105_v3  ;;  %v1867_v6 = vpop.f32.mrb[61].mxu0  ;;  %v1907_v7 = vpop.f32.mrb[61].mxu1 }
 0x17e   : > { %v1108_v8 = vpop.f32.mrb[62].mxu0  ;;  %v1322_v14 = vpop.f32.mrb[62].mxu1 }
 0x17f   : > { %1469 = vst.msk [vmem:[%s2429_s14 + $0x2c] sm:$0xf] %vm1457_vm4, %v1706_v42  ;;  %v1354_v18 = vmax.f32 %v1140_v4, %v1319_v41  ;;  %v1141_v15 = vmax.f32 %v927_v24, %v1108_v8  ;;  %v1868_v25 = vpop.f32.mrb[63].mxu0  ;;  %v1908_v26 = vpop.f32.mrb[63].mxu1 }
 0x181   : > { %v1379_v27 = vadd.f32 %v2420_v54, %v1354_v18  ;;  %v1355_v45 = vmax.f32 %v1141_v15, %v1322_v14 }
 0x183   : > { %v1707_v11 = vpack.c.bf16 %v1379_v27, %v1379_v27  ;;  %v1380_v12 = vadd.f32 %v2420_v54, %v1355_v45 }
 0x184   : > { %v1113_v13 = vpop.f32.mrb[64].mxu0  ;;  %v1327_v46 = vpop.f32.mrb[64].mxu1 }
 0x185   : > { %1470 = vst.msk [vmem:[%s2429_s14 + $0x30] sm:$0xf] %vm1457_vm4, %v1707_v11  ;;  %v1708_v47 = vpack.c.bf16 %v1380_v12, %v1380_v12  ;;  %v1142_v16 = vmax.f32 %v928_v38, %v1113_v13  ;;  %v1871_v19 = vpop.f32.mrb[65].mxu0  ;;  %v1911_v23 = vpop.f32.mrb[65].mxu1 }
 0x186   : > { %v1116_v24 = vpop.f32.mrb[66].mxu0  ;;  %v1330_v17 = vpop.f32.mrb[66].mxu1 }
 0x187   : > { %1471 = vst.msk [vmem:[%s2429_s14 + $0x34] sm:$0xf] %vm1457_vm4, %v1708_v47  ;;  %v1356_v28 = vmax.f32 %v1142_v16, %v1327_v46  ;;  %v1143_v50 = vmax.f32 %v929_v49, %v1116_v24  ;;  %v1872_v51 = vpop.f32.mrb[67].mxu0  ;;  %v1912_v52 = vpop.f32.mrb[67].mxu1 }
 0x189   : > { %v1381_v30 = vadd.f32 %v2420_v54, %v1356_v28  ;;  %v1357_v31 = vmax.f32 %v1143_v50, %v1330_v17 }
 0x18b   : > { %v1709_v33 = vpack.c.bf16 %v1381_v30, %v1381_v30  ;;  %v1382_v34 = vadd.f32 %v2420_v54, %v1357_v31 }
 0x18c   : > { %v1121_v38 = vpop.f32.mrb[68].mxu0  ;;  %v1335_v32 = vpop.f32.mrb[68].mxu1 }
 0x18d   : > { %1472 = vst.msk [vmem:[%s2429_s14 + $0x38] sm:$0xf] %vm1457_vm4, %v1709_v33  ;;  %v1710_v29 = vpack.c.bf16 %v1382_v34, %v1382_v34  ;;  %v1144_v44 = vmax.f32 %v2546_v39, %v1121_v38  ;;  %v1875_v48 = vpop.f32.mrb[69].mxu0  ;;  %v1915_v49 = vpop.f32.mrb[69].mxu1 }
 0x18e   : > { %v1124_v20 = vpop.f32.mrb[70].mxu0  ;;  %v1338_v21 = vpop.f32.mrb[70].mxu1 }
 0x18f   : > { %1473 = vst.msk [vmem:[%s2429_s14 + $0x3c] sm:$0xf] %vm1457_vm4, %v1710_v29  ;;  %v1358_v55 = vmax.f32 %v1144_v44, %v1335_v32  ;;  %v1145_v57 = vmax.f32 %v2547_v56, %v1124_v20  ;;  %v1876_v22 = vpop.f32.mrb[71].mxu0  ;;  %v1916_v63 = vpop.f32.mrb[71].mxu1 }
 0x191   : > { %v1383_v10 = vadd.f32 %v2420_v54, %v1358_v55  ;;  %v1359_v60 = vmax.f32 %v1145_v57, %v1338_v21 }
 0x193   : > { %v1711_v61 = vpack.c.bf16 %v1383_v10, %v1383_v10  ;;  %v1384_v58 = vadd.f32 %v2420_v54, %v1359_v60 }
 0x195   : > { %1474 = vst.msk [vmem:[%s2429_s14 + $0x40] sm:$0xf] %vm1457_vm4, %v1711_v61  ;;  %v1712_v59 = vpack.c.bf16 %v1384_v58, %v1384_v58 }
 0x197   : > { %1475 = vst.msk [vmem:[%s2429_s14 + $0x44] sm:$0xf] %vm1457_vm4, %v1712_v59 }
 0x198 PF: > { %p10_p9 = scmp.ge.s32.totalorder %s2048_s16, 4   ;;  %s2548_s12 = smov %s2002_s13 }
 0x199   : > { %s2549_s13 = smov %s2057_s19  ;;  %s2550_s14 = smov %s2048_s16 }
 0x19a   :  { %12 = sbr.rel (!%p10_p9) target bundleno = 2 (0x2), region = 111 }

// kernel: mnist_not3or4_forward.4
= control target key start
LH: loop header
LB: loop body
LE: loop exit
PB: predicated region body
PF: predicated region fallthrough
CT: control target
= control target key end

     0   :  { %vm501_vm0 = vcmask 261120   ;;  %vm1610_vm1 = vcmask 519168   ;;  %s2998_s1 = inlined_call_operand.vmem [shape: bf16[800,64], index: 1, kind: input, shape index: {}]   ;;  %s2999_s0 = inlined_call_operand.vmem [shape: bf16[4,32,800], index: 0, kind: input, shape index: {}]   ;;  %s3000_s2 = inlined_call_operand.vmem [shape: f32[1,64], index: 2, kind: input, shape index: {}]   ;;  %s3001_s3 = inlined_call_operand.vmem [shape: bf16[32,64], index: 3, kind: output, shape index: {}]  }
   0x1   :  { %v2327_v0 = vld [vmem:[%s2998_s1 + $0x40] sm:$0xff]   ;;  %v2350_v4 = vld [vmem:[%s2998_s1 + $0x48] sm:$0xff]   ;;  %v2374_v8 = vld [vmem:[%s2998_s1 + $0x50] sm:$0xff]  }
   0x2   :  { %v2332_v1 = vld [vmem:[%s2998_s1 + $0xc0] sm:$0xff]   ;;  %1790 = vmatprep.subr.bf16.mxu0 %v2327_v0  ;;  %v2356_v5 = vld [vmem:[%s2998_s1 + $0xc8] sm:$0xff]   ;;  %v2380_v9 = vld [vmem:[%s2998_s1 + $0xd0] sm:$0xff]  }
   0x3   :  { %v2338_v2 = vld [vmem:[%s2998_s1] sm:$0xff]   ;;  %1818 = vmatprep.subr.bf16.mxu1 %v2332_v1  ;;  %v2362_v6 = vld [vmem:[%s2998_s1 + $0x8] sm:$0xff]   ;;  %v2386_v10 = vld [vmem:[%s2998_s1 + $0x10] sm:$0xff]  }
   0x4   :  { %v2344_v3 = vld [vmem:[%s2998_s1 + $0x80] sm:$0xff]   ;;  %1791 = vmatpush3.bf16.msra.mxu0 %v2338_v2  ;;  %v2368_v7 = vld [vmem:[%s2998_s1 + $0x88] sm:$0xff]   ;;  %v2392_v11 = vld [vmem:[%s2998_s1 + $0x90] sm:$0xff]  }
   0x5   :  { %1819 = vmatpush3.bf16.msra.mxu1 %v2344_v3  ;;  %1792 = vmatprep.subr.bf16.mxu0 %v2350_v4  ;;  %v2398_v12 = vld [vmem:[%s2998_s1 + $0x58] sm:$0xff]   ;;  %v2422_v16 = vld [vmem:[%s2998_s1 + $0x60] sm:$0xff]   ;;  %v2446_v20 = vld [vmem:[%s2998_s1 + $0x68] sm:$0xff]  }
   0x6   :  { %1820 = vmatprep.subr.bf16.mxu1 %v2356_v5  ;;  %v2404_v13 = vld [vmem:[%s2998_s1 + $0xd8] sm:$0xff]   ;;  %v2428_v17 = vld [vmem:[%s2998_s1 + $0xe0] sm:$0xff]   ;;  %v2452_v21 = vld [vmem:[%s2998_s1 + $0xe8] sm:$0xff]  }
   0x7   :  { %v2410_v14 = vld [vmem:[%s2998_s1 + $0x18] sm:$0xff]   ;;  %v2434_v18 = vld [vmem:[%s2998_s1 + $0x20] sm:$0xff]   ;;  %v2458_v22 = vld [vmem:[%s2998_s1 + $0x28] sm:$0xff]  }
   0x8   :  { %1793 = vmatpush3.bf16.msra.mxu0 %v2362_v6  ;;  %v2416_v15 = vld [vmem:[%s2998_s1 + $0x98] sm:$0xff]   ;;  %v2440_v19 = vld [vmem:[%s2998_s1 + $0xa0] sm:$0xff]   ;;  %v2464_v23 = vld [vmem:[%s2998_s1 + $0xa8] sm:$0xff]  }
   0x9   :  { %1821 = vmatpush3.bf16.msra.mxu1 %v2368_v7  ;;  %1794 = vmatprep.subr.bf16.mxu0 %v2374_v8  ;;  %v2470_v24 = vld [vmem:[%s2998_s1 + $0x70] sm:$0xff]   ;;  %v2494_v28 = vld [vmem:[%s2998_s1 + $0x78] sm:$0xff]   ;;  %v2208_v33 = vld [vmem:[%s2999_s0 + $0x4] ss:$28 sps:$4 sm:$0xff]  }
   0xa   :  { %1822 = vmatprep.subr.bf16.mxu1 %v2380_v9  ;;  %v2476_v25 = vld [vmem:[%s2998_s1 + $0xf0] sm:$0xff]   ;;  %v2500_v29 = vld [vmem:[%s2998_s1 + $0xf8] sm:$0xff]   ;;  %v2209_v34 = vld [vmem:[%s2999_s0 + $0x8] ss:$28 sps:$4 sm:$0xff]   ;;  %540 = vmatprep.mubr.bf16.mxu0 %v2208_v33 }
   0xb   :  { %v2482_v26 = vld [vmem:[%s2998_s1 + $0x30] sm:$0xff]   ;;  %v2506_v30 = vld [vmem:[%s2998_s1 + $0x38] sm:$0xff]   ;;  %v2211_v35 = vld [vmem:[%s2999_s0 + $0xc] ss:$28 sps:$4 sm:$0xff]  }
   0xc   :  { %1795 = vmatpush3.bf16.msra.mxu0 %v2386_v10  ;;  %v2488_v27 = vld [vmem:[%s2998_s1 + $0xb0] sm:$0xff]   ;;  %v2512_v31 = vld [vmem:[%s2998_s1 + $0xb8] sm:$0xff]   ;;  %v2531_v36 = vld [vmem:[%s2998_s1 + $0x140] sm:$0xff]   ;;  %589 = vmatprep.mubr.bf16.mxu1 %v2211_v35 }
   0xd   :  { %1823 = vmatpush3.bf16.msra.mxu1 %v2392_v11  ;;  %1796 = vmatprep.subr.bf16.mxu0 %v2398_v12  ;;  %v2206_v32 = vld [vmem:[%s2999_s0] ss:$28 sps:$4 sm:$0xff]   ;;  %v2548_v39 = vld [vmem:[%s2998_s1 + $0x148] sm:$0xff]   ;;  %v2221_v43 = vld [vmem:[%s2999_s0 + $0x38] ss:$28 sps:$4 sm:$0xff]  }
   0xe   :  { %1824 = vmatprep.subr.bf16.mxu1 %v2404_v13  ;;  %v2536_v37 = vld [vmem:[%s2998_s1 + $0x180] sm:$0xff]   ;;  %v2555_v40 = vld [vmem:[%s2998_s1 + $0x108] sm:$0xff]   ;;  %v2217_v41 = vld [vmem:[%s2999_s0 + $0x3c] ss:$28 sps:$4 sm:$0xff]  }
   0xf   :  { %v2542_v38 = vld [vmem:[%s2998_s1 + $0x100] sm:$0xff]   ;;  %v2574_v45 = vld [vmem:[%s2998_s1 + $0x150] sm:$0xff]   ;;  %v2579_v46 = vld [vmem:[%s2998_s1 + $0x188] sm:$0xff]  }
  0x10   :  { %1797 = vmatpush3.bf16.msra.mxu0 %v2410_v14  ;;  %v2219_v42 = vld [vmem:[%s2999_s0 + $0x44] ss:$28 sps:$4 sm:$0xff]   ;;  %v2585_v47 = vld [vmem:[%s2998_s1 + $0x110] sm:$0xff]   ;;  %v2591_v48 = vld [vmem:[%s2998_s1 + $0x158] sm:$0xff]  }
  0x11   :  { %1825 = vmatpush3.bf16.msra.mxu1 %v2416_v15  ;;  %1798 = vmatprep.subr.bf16.mxu0 %v2422_v16  ;;  %v2222_v44 = vld [vmem:[%s2999_s0 + $0x40] ss:$28 sps:$4 sm:$0xff]   ;;  %v2228_v50 = vld [vmem:[%s2999_s0 + $0x18] ss:$28 sps:$4 sm:$0xff]   ;;  %v2230_v52 = vld [vmem:[%s2999_s0 + $0x50] ss:$28 sps:$4 sm:$0xff]  }
  0x12   :  { %1826 = vmatprep.subr.bf16.mxu1 %v2428_v17  ;;  %v2598_v49 = vld [vmem:[%s2998_s1 + $0x118] sm:$0xff]   ;;  %v2608_v51 = vld [vmem:[%s2998_s1 + $0x160] sm:$0xff]   ;;  %v2624_v54 = vld [vmem:[%s2998_s1 + $0x168] sm:$0xff]  }
  0x13   :  { %v2618_v53 = vld [vmem:[%s2998_s1 + $0x120] sm:$0xff]   ;;  %v2633_v55 = vld [vmem:[%s2998_s1 + $0x128] sm:$0xff]   ;;  %v2639_v56 = vld [vmem:[%s2998_s1 + $0x170] sm:$0xff]  }
  0x14   :  { %1799 = vmatpush3.bf16.msra.mxu0 %v2434_v18  ;;  %v2240_v57 = vld [vmem:[%s2999_s0 + $0x14] ss:$28 sps:$4 sm:$0xff]   ;;  %v2656_v59 = vld [vmem:[%s2998_s1 + $0x178] sm:$0xff]   ;;  %v2241_v63 = vld [vmem:[%s2999_s0 + $0x4c] ss:$28 sps:$4 sm:$0xff]  }
  0x15   :  { %1827 = vmatpush3.bf16.msra.mxu1 %v2440_v19  ;;  %1800 = vmatprep.subr.bf16.mxu0 %v2446_v20  ;;  %v2650_v58 = vld [vmem:[%s2998_s1 + $0x130] sm:$0xff]   ;;  %v2667_v61 = vld [vmem:[%s2998_s1 + $0x138] sm:$0xff]   ;;  %v2250_v35 = vld [vmem:[%s2999_s0 + $0xac] ss:$28 sps:$4 sm:$0xff]  }
  0x16   :  { %1828 = vmatprep.subr.bf16.mxu1 %v2452_v21  ;;  %v2246_v60 = vld [vmem:[%s2999_s0 + $0x74] ss:$28 sps:$4 sm:$0xff]   ;;  %v2249_v33 = vld [vmem:[%s2999_s0 + $0x7c] ss:$28 sps:$4 sm:$0xff]  }
  0x17   :  { %v2238_v62 = vld [vmem:[%s2999_s0 + $0x10] ss:$28 sps:$4 sm:$0xff]  }
  0x18   :  { %1801 = vmatpush3.bf16.msra.mxu0 %v2458_v22 }
  0x19   :  { %1829 = vmatpush3.bf16.msra.mxu1 %v2464_v23  ;;  %1802 = vmatprep.subr.bf16.mxu0 %v2470_v24 }
  0x1a   :  { %1830 = vmatprep.subr.bf16.mxu1 %v2476_v25 }
  0x1c   :  { %1803 = vmatpush3.bf16.msra.mxu0 %v2482_v26 }
  0x1d   :  { %1831 = vmatpush3.bf16.msra.mxu1 %v2488_v27  ;;  %1804 = vmatprep.subr.bf16.mxu0 %v2494_v28 }
  0x1e   :  { %1832 = vmatprep.subr.bf16.mxu1 %v2500_v29 }
  0x20   :  { %1805 = vmatpush3.bf16.msra.mxu0 %v2506_v30 }
  0x21   :  { %1833 = vmatpush3.bf16.msra.mxu1 %v2512_v31  ;;  %1846 = vmatprep.subr.bf16.mxu0 %v2531_v36 }
  0x22   :  { %2142 = vmatprep.subr.bf16.mxu1 %v2536_v37 }
  0x23   :  { %541 = vmatmul.mubr.bf16.vlgmr.msra.gmra.mrb[0].mxu0 %v2206_v32  ;;  %v2243_v32 = vld [vmem:[%s2999_s0 + $0x48] ss:$28 sps:$4 sm:$0xff]  }
  0x24   :  { %590 = vmatmul.mubr.bf16.vlgmr.msra.gmra.mrb[0].mxu1 %v2209_v34  ;;  %1847 = vmatpush3.bf16.msra.mxu0 %v2542_v38  ;;  %v2244_v34 = vld [vmem:[%s2999_s0 + $0x70] ss:$28 sps:$4 sm:$0xff]  }
  0x25   :  { %2143 = vmatpush3.bf16.msra.mxu1 %v2536_v37  ;;  %1848 = vmatprep.subr.bf16.mxu0 %v2548_v39 }
  0x26   :  { %548 = vmatprep.mubr.bf16.mxu0 %v2217_v41  ;;  %597 = vmatprep.mubr.bf16.mxu1 %v2219_v42  ;;  %v2252_v41 = vld [vmem:[%s2999_s0 + $0xa8] ss:$28 sps:$4 sm:$0xff]  }
  0x27   :  { %2144 = vmatprep.subr.bf16.mxu1 %v2579_v46  ;;  %v2258_v42 = vld [vmem:[%s2999_s0 + $0x84] ss:$28 sps:$4 sm:$0xff]  }
  0x28   :  { %1849 = vmatpush3.bf16.msra.mxu0 %v2555_v40 }
  0x29   :  { %1850 = vmatprep.subr.bf16.mxu0 %v2574_v45  ;;  %2145 = vmatpush3.bf16.msra.mxu1 %v2579_v46 }
  0x2a   :  { %1878 = vmatprep.subr.bf16.mxu1 %v2327_v0 }
  0x2b   :  { %549 = vmatmul.mubr.bf16.gmra.mrb[4].mxu0 %v2221_v43  ;;  %v2247_v43 = vld [vmem:[%s2999_s0 + $0x78] ss:$28 sps:$4 sm:$0xff]  }
  0x2c   :  { %598 = vmatmul.mubr.bf16.gmra.mrb[4].mxu1 %v2222_v44  ;;  %1851 = vmatpush3.bf16.msra.mxu0 %v2585_v47  ;;  %v2253_v44 = vld [vmem:[%s2999_s0 + $0xb4] ss:$28 sps:$4 sm:$0xff]  }
  0x2d   :  { %1852 = vmatprep.subr.bf16.mxu0 %v2591_v48  ;;  %2146 = vmatprep.mubr.msk.bf16.mxu1 %vm501_vm0, %v2228_v50  ;;  %v2255_v50 = vld [vmem:[%s2999_s0 + $0xb0] ss:$28 sps:$4 sm:$0xff]  }
  0x2e   :  { %638 = vmatprep.mubr.bf16.mxu0 %v2240_v57  ;;  %v2256_v57 = vld [vmem:[%s2999_s0 + $0x80] ss:$28 sps:$4 sm:$0xff]  }
  0x30   :  { %1853 = vmatpush3.bf16.msra.mxu0 %v2598_v49 }
  0x31   :  { %1854 = vmatprep.subr.bf16.mxu0 %v2608_v51 }
  0x34   :  { %2147 = vmatmul.mubr.msk.bf16.vlgmr.msra.gmra.mrb[8].mxu1 %vm501_vm0, %v2230_v52  ;;  %1855 = vmatpush3.bf16.msra.mxu0 %v2618_v53  ;;  %v2259_v52 = vld [vmem:[%s2999_s0 + $0x88] ss:$28 sps:$4 sm:$0xff]  }
  0x35   :  { %1879 = vmatpush3.bf16.msra.mxu1 %v2338_v2  ;;  %1856 = vmatprep.subr.bf16.mxu0 %v2624_v54 }
  0x36   :  { %1880 = vmatprep.subr.bf16.mxu1 %v2350_v4  ;;  %829 = vmatprep.mubr.bf16.mxu1 %v2246_v60  ;;  %v2260_v60 = vld [vmem:[%s2999_s0 + $0xc0] ss:$28 sps:$4 sm:$0xff]  }
  0x38   :  { %1857 = vmatpush3.bf16.msra.mxu0 %v2633_v55 }
  0x39   :  { %1881 = vmatpush3.bf16.msra.mxu1 %v2362_v6  ;;  %1858 = vmatprep.subr.bf16.mxu0 %v2639_v56 }
  0x3a   :  { %1882 = vmatprep.subr.bf16.mxu1 %v2374_v8 }
  0x3c   :  { %1859 = vmatpush3.bf16.msra.mxu0 %v2650_v58 }
  0x3d   :  { %1883 = vmatpush3.bf16.msra.mxu1 %v2386_v10  ;;  %1860 = vmatprep.subr.bf16.mxu0 %v2656_v59 }
  0x3e   :  { %1884 = vmatprep.subr.bf16.mxu1 %v2398_v12 }
  0x40   :  { %1861 = vmatpush3.bf16.msra.mxu0 %v2667_v61 }
  0x41   :  { %1885 = vmatpush3.bf16.msra.mxu1 %v2410_v14  ;;  %1906 = vmatprep.subr.bf16.mxu0 %v2332_v1 }
  0x42   :  { %1886 = vmatprep.subr.bf16.mxu1 %v2422_v16 }
  0x43   :  { %639 = vmatmul.mubr.bf16.vlgmr.msra.gmra.mrb[8].mxu0 %v2238_v62  ;;  %v2261_v62 = vld [vmem:[%s2999_s0 + $0xbc] ss:$28 sps:$4 sm:$0xff]  }
  0x44   :  { %1907 = vmatpush3.bf16.msra.mxu0 %v2344_v3  ;;  %646 = vmatprep.mubr.bf16.mxu0 %v2241_v63  ;;  %v2266_v63 = vld [vmem:[%s2999_s0 + $0xe4] ss:$28 sps:$4 sm:$0xff]  }
  0x45   :  { %1887 = vmatpush3.bf16.msra.mxu1 %v2434_v18  ;;  %1908 = vmatprep.subr.bf16.mxu0 %v2356_v5 }
  0x46   :  { %1888 = vmatprep.subr.bf16.mxu1 %v2446_v20 }
  0x48   :  { %1909 = vmatpush3.bf16.msra.mxu0 %v2368_v7 }
  0x49   :  { %1889 = vmatpush3.bf16.msra.mxu1 %v2458_v22  ;;  %1910 = vmatprep.subr.bf16.mxu0 %v2380_v9 }
  0x4a   :  { %1890 = vmatprep.subr.bf16.mxu1 %v2470_v24 }
  0x4b   :  { %647 = vmatmul.mubr.bf16.gmra.mrb[12].mxu0 %v2243_v32  ;;  %v2263_v32 = vld [vmem:[%s2999_s0 + $0xb8] ss:$28 sps:$4 sm:$0xff]  }
  0x4c   :  { %1911 = vmatpush3.bf16.msra.mxu0 %v2392_v11  ;;  %878 = vmatprep.mubr.bf16.mxu0 %v2249_v33  ;;  %v2269_v33 = vld [vmem:[%s2999_s0 + $0xec] ss:$28 sps:$4 sm:$0xff]  }
  0x4d   :  { %1891 = vmatpush3.bf16.msra.mxu1 %v2482_v26  ;;  %1912 = vmatprep.subr.bf16.mxu0 %v2404_v13 }
  0x4e   :  { %1892 = vmatprep.subr.bf16.mxu1 %v2494_v28 }
  0x50   :  { %1913 = vmatpush3.bf16.msra.mxu0 %v2416_v15 }
  0x51   :  { %1893 = vmatpush3.bf16.msra.mxu1 %v2506_v30  ;;  %1914 = vmatprep.subr.bf16.mxu0 %v2428_v17 }
  0x52   :  { %1934 = vmatprep.subr.bf16.mxu1 %v2531_v36 }
  0x54   :  { %830 = vmatmul.mubr.bf16.vlgmr.msra.gmra.mrb[12].mxu1 %v2244_v34  ;;  %1915 = vmatpush3.bf16.msra.mxu0 %v2440_v19  ;;  %v2267_v34 = vld [vmem:[%s2999_s0 + $0xe8] ss:$28 sps:$4 sm:$0xff]  }
  0x55   :  { %1935 = vmatpush3.bf16.msra.mxu1 %v2542_v38  ;;  %837 = vmatprep.mubr.bf16.mxu1 %v2250_v35  ;;  %v2264_v35 = vld [vmem:[%s2999_s0 + $0xe0] ss:$28 sps:$4 sm:$0xff]  }
  0x56   :  { %1936 = vmatprep.subr.bf16.mxu1 %v2548_v39  ;;  %1916 = vmatprep.subr.bf16.mxu0 %v2452_v21 }
  0x58   :  { %1917 = vmatpush3.bf16.msra.mxu0 %v2464_v23 }
  0x59   :  { %1937 = vmatpush3.bf16.msra.mxu1 %v2555_v40  ;;  %1918 = vmatprep.subr.bf16.mxu0 %v2476_v25 }
  0x5a   :  { %1938 = vmatprep.subr.bf16.mxu1 %v2574_v45 }
  0x5c   :  { %838 = vmatmul.mubr.bf16.gmra.mrb[16].mxu1 %v2252_v41  ;;  %1919 = vmatpush3.bf16.msra.mxu0 %v2488_v27  ;;  %v2270_v41 = vld [vmem:[%s2999_s0 + $0x11c] ss:$28 sps:$4 sm:$0xff]  }
  0x5d   :  { %1939 = vmatpush3.bf16.msra.mxu1 %v2585_v47  ;;  %927 = vmatprep.mubr.bf16.mxu1 %v2258_v42  ;;  %v2272_v42 = vld [vmem:[%s2999_s0 + $0x124] ss:$28 sps:$4 sm:$0xff]  }
  0x5e   :  { %1940 = vmatprep.subr.bf16.mxu1 %v2591_v48  ;;  %1920 = vmatprep.subr.bf16.mxu0 %v2500_v29 }
  0x60   :  { %1921 = vmatpush3.bf16.msra.mxu0 %v2512_v31 }
  0x61   :  { %1941 = vmatpush3.bf16.msra.mxu1 %v2598_v49  ;;  %2150 = vmatprep.subr.bf16.mxu0 %v2536_v37 }
  0x62   :  { %1942 = vmatprep.subr.bf16.mxu1 %v2608_v51 }
  0x63   :  { %879 = vmatmul.mubr.bf16.vlgmr.msra.gmra.mrb[16].mxu0 %v2247_v43  ;;  %v2275_v43 = vld [vmem:[%s2999_s0 + $0x120] ss:$28 sps:$4 sm:$0xff]  }
  0x64   :  { %886 = vmatprep.mubr.bf16.mxu0 %v2253_v44  ;;  %2151 = vmatpush3.bf16.msra.mxu0 %v2536_v37  ;;  %v2274_v44 = vld [vmem:[%s2999_s0 + $0x118] ss:$28 sps:$4 sm:$0xff]  }
  0x65   :  { %1943 = vmatpush3.bf16.msra.mxu1 %v2618_v53  ;;  %2152 = vmatprep.subr.bf16.mxu0 %v2579_v46 }
  0x66   :  { %1944 = vmatprep.subr.bf16.mxu1 %v2624_v54 }
  0x68   :  { %2153 = vmatpush3.bf16.msra.mxu0 %v2579_v46 }
  0x69   :  { %1945 = vmatpush3.bf16.msra.mxu1 %v2633_v55  ;;  %1966 = vmatprep.subr.bf16.mxu0 %v2327_v0 }
  0x6a   :  { %1946 = vmatprep.subr.bf16.mxu1 %v2639_v56 }
  0x6b   :  { %887 = vmatmul.mubr.bf16.gmra.mrb[20].mxu0 %v2255_v50  ;;  %v2276_v50 = vld [vmem:[%s2999_s0 + $0xf8] ss:$28 sps:$4 sm:$0xff]  }
  0x6c   :  { %2154 = vmatprep.mubr.msk.bf16.mxu0 %vm501_vm0, %v2259_v52  ;;  %v2280_v52 = vld [vmem:[%s2999_s0 + $0xf4] ss:$28 sps:$4 sm:$0xff]  }
  0x6d   :  { %1947 = vmatpush3.bf16.msra.mxu1 %v2650_v58 }
  0x6e   :  { %1948 = vmatprep.subr.bf16.mxu1 %v2656_v59 }
  0x71   :  { %1949 = vmatpush3.bf16.msra.mxu1 %v2667_v61 }
  0x72   :  { %1994 = vmatprep.subr.bf16.mxu1 %v2332_v1 }
  0x73   :  { %2155 = vmatmul.mubr.msk.bf16.vlgmr.msra.gmra.mrb[24].mxu0 %vm501_vm0, %v2260_v60 }
  0x74   :  { %928 = vmatmul.mubr.bf16.vlgmr.msra.gmra.mrb[20].mxu1 %v2256_v57  ;;  %1967 = vmatpush3.bf16.msra.mxu0 %v2338_v2  ;;  %v2277_v57 = vld [vmem:[%s2999_s0 + $0x130] ss:$28 sps:$4 sm:$0xff]  }
  0x75   :  { %1995 = vmatpush3.bf16.msra.mxu1 %v2344_v3  ;;  %1968 = vmatprep.subr.bf16.mxu0 %v2350_v4 }
  0x76   :  { %1996 = vmatprep.subr.bf16.mxu1 %v2356_v5  ;;  %935 = vmatprep.mubr.bf16.mxu1 %v2261_v62 }
  0x77   :  { %1122 = vmatprep.mubr.bf16.mxu0 %v2266_v63 }
  0x78   :  { %1969 = vmatpush3.bf16.msra.mxu0 %v2362_v6 }
  0x79   :  { %1997 = vmatpush3.bf16.msra.mxu1 %v2368_v7  ;;  %1970 = vmatprep.subr.bf16.mxu0 %v2374_v8 }
  0x7a   :  { %1998 = vmatprep.subr.bf16.mxu1 %v2380_v9 }
  0x7c   :  { %936 = vmatmul.mubr.bf16.gmra.mrb[24].mxu1 %v2263_v32  ;;  %1971 = vmatpush3.bf16.msra.mxu0 %v2386_v10 }
  0x7d   :  { %1999 = vmatpush3.bf16.msra.mxu1 %v2392_v11  ;;  %1171 = vmatprep.mubr.bf16.mxu1 %v2269_v33 }
  0x7e   :  { %2000 = vmatprep.subr.bf16.mxu1 %v2404_v13  ;;  %1972 = vmatprep.subr.bf16.mxu0 %v2398_v12 }
  0x80   :  { %1973 = vmatpush3.bf16.msra.mxu0 %v2410_v14 }
  0x81   :  { %2001 = vmatpush3.bf16.msra.mxu1 %v2416_v15  ;;  %1974 = vmatprep.subr.bf16.mxu0 %v2422_v16 }
  0x82   :  { %2002 = vmatprep.subr.bf16.mxu1 %v2428_v17 }
  0x84   :  { %1975 = vmatpush3.bf16.msra.mxu0 %v2434_v18 }
  0x85   :  { %2003 = vmatpush3.bf16.msra.mxu1 %v2440_v19  ;;  %1976 = vmatprep.subr.bf16.mxu0 %v2446_v20 }
  0x86   :  { %2004 = vmatprep.subr.bf16.mxu1 %v2452_v21 }
  0x88   :  { %1977 = vmatpush3.bf16.msra.mxu0 %v2458_v22 }
  0x89   :  { %2005 = vmatpush3.bf16.msra.mxu1 %v2464_v23  ;;  %1978 = vmatprep.subr.bf16.mxu0 %v2470_v24 }
  0x8a   :  { %2006 = vmatprep.subr.bf16.mxu1 %v2476_v25 }
  0x8c   :  { %1979 = vmatpush3.bf16.msra.mxu0 %v2482_v26 }
  0x8d   :  { %2007 = vmatpush3.bf16.msra.mxu1 %v2488_v27  ;;  %1980 = vmatprep.subr.bf16.mxu0 %v2494_v28 }
  0x8e   :  { %2008 = vmatprep.subr.bf16.mxu1 %v2500_v29 }
  0x90   :  { %1981 = vmatpush3.bf16.msra.mxu0 %v2506_v30 }
  0x91   :  { %2009 = vmatpush3.bf16.msra.mxu1 %v2512_v31  ;;  %2022 = vmatprep.subr.bf16.mxu0 %v2531_v36 }
  0x92   :  { %2158 = vmatprep.subr.bf16.mxu1 %v2536_v37 }
  0x93   :  { %1123 = vmatmul.mubr.bf16.vlgmr.msra.gmra.mrb[28].mxu0 %v2264_v35 }
  0x94   :  { %1172 = vmatmul.mubr.bf16.vlgmr.msra.gmra.mrb[28].mxu1 %v2267_v34  ;;  %2023 = vmatpush3.bf16.msra.mxu0 %v2542_v38 }
  0x95   :  { %2159 = vmatpush3.bf16.msra.mxu1 %v2536_v37  ;;  %1130 = vmatprep.mubr.bf16.mxu0 %v2270_v41 }
  0x96   :  { %2024 = vmatprep.subr.bf16.mxu0 %v2548_v39  ;;  %1179 = vmatprep.mubr.bf16.mxu1 %v2272_v42 }
  0x97   :  { %2160 = vmatprep.subr.bf16.mxu1 %v2579_v46 }
  0x98   :  { %2025 = vmatpush3.bf16.msra.mxu0 %v2555_v40 }
  0x99   :  { %2161 = vmatpush3.bf16.msra.mxu1 %v2579_v46  ;;  %2026 = vmatprep.subr.bf16.mxu0 %v2574_v45 }
  0x9a   :  { %2054 = vmatprep.subr.bf16.mxu1 %v2327_v0  ;;  %v2286_v0 = vld [vmem:[%s2999_s0 + $0x154] ss:$28 sps:$4 sm:$0xff]  }
  0x9b   :  { %1131 = vmatmul.mubr.bf16.gmra.mrb[32].mxu0 %v2274_v44 }
  0x9c   :  { %1180 = vmatmul.mubr.bf16.gmra.mrb[32].mxu1 %v2275_v43  ;;  %2027 = vmatpush3.bf16.msra.mxu0 %v2585_v47 }
  0x9d   :  { %2162 = vmatprep.mubr.msk.bf16.mxu1 %vm501_vm0, %v2276_v50  ;;  %1220 = vmatprep.mubr.bf16.mxu0 %v2280_v52 }
  0x9e   :  { %2028 = vmatprep.subr.bf16.mxu0 %v2591_v48 }
  0xa0   :  { %2029 = vmatpush3.bf16.msra.mxu0 %v2598_v49 }
  0xa1   :  { %2030 = vmatprep.subr.bf16.mxu0 %v2608_v51 }
  0xa4   :  { %2163 = vmatmul.mubr.msk.bf16.vlgmr.msra.gmra.mrb[36].mxu1 %vm501_vm0, %v2277_v57  ;;  %2031 = vmatpush3.bf16.msra.mxu0 %v2618_v53 }
  0xa5   :  { %2055 = vmatpush3.bf16.msra.mxu1 %v2338_v2  ;;  %1415 = vmatprep.mubr.bf16.mxu1 %v2286_v0  ;;  %v2278_v2 = vld [vmem:[%s2999_s0 + $0xf0] ss:$28 sps:$4 sm:$0xff]  }
  0xa6   :  { %2056 = vmatprep.subr.bf16.mxu1 %v2350_v4  ;;  %2032 = vmatprep.subr.bf16.mxu0 %v2624_v54  ;;  %v2281_v4 = vld [vmem:[%s2999_s0 + $0x12c] ss:$28 sps:$4 sm:$0xff]  }
  0xa8   :  { %2033 = vmatpush3.bf16.msra.mxu0 %v2633_v55 }
  0xa9   :  { %2057 = vmatpush3.bf16.msra.mxu1 %v2362_v6  ;;  %2034 = vmatprep.subr.bf16.mxu0 %v2639_v56  ;;  %v2290_v6 = vld [vmem:[%s2999_s0 + $0x18c] ss:$28 sps:$4 sm:$0xff]  }
  0xaa   :  { %2058 = vmatprep.subr.bf16.mxu1 %v2374_v8  ;;  %v2298_v8 = vld [vmem:[%s2999_s0 + $0x164] ss:$28 sps:$4 sm:$0xff]  }
  0xac   :  { %2035 = vmatpush3.bf16.msra.mxu0 %v2650_v58 }
  0xad   :  { %2059 = vmatpush3.bf16.msra.mxu1 %v2386_v10  ;;  %2036 = vmatprep.subr.bf16.mxu0 %v2656_v59  ;;  %v2293_v10 = vld [vmem:[%s2999_s0 + $0x194] ss:$28 sps:$4 sm:$0xff]  }
  0xae   :  { %2060 = vmatprep.subr.bf16.mxu1 %v2398_v12  ;;  %v2299_v12 = vld [vmem:[%s2999_s0 + $0x168] ss:$28 sps:$4 sm:$0xff]  }
  0xb0   :  { %2037 = vmatpush3.bf16.msra.mxu0 %v2667_v61 }
  0xb1   :  { %2061 = vmatpush3.bf16.msra.mxu1 %v2410_v14  ;;  %2082 = vmatprep.subr.bf16.mxu0 %v2332_v1  ;;  %v2283_v1 = vld [vmem:[%s2999_s0 + $0x128] ss:$28 sps:$4 sm:$0xff]   ;;  %v2300_v14 = vld [vmem:[%s2999_s0 + $0x1a0] ss:$28 sps:$4 sm:$0xff]  }
  0xb2   :  { %2062 = vmatprep.subr.bf16.mxu1 %v2422_v16  ;;  %v2303_v16 = vld [vmem:[%s2999_s0 + $0x198] ss:$28 sps:$4 sm:$0xff]  }
  0xb3   :  { %1221 = vmatmul.mubr.bf16.vlgmr.msra.gmra.mrb[36].mxu0 %v2278_v2 }
  0xb4   :  { %2083 = vmatpush3.bf16.msra.mxu0 %v2344_v3  ;;  %1228 = vmatprep.mubr.bf16.mxu0 %v2281_v4  ;;  %v2289_v3 = vld [vmem:[%s2999_s0 + $0x15c] ss:$28 sps:$4 sm:$0xff]  }
  0xb5   :  { %2063 = vmatpush3.bf16.msra.mxu1 %v2434_v18  ;;  %2084 = vmatprep.subr.bf16.mxu0 %v2356_v5  ;;  %v2284_v5 = vld [vmem:[%s2999_s0 + $0x150] ss:$28 sps:$4 sm:$0xff]  }
  0xb6   :  { %2064 = vmatprep.subr.bf16.mxu1 %v2446_v20 }
  0xb8   :  { %2085 = vmatpush3.bf16.msra.mxu0 %v2368_v7  ;;  %v2292_v7 = vld [vmem:[%s2999_s0 + $0x188] ss:$28 sps:$4 sm:$0xff]  }
  0xb9   :  { %2065 = vmatpush3.bf16.msra.mxu1 %v2458_v22  ;;  %2086 = vmatprep.subr.bf16.mxu0 %v2380_v9  ;;  %v2287_v9 = vld [vmem:[%s2999_s0 + $0x158] ss:$28 sps:$4 sm:$0xff]  }
  0xba   :  { %2066 = vmatprep.subr.bf16.mxu1 %v2470_v24 }
  0xbb   :  { %1229 = vmatmul.mubr.bf16.gmra.mrb[40].mxu0 %v2283_v1 }
  0xbc   :  { %2087 = vmatpush3.bf16.msra.mxu0 %v2392_v11  ;;  %1464 = vmatprep.mubr.bf16.mxu0 %v2289_v3  ;;  %v2295_v11 = vld [vmem:[%s2999_s0 + $0x190] ss:$28 sps:$4 sm:$0xff]  }
  0xbd   :  { %2067 = vmatpush3.bf16.msra.mxu1 %v2482_v26  ;;  %2088 = vmatprep.subr.bf16.mxu0 %v2404_v13  ;;  %v2296_v13 = vld [vmem:[%s2999_s0 + $0x160] ss:$28 sps:$4 sm:$0xff]  }
  0xbe   :  { %2068 = vmatprep.subr.bf16.mxu1 %v2494_v28 }
  0xc0   :  { %2089 = vmatpush3.bf16.msra.mxu0 %v2416_v15  ;;  %v2301_v15 = vld [vmem:[%s2999_s0 + $0x19c] ss:$28 sps:$4 sm:$0xff]  }
  0xc1   :  { %2069 = vmatpush3.bf16.msra.mxu1 %v2506_v30  ;;  %2090 = vmatprep.subr.bf16.mxu0 %v2428_v17 }
  0xc2   :  { %2110 = vmatprep.subr.bf16.mxu1 %v2531_v36 }
  0xc4   :  { %1416 = vmatmul.mubr.bf16.vlgmr.msra.gmra.mrb[40].mxu1 %v2284_v5  ;;  %2091 = vmatpush3.bf16.msra.mxu0 %v2440_v19 }
  0xc5   :  { %2111 = vmatpush3.bf16.msra.mxu1 %v2542_v38  ;;  %1423 = vmatprep.mubr.bf16.mxu1 %v2290_v6 }
  0xc6   :  { %2112 = vmatprep.subr.bf16.mxu1 %v2548_v39  ;;  %2092 = vmatprep.subr.bf16.mxu0 %v2452_v21 }
  0xc8   :  { %2093 = vmatpush3.bf16.msra.mxu0 %v2464_v23 }
  0xc9   :  { %2113 = vmatpush3.bf16.msra.mxu1 %v2555_v40  ;;  %2094 = vmatprep.subr.bf16.mxu0 %v2476_v25 }
  0xca   :  { %2114 = vmatprep.subr.bf16.mxu1 %v2574_v45 }
  0xcc   :  { %1424 = vmatmul.mubr.bf16.gmra.mrb[44].mxu1 %v2292_v7  ;;  %2095 = vmatpush3.bf16.msra.mxu0 %v2488_v27 }
  0xcd   :  { %2115 = vmatpush3.bf16.msra.mxu1 %v2585_v47  ;;  %1513 = vmatprep.mubr.bf16.mxu1 %v2298_v8 }
  0xce   :  { %2116 = vmatprep.subr.bf16.mxu1 %v2591_v48  ;;  %2096 = vmatprep.subr.bf16.mxu0 %v2500_v29 }
  0xd0   :  { %2097 = vmatpush3.bf16.msra.mxu0 %v2512_v31 }
  0xd1   :  { %2117 = vmatpush3.bf16.msra.mxu1 %v2598_v49  ;;  %2166 = vmatprep.subr.bf16.mxu0 %v2536_v37 }
  0xd2   :  { %2118 = vmatprep.subr.bf16.mxu1 %v2608_v51 }
  0xd3   :  { %1465 = vmatmul.mubr.bf16.vlgmr.msra.gmra.mrb[44].mxu0 %v2287_v9 }
  0xd4   :  { %1472 = vmatprep.mubr.bf16.mxu0 %v2293_v10  ;;  %2167 = vmatpush3.bf16.msra.mxu0 %v2536_v37 }
  0xd5   :  { %2119 = vmatpush3.bf16.msra.mxu1 %v2618_v53  ;;  %2168 = vmatprep.subr.bf16.mxu0 %v2579_v46 }
  0xd6   :  { %2120 = vmatprep.subr.bf16.mxu1 %v2624_v54 }
  0xd8   :  { %2169 = vmatpush3.bf16.msra.mxu0 %v2579_v46 }
  0xd9   :  { %2121 = vmatpush3.bf16.msra.mxu1 %v2633_v55 }
  0xda   :  { %2122 = vmatprep.subr.bf16.mxu1 %v2639_v56 }
  0xdb   :  { %1473 = vmatmul.mubr.bf16.gmra.mrb[48].mxu0 %v2295_v11 }
  0xdc   :  { %2170 = vmatprep.mubr.msk.bf16.mxu0 %vm501_vm0, %v2299_v12 }
  0xdd   :  { %2123 = vmatpush3.bf16.msra.mxu1 %v2650_v58 }
  0xde   :  { %2124 = vmatprep.subr.bf16.mxu1 %v2656_v59 }
  0xe1   :  { %2125 = vmatpush3.bf16.msra.mxu1 %v2667_v61 }
  0xe3   :  { %2171 = vmatmul.mubr.msk.bf16.vlgmr.msra.gmra.mrb[52].mxu0 %vm501_vm0, %v2300_v14 }
  0xe4   :  { %1514 = vmatmul.mubr.bf16.vlgmr.msra.gmra.mrb[48].mxu1 %v2296_v13 }
  0xe5   :  { %1521 = vmatprep.mubr.bf16.mxu1 %v2301_v15 }
  0xec   :  { %1522 = vmatmul.mubr.bf16.gmra.mrb[52].mxu1 %v2303_v16 }
  0xf6   :  { %v1806_v17 = vpop.f32.mrb[0].mxu0 }
  0xf7   :  { %v1834_v18 = vpop.f32.mrb[0].mxu1  ;;  %v1807_v19 = vpop.f32.mrb[1].mxu0 }
  0xf8   :  { %v1808_v20 = vadd.f32 %v1807_v19, %v1806_v17  ;;  %v1835_v21 = vpop.f32.mrb[1].mxu1  ;;  %v1809_v22 = vpop.f32.mrb[2].mxu0 }
  0xf9   :  { %v1836_v23 = vadd.f32 %v1835_v21, %v1834_v18  ;;  %v1837_v24 = vpop.f32.mrb[2].mxu1  ;;  %v1810_v25 = vpop.f32.mrb[3].mxu0 }
  0xfa   :  { %v1811_v26 = vadd.f32 %v1810_v25, %v1809_v22  ;;  %v1838_v27 = vpop.f32.mrb[3].mxu1 }
  0xfb   :  { %v592_v28 = vadd.f32 %v1836_v23, %v1808_v20  ;;  %v1839_v29 = vadd.f32 %v1838_v27, %v1837_v24 }
  0xfd   :  { %v595_v30 = vadd.f32 %v1839_v29, %v1811_v26 }
  0xfe   :  { %v1812_v31 = vpop.f32.mrb[4].mxu0 }
  0xff   :  { %v1840_v36 = vpop.f32.mrb[4].mxu1  ;;  %v1813_v37 = vpop.f32.mrb[5].mxu0 }
 0x100   :  { %v1814_v38 = vadd.f32 %v1813_v37, %v1812_v31  ;;  %v1841_v39 = vpop.f32.mrb[5].mxu1  ;;  %v1815_v40 = vpop.f32.mrb[6].mxu0 }
 0x101   :  { %v1842_v45 = vadd.f32 %v1841_v39, %v1840_v36  ;;  %v1843_v46 = vpop.f32.mrb[6].mxu1  ;;  %v1816_v47 = vpop.f32.mrb[7].mxu0 }
 0x102   :  { %v1817_v48 = vadd.f32 %v1816_v47, %v1815_v40  ;;  %v1844_v49 = vpop.f32.mrb[7].mxu1 }
 0x103   :  { %v600_v51 = vadd.f32 %v1842_v45, %v1814_v38  ;;  %v1845_v53 = vadd.f32 %v1844_v49, %v1843_v46 }
 0x105   :  { %v603_v54 = vadd.f32 %v1845_v53, %v1817_v48 }
 0x107   :  { %v2148_v55 = vpop.f32.mrb[8].mxu1 }
 0x108   :  { %v689_v56 = vpop.f32.mrb[9].mxu1 }
 0x109   :  { %v2149_v58 = vpop.f32.mrb[10].mxu1 }
 0x10a   :  { %v692_v59 = vpop.f32.mrb[11].mxu1 }
 0x116   :  { %v1862_v61 = vpop.f32.mrb[8].mxu0 }
 0x117   :  { %v1863_v60 = vpop.f32.mrb[9].mxu0 }
 0x118   :  { %v1864_v62 = vadd.f32 %v1863_v60, %v1862_v61  ;;  %v1865_v63 = vpop.f32.mrb[10].mxu0 }
 0x119   :  { %v1866_v32 = vpop.f32.mrb[11].mxu0 }
 0x11a   :  { %v641_v33 = vadd.f32 %v1864_v62, %v592_v28  ;;  %v1867_v34 = vadd.f32 %v1866_v32, %v1865_v63 }
 0x11c   :  { %v644_v35 = vadd.f32 %v1867_v34, %v595_v30  ;;  %v2958_v41 = vadd.f32 %v689_v56, %v641_v33 }
 0x11e   :  { %v1868_v42 = vpop.f32.mrb[12].mxu0  ;;  %v2960_v43 = vadd.f32 %v692_v59, %v644_v35 }
 0x11f   :  { %v1869_v44 = vpop.f32.mrb[13].mxu0 }
 0x120   :  { %v1870_v50 = vadd.f32 %v1869_v44, %v1868_v42  ;;  %v1871_v52 = vpop.f32.mrb[14].mxu0 }
 0x121   :  { %v1872_v57 = vpop.f32.mrb[15].mxu0 }
 0x122   :  { %v649_v0 = vadd.f32 %v1870_v50, %v600_v51  ;;  %v1873_v2 = vadd.f32 %v1872_v57, %v1871_v52 }
 0x124   :  { %v2962_v4 = vadd.f32 %v2148_v55, %v649_v0  ;;  %v652_v1 = vadd.f32 %v1873_v2, %v603_v54 }
 0x126   :  { %v2964_v5 = vadd.f32 %v2149_v58, %v652_v1 }
 0x127   :  { %v1894_v3 = vpop.f32.mrb[12].mxu1 }
 0x128   :  { %v1895_v6 = vpop.f32.mrb[13].mxu1 }
 0x129   :  { %v1896_v7 = vadd.f32 %v1895_v6, %v1894_v3  ;;  %v1897_v8 = vpop.f32.mrb[14].mxu1 }
 0x12a   :  { %v1898_v9 = vpop.f32.mrb[15].mxu1 }
 0x12b   :  { %v1899_v10 = vadd.f32 %v1898_v9, %v1897_v8 }
 0x12f   :  { %v1900_v11 = vpop.f32.mrb[16].mxu1 }
 0x130   :  { %v1901_v12 = vpop.f32.mrb[17].mxu1 }
 0x131   :  { %v1902_v13 = vadd.f32 %v1901_v12, %v1900_v11  ;;  %v1903_v14 = vpop.f32.mrb[18].mxu1 }
 0x132   :  { %v1904_v15 = vpop.f32.mrb[19].mxu1 }
 0x133   :  { %v1905_v16 = vadd.f32 %v1904_v15, %v1903_v14 }
 0x136   :  { %v1922_v17 = vpop.f32.mrb[16].mxu0 }
 0x137   :  { %v1923_v18 = vpop.f32.mrb[17].mxu0 }
 0x138   :  { %v1924_v19 = vadd.f32 %v1923_v18, %v1922_v17  ;;  %v1925_v20 = vpop.f32.mrb[18].mxu0 }
 0x139   :  { %v1926_v21 = vpop.f32.mrb[19].mxu0 }
 0x13a   :  { %v881_v22 = vadd.f32 %v1924_v19, %v1896_v7  ;;  %v1927_v23 = vadd.f32 %v1926_v21, %v1925_v20 }
 0x13c   :  { %v884_v24 = vadd.f32 %v1927_v23, %v1899_v10 }
 0x13e   :  { %v1928_v25 = vpop.f32.mrb[20].mxu0 }
 0x13f   :  { %v1929_v26 = vpop.f32.mrb[21].mxu0 }
 0x140   :  { %v1930_v27 = vadd.f32 %v1929_v26, %v1928_v25  ;;  %v1931_v28 = vpop.f32.mrb[22].mxu0 }
 0x141   :  { %v1932_v29 = vpop.f32.mrb[23].mxu0 }
 0x142   :  { %v889_v30 = vadd.f32 %v1930_v27, %v1902_v13  ;;  %v1933_v31 = vadd.f32 %v1932_v29, %v1931_v28 }
 0x144   :  { %v892_v36 = vadd.f32 %v1933_v31, %v1905_v16 }
 0x146   :  { %v2156_v39 = vpop.f32.mrb[24].mxu0 }
 0x147   :  { %v1950_v37 = vpop.f32.mrb[20].mxu1  ;;  %v978_v46 = vpop.f32.mrb[25].mxu0 }
 0x148   :  { %v1951_v38 = vpop.f32.mrb[21].mxu1  ;;  %v2157_v48 = vpop.f32.mrb[26].mxu0 }
 0x149   :  { %v1952_v40 = vadd.f32 %v1951_v38, %v1950_v37  ;;  %v1953_v45 = vpop.f32.mrb[22].mxu1  ;;  %v981_v53 = vpop.f32.mrb[27].mxu0 }
 0x14a   :  { %v1954_v47 = vpop.f32.mrb[23].mxu1 }
 0x14b   :  { %v1955_v49 = vadd.f32 %v1954_v47, %v1953_v45  ;;  %v930_v51 = vadd.f32 %v1952_v40, %v881_v22 }
 0x14d   :  { %v979_v54 = vadd.f32 %v978_v46, %v930_v51  ;;  %v933_v55 = vadd.f32 %v1955_v49, %v884_v24 }
 0x14f   :  { %v993_v56 = vmax.f32 %v2958_v41, %v979_v54  ;;  %v982_v58 = vadd.f32 %v981_v53, %v933_v55  ;;  %v1956_v59 = vpop.f32.mrb[24].mxu1 }
 0x150   :  { %v1957_v61 = vpop.f32.mrb[25].mxu1 }
 0x151   :  { %v994_v60 = vmax.f32 %v2960_v43, %v982_v58  ;;  %v1958_v62 = vadd.f32 %v1957_v61, %v1956_v59  ;;  %v1959_v63 = vpop.f32.mrb[26].mxu1 }
 0x152   :  { %v1960_v32 = vpop.f32.mrb[27].mxu1 }
 0x153   :  { %v938_v33 = vadd.f32 %v1958_v62, %v889_v30  ;;  %v1961_v34 = vadd.f32 %v1960_v32, %v1959_v63 }
 0x155   :  { %v987_v35 = vadd.f32 %v2156_v39, %v938_v33  ;;  %v941_v42 = vadd.f32 %v1961_v34, %v892_v36 }
 0x157   :  { %v995_v44 = vmax.f32 %v2962_v4, %v987_v35  ;;  %v990_v50 = vadd.f32 %v2157_v48, %v941_v42 }
 0x159   :  { %v996_v52 = vmax.f32 %v2964_v5, %v990_v50 }
 0x166   :  { %v1982_v0 = vpop.f32.mrb[28].mxu0 }
 0x167   :  { %v2010_v57 = vpop.f32.mrb[28].mxu1  ;;  %v1983_v2 = vpop.f32.mrb[29].mxu0 }
 0x168   :  { %v2011_v41 = vpop.f32.mrb[29].mxu1  ;;  %v1984_v6 = vadd.f32 %v1983_v2, %v1982_v0  ;;  %v1985_v43 = vpop.f32.mrb[30].mxu0 }
 0x169   :  { %v2012_v1 = vadd.f32 %v2011_v41, %v2010_v57  ;;  %v2013_v3 = vpop.f32.mrb[30].mxu1  ;;  %v1986_v8 = vpop.f32.mrb[31].mxu0 }
 0x16a   :  { %v2014_v7 = vpop.f32.mrb[31].mxu1  ;;  %v1987_v11 = vadd.f32 %v1986_v8, %v1985_v43 }
 0x16b   :  { %v2015_v9 = vadd.f32 %v2014_v7, %v2013_v3  ;;  %v1174_v10 = vadd.f32 %v2012_v1, %v1984_v6 }
 0x16d   :  { %v1177_v12 = vadd.f32 %v2015_v9, %v1987_v11 }
 0x16e   :  { %v1988_v14 = vpop.f32.mrb[32].mxu0 }
 0x16f   :  { %v2016_v13 = vpop.f32.mrb[32].mxu1  ;;  %v1989_v15 = vpop.f32.mrb[33].mxu0 }
 0x170   :  { %v2017_v4 = vpop.f32.mrb[33].mxu1  ;;  %v1990_v17 = vadd.f32 %v1989_v15, %v1988_v14  ;;  %v1991_v18 = vpop.f32.mrb[34].mxu0 }
 0x171   :  { %v2018_v16 = vadd.f32 %v2017_v4, %v2016_v13  ;;  %v2019_v5 = vpop.f32.mrb[34].mxu1  ;;  %v1992_v20 = vpop.f32.mrb[35].mxu0 }
 0x172   :  { %v2020_v19 = vpop.f32.mrb[35].mxu1  ;;  %v1993_v23 = vadd.f32 %v1992_v20, %v1991_v18 }
 0x173   :  { %v2021_v21 = vadd.f32 %v2020_v19, %v2019_v5  ;;  %v1182_v22 = vadd.f32 %v2018_v16, %v1990_v17 }
 0x175   :  { %v1185_v24 = vadd.f32 %v2021_v21, %v1993_v23 }
 0x177   :  { %v2164_v25 = vpop.f32.mrb[36].mxu1 }
 0x178   :  { %v1271_v26 = vpop.f32.mrb[37].mxu1 }
 0x179   :  { %v2165_v27 = vpop.f32.mrb[38].mxu1 }
 0x17a   :  { %v1274_v28 = vpop.f32.mrb[39].mxu1 }
 0x186   :  { %v2038_v29 = vpop.f32.mrb[36].mxu0 }
 0x187   :  { %v2039_v30 = vpop.f32.mrb[37].mxu0 }
 0x188   :  { %v2040_v31 = vadd.f32 %v2039_v30, %v2038_v29  ;;  %v2041_v36 = vpop.f32.mrb[38].mxu0  ;;  %v1781_v30 = vld [vmem:[%s3000_s2] ss:$0 sm:$0xff] }
 0x189   :  { %v2042_v37 = vpop.f32.mrb[39].mxu0 }
 0x18a   :  { %v1223_v38 = vadd.f32 %v2040_v31, %v1174_v10  ;;  %v2043_v39 = vadd.f32 %v2042_v37, %v2041_v36 }
 0x18c   :  { %v1272_v40 = vadd.f32 %v1271_v26, %v1223_v38  ;;  %v1226_v45 = vadd.f32 %v2043_v39, %v1177_v12 }
 0x18e   :  { %v1275_v46 = vadd.f32 %v1274_v28, %v1226_v45  ;;  %v2044_v47 = vpop.f32.mrb[40].mxu0  ;;  %v1286_v48 = vmax.f32 %v993_v56, %v1272_v40 }
 0x18f   :  { %v2045_v49 = vpop.f32.mrb[41].mxu0 }
 0x190   :  { %v2046_v51 = vadd.f32 %v2045_v49, %v2044_v47  ;;  %v2047_v53 = vpop.f32.mrb[42].mxu0  ;;  %v2970_v54 = vmax.f32 %v994_v60, %v1275_v46 }
 0x191   :  { %v2048_v55 = vpop.f32.mrb[43].mxu0 }
 0x192   :  { %v1231_v58 = vadd.f32 %v2046_v51, %v1182_v22  ;;  %v2049_v59 = vadd.f32 %v2048_v55, %v2047_v53 }
 0x194   :  { %v1280_v61 = vadd.f32 %v2164_v25, %v1231_v58  ;;  %v1234_v62 = vadd.f32 %v2049_v59, %v1185_v24 }
 0x196   :  { %v2972_v32 = vmax.f32 %v995_v44, %v1280_v61  ;;  %v1283_v33 = vadd.f32 %v2165_v27, %v1234_v62 }
 0x197   :  { %v2070_v63 = vpop.f32.mrb[40].mxu1 }
 0x198   :  { %v2071_v34 = vpop.f32.mrb[41].mxu1  ;;  %v2974_v50 = vmax.f32 %v996_v52, %v1283_v33 }
 0x199   :  { %v2072_v35 = vadd.f32 %v2071_v34, %v2070_v63  ;;  %v2073_v42 = vpop.f32.mrb[42].mxu1 }
 0x19a   :  { %v2074_v56 = vpop.f32.mrb[43].mxu1 }
 0x19b   :  { %v2075_v57 = vadd.f32 %v2074_v56, %v2073_v42 }
 0x19f   :  { %v2076_v0 = vpop.f32.mrb[44].mxu1 }
 0x1a0   :  { %v2077_v41 = vpop.f32.mrb[45].mxu1 }
 0x1a1   :  { %v2078_v60 = vadd.f32 %v2077_v41, %v2076_v0  ;;  %v2079_v2 = vpop.f32.mrb[46].mxu1 }
 0x1a2   :  { %v2080_v1 = vpop.f32.mrb[47].mxu1 }
 0x1a3   :  { %v2081_v3 = vadd.f32 %v2080_v1, %v2079_v2 }
 0x1a6   :  { %v2098_v6 = vpop.f32.mrb[44].mxu0 }
 0x1a7   :  { %v2099_v43 = vpop.f32.mrb[45].mxu0 }
 0x1a8   :  { %v2100_v7 = vadd.f32 %v2099_v43, %v2098_v6  ;;  %v2101_v8 = vpop.f32.mrb[46].mxu0 }
 0x1a9   :  { %v2102_v44 = vpop.f32.mrb[47].mxu0 }
 0x1aa   :  { %v1467_v9 = vadd.f32 %v2100_v7, %v2072_v35  ;;  %v2103_v10 = vadd.f32 %v2102_v44, %v2101_v8 }
 0x1ac   :  { %v1470_v11 = vadd.f32 %v2103_v10, %v2075_v57 }
 0x1ae   :  { %v2104_v12 = vpop.f32.mrb[48].mxu0 }
 0x1af   :  { %v2105_v13 = vpop.f32.mrb[49].mxu0 }
 0x1b0   :  { %v2106_v52 = vadd.f32 %v2105_v13, %v2104_v12  ;;  %v2107_v14 = vpop.f32.mrb[50].mxu0 }
 0x1b1   :  { %v2108_v4 = vpop.f32.mrb[51].mxu0 }
 0x1b2   :  { %v1475_v15 = vadd.f32 %v2106_v52, %v2078_v60  ;;  %v2109_v16 = vadd.f32 %v2108_v4, %v2107_v14 }
 0x1b4   :  { %v1478_v5 = vadd.f32 %v2109_v16, %v2081_v3 }
 0x1b6   :  { %v2172_v19 = vpop.f32.mrb[52].mxu0 }
 0x1b7   :  { %v2126_v17 = vpop.f32.mrb[48].mxu1  ;;  %v1564_v22 = vpop.f32.mrb[53].mxu0 }
 0x1b8   :  { %v2127_v18 = vpop.f32.mrb[49].mxu1  ;;  %v2173_v24 = vpop.f32.mrb[54].mxu0 }
 0x1b9   :  { %v2128_v20 = vadd.f32 %v2127_v18, %v2126_v17  ;;  %v2129_v21 = vpop.f32.mrb[50].mxu1  ;;  %v1567_v27 = vpop.f32.mrb[55].mxu0 }
 0x1ba   :  { %v2130_v23 = vpop.f32.mrb[51].mxu1 }
 0x1bb   :  { %v2131_v25 = vadd.f32 %v2130_v23, %v2129_v21  ;;  %v1516_v26 = vadd.f32 %v2128_v20, %v1467_v9 }
 0x1bd   :  { %v1565_v28 = vadd.f32 %v1564_v22, %v1516_v26  ;;  %v1519_v29 = vadd.f32 %v2131_v25, %v1470_v11 }
 0x1bf   :  { %v1579_v31 = vmax.f32 %v1286_v48, %v1565_v28  ;;  %v1568_v36 = vadd.f32 %v1567_v27, %v1519_v29  ;;  %v2132_v37 = vpop.f32.mrb[52].mxu1 }
 0x1c0   :  { %v2133_v38 = vpop.f32.mrb[53].mxu1 }
 0x1c1   :  { %v1590_v39 = vadd.f32 %v1781_v30, %v1579_v31  ;;  %v1580_v40 = vmax.f32 %v2970_v54, %v1568_v36  ;;  %v2134_v45 = vadd.f32 %v2133_v38, %v2132_v37  ;;  %v2135_v46 = vpop.f32.mrb[54].mxu1 }
 0x1c2   :  { %v2136_v47 = vpop.f32.mrb[55].mxu1 }
 0x1c3   :  { %v1786_v49 = vpack.c.bf16 %v1590_v39, %v1590_v39  ;;  %v1591_v51 = vadd.f32 %v1781_v30, %v1580_v40  ;;  %v1524_v53 = vadd.f32 %v2134_v45, %v1475_v15  ;;  %v2137_v55 = vadd.f32 %v2136_v47, %v2135_v46 }
 0x1c5   :  { %1611 = vst.msk [vmem:[%s3001_s3] sm:$0xf] %vm1610_vm1, %v1786_v49  ;;  %v1787_v48 = vpack.c.bf16 %v1591_v51, %v1591_v51  ;;  %v1573_v58 = vadd.f32 %v2172_v19, %v1524_v53  ;;  %v1527_v59 = vadd.f32 %v2137_v55, %v1478_v5 }
 0x1c7   :  { %1612 = vst.msk [vmem:[%s3001_s3 + $0x4] sm:$0xf] %vm1610_vm1, %v1787_v48  ;;  %v1581_v54 = vmax.f32 %v2972_v32, %v1573_v58  ;;  %v1576_v61 = vadd.f32 %v2173_v24, %v1527_v59 }
 0x1c9   :  { %v1592_v62 = vadd.f32 %v1781_v30, %v1581_v54  ;;  %v1582_v63 = vmax.f32 %v2974_v50, %v1576_v61 }
 0x1cb   :  { %v1788_v33 = vpack.c.bf16 %v1592_v62, %v1592_v62  ;;  %v1593_v34 = vadd.f32 %v1781_v30, %v1582_v63 }
 0x1cd   :  { %1613 = vst.msk [vmem:[%s3001_s3 + $0x8] sm:$0xf] %vm1610_vm1, %v1788_v33  ;;  %v1789_v35 = vpack.c.bf16 %v1593_v34, %v1593_v34 }
 0x1cf   :  { %1614 = vst.msk [vmem:[%s3001_s3 + $0xc] sm:$0xf] %vm1610_vm1, %v1789_v35 }

// kernel: mnist_not3or4_forward.5
= control target key start
LH: loop header
LB: loop body
LE: loop exit
PB: predicated region body
PF: predicated region fallthrough
CT: control target
= control target key end

     0   :  { %vm4518_vm0 = vcmask 80896   ;;  %vm4545_vm3 = vcmask 7168   ;;  %s7245_s1 = inlined_call_operand.vmem [shape: bf16[1024,1024], index: 1, kind: input, shape index: {}]   ;;  %s7246_s0 = inlined_call_operand.vmem [shape: bf16[8,1024], index: 0, kind: input, shape index: {}]   ;;  %s7247_s3 = inlined_call_operand.vmem [shape: bf16[1024,10], index: 3, kind: input, shape index: {}]   ;;  %s7248_s2 = inlined_call_operand.vmem [shape: f32[1,1024], index: 2, kind: input, shape index: {}]   ;;  %s7249_s4 = inlined_call_operand.vmem [shape: f32[1,10], index: 4, kind: input, shape index: {}]   ;;  %s7250_s5 = inlined_call_operand.vmem [shape: f32[8,1], index: 5, kind: output, shape index: {}]  }
   0x1   :  { %v25_v0 = vld [vmem:[%s7245_s1] sm:$0xff]  ;;  %v26_v2 = vld [vmem:[%s7245_s1 + $0x8] sm:$0xff] }
   0x2   :  { %v29_v1 = vld [vmem:[%s7245_s1 + $0x20] sm:$0xff]  ;;  %v30_v4 = vld [vmem:[%s7245_s1 + $0x28] sm:$0xff] }
   0x3   :  { %v4560_v3 = vcombine.high %v25_v0, %v29_v1  ;;  %v4559_v5 = vcombine.low %v25_v0, %v29_v1  ;;  %v33_v6 = vld [vmem:[%s7245_s1 + $0x40] sm:$0xff]  ;;  %v4562_v8 = vcombine.high %v26_v2, %v30_v4  ;;  %v4561_v9 = vcombine.low %v26_v2, %v30_v4  ;;  %v34_v11 = vld [vmem:[%s7245_s1 + $0x48] sm:$0xff] }
   0x4   :  { %v37_v7 = vld [vmem:[%s7245_s1 + $0x60] sm:$0xff]  ;;  %v38_v12 = vld [vmem:[%s7245_s1 + $0x68] sm:$0xff] }
   0x5   :  { %v4568_v10 = vcombine.high %v33_v6, %v37_v7  ;;  %v41_v13 = vld [vmem:[%s7245_s1 + $0x80] sm:$0xff]  ;;  %3167 = vmatprep.subr.bf16.mxu0 %v4560_v3  ;;  %v4570_v14 = vcombine.high %v34_v11, %v38_v12  ;;  %v42_v16 = vld [vmem:[%s7245_s1 + $0x88] sm:$0xff]  ;;  %3331 = vmatprep.subr.bf16.mxu1 %v4562_v8  ;;  %v4567_v18 = vcombine.low %v33_v6, %v37_v7 }
   0x6   :  { %v45_v15 = vld [vmem:[%s7245_s1 + $0xa0] sm:$0xff]  ;;  %v46_v17 = vld [vmem:[%s7245_s1 + $0xa8] sm:$0xff]  ;;  %3168 = vmatpush1.bf16.msra.mxu0 %v4559_v5  ;;  %3332 = vmatpush1.bf16.msra.mxu1 %v4561_v9  ;;  %v4569_v19 = vcombine.low %v34_v11, %v38_v12 }
   0x7   :  { %3169 = vmatprep.subr.bf16.mxu0 %v4568_v10  ;;  %v4576_v20 = vcombine.high %v41_v13, %v45_v15  ;;  %3333 = vmatprep.subr.bf16.mxu1 %v4570_v14  ;;  %v4578_v21 = vcombine.high %v42_v16, %v46_v17  ;;  %v49_v22 = vld [vmem:[%s7245_s1 + $0xc0] sm:$0xff]  ;;  %v50_v24 = vld [vmem:[%s7245_s1 + $0xc8] sm:$0xff]  ;;  %v4575_v26 = vcombine.low %v41_v13, %v45_v15 }
   0x8   :  { %v53_v23 = vld [vmem:[%s7245_s1 + $0xe0] sm:$0xff]  ;;  %v54_v25 = vld [vmem:[%s7245_s1 + $0xe8] sm:$0xff]  ;;  %v4577_v27 = vcombine.low %v42_v16, %v46_v17 }
   0x9   :  { %v4584_v28 = vcombine.high %v49_v22, %v53_v23  ;;  %v4586_v29 = vcombine.high %v50_v24, %v54_v25  ;;  %v57_v30 = vld [vmem:[%s7245_s1 + $0x100] sm:$0xff]  ;;  %v58_v32 = vld [vmem:[%s7245_s1 + $0x108] sm:$0xff]  ;;  %v4583_v34 = vcombine.low %v49_v22, %v53_v23  ;;  %v4585_v35 = vcombine.low %v50_v24, %v54_v25 }
   0xa   :  { %3170 = vmatpush1.bf16.msra.mxu0 %v4567_v18  ;;  %3334 = vmatpush1.bf16.msra.mxu1 %v4569_v19  ;;  %v61_v31 = vld [vmem:[%s7245_s1 + $0x120] sm:$0xff]  ;;  %v62_v33 = vld [vmem:[%s7245_s1 + $0x128] sm:$0xff] }
   0xb   :  { %3171 = vmatprep.subr.bf16.mxu0 %v4576_v20  ;;  %3335 = vmatprep.subr.bf16.mxu1 %v4578_v21  ;;  %v4592_v36 = vcombine.high %v57_v30, %v61_v31  ;;  %v4594_v37 = vcombine.high %v58_v32, %v62_v33  ;;  %v65_v38 = vld [vmem:[%s7245_s1 + $0x140] sm:$0xff]  ;;  %v66_v40 = vld [vmem:[%s7245_s1 + $0x148] sm:$0xff]  ;;  %v4591_v42 = vcombine.low %v57_v30, %v61_v31 }
   0xc   :  { %v69_v39 = vld [vmem:[%s7245_s1 + $0x160] sm:$0xff]  ;;  %v70_v41 = vld [vmem:[%s7245_s1 + $0x168] sm:$0xff]  ;;  %v4593_v43 = vcombine.low %v58_v32, %v62_v33 }
   0xd   :  { %v4600_v44 = vcombine.high %v65_v38, %v69_v39  ;;  %v4602_v45 = vcombine.high %v66_v40, %v70_v41  ;;  %v73_v46 = vld [vmem:[%s7245_s1 + $0x180] sm:$0xff]  ;;  %v74_v48 = vld [vmem:[%s7245_s1 + $0x188] sm:$0xff]  ;;  %v4599_v50 = vcombine.low %v65_v38, %v69_v39  ;;  %v4601_v51 = vcombine.low %v66_v40, %v70_v41 }
   0xe   :  { %3172 = vmatpush1.bf16.msra.mxu0 %v4575_v26  ;;  %3336 = vmatpush1.bf16.msra.mxu1 %v4577_v27  ;;  %v77_v47 = vld [vmem:[%s7245_s1 + $0x1a0] sm:$0xff]  ;;  %v78_v49 = vld [vmem:[%s7245_s1 + $0x1a8] sm:$0xff] }
   0xf   :  { %3173 = vmatprep.subr.bf16.mxu0 %v4584_v28  ;;  %3337 = vmatprep.subr.bf16.mxu1 %v4586_v29  ;;  %v4608_v52 = vcombine.high %v73_v46, %v77_v47  ;;  %v5473_v53 = vld [vmem:[%s7246_s0] sm:$0xff]  ;;  %v4610_v54 = vcombine.high %v74_v48, %v78_v49  ;;  %v82_v58 = vld [vmem:[%s7245_s1 + $0x1c8] sm:$0xff]  ;;  %v4607_v60 = vcombine.low %v73_v46, %v77_v47 }
  0x10   :  { %v81_v55 = vld [vmem:[%s7245_s1 + $0x1c0] sm:$0xff]  ;;  %v5483_v57 = vcombine.high %v5473_v53, %v5473_v53  ;;  %v86_v59 = vld [vmem:[%s7245_s1 + $0x1e8] sm:$0xff]  ;;  %v4609_v61 = vcombine.low %v74_v48, %v78_v49 }
  0x11   :  { %v85_v56 = vld [vmem:[%s7245_s1 + $0x1e0] sm:$0xff]  ;;  %v4618_v63 = vcombine.high %v82_v58, %v86_v59  ;;  %v90_v2 = vld [vmem:[%s7245_s1 + $0x208] sm:$0xff]  ;;  %v4617_v5 = vcombine.low %v82_v58, %v86_v59 }
  0x12   :  { %3174 = vmatpush1.bf16.msra.mxu0 %v4583_v34  ;;  %3338 = vmatpush1.bf16.msra.mxu1 %v4585_v35  ;;  %v4616_v62 = vcombine.high %v81_v55, %v85_v56  ;;  %v89_v0 = vld [vmem:[%s7245_s1 + $0x200] sm:$0xff]  ;;  %v94_v3 = vld [vmem:[%s7245_s1 + $0x228] sm:$0xff]  ;;  %v4615_v4 = vcombine.low %v81_v55, %v85_v56 }
  0x13   :  { %3175 = vmatprep.subr.bf16.mxu0 %v4592_v36  ;;  %3339 = vmatprep.subr.bf16.mxu1 %v4594_v37  ;;  %v93_v1 = vld [vmem:[%s7245_s1 + $0x220] sm:$0xff]  ;;  %v4626_v7 = vcombine.high %v90_v2, %v94_v3  ;;  %v98_v10 = vld [vmem:[%s7245_s1 + $0x248] sm:$0xff]  ;;  %v4625_v13 = vcombine.low %v90_v2, %v94_v3 }
  0x14   :  { %3199 = vmatprep.mubr.bf16.mxu0 %v5483_v57  ;;  %3363 = vmatprep.mubr.bf16.mxu1 %v5483_v57  ;;  %v4624_v6 = vcombine.high %v89_v0, %v93_v1  ;;  %v97_v8 = vld [vmem:[%s7245_s1 + $0x240] sm:$0xff]  ;;  %v102_v11 = vld [vmem:[%s7245_s1 + $0x268] sm:$0xff]  ;;  %v4623_v12 = vcombine.low %v89_v0, %v93_v1 }
  0x15   :  { %v101_v9 = vld [vmem:[%s7245_s1 + $0x260] sm:$0xff]  ;;  %v4634_v15 = vcombine.high %v98_v10, %v102_v11  ;;  %v106_v18 = vld [vmem:[%s7245_s1 + $0x288] sm:$0xff]  ;;  %v4633_v21 = vcombine.low %v98_v10, %v102_v11 }
  0x16   :  { %3176 = vmatpush1.bf16.msra.mxu0 %v4591_v42  ;;  %3340 = vmatpush1.bf16.msra.mxu1 %v4593_v43  ;;  %v4632_v14 = vcombine.high %v97_v8, %v101_v9  ;;  %v105_v16 = vld [vmem:[%s7245_s1 + $0x280] sm:$0xff]  ;;  %v110_v19 = vld [vmem:[%s7245_s1 + $0x2a8] sm:$0xff]  ;;  %v4631_v20 = vcombine.low %v97_v8, %v101_v9 }
  0x17   :  { %3177 = vmatprep.subr.bf16.mxu0 %v4600_v44  ;;  %3341 = vmatprep.subr.bf16.mxu1 %v4602_v45  ;;  %v109_v17 = vld [vmem:[%s7245_s1 + $0x2a0] sm:$0xff]  ;;  %v4642_v23 = vcombine.high %v106_v18, %v110_v19  ;;  %v114_v26 = vld [vmem:[%s7245_s1 + $0x2c8] sm:$0xff]  ;;  %v4641_v29 = vcombine.low %v106_v18, %v110_v19 }
  0x18   :  { %v4640_v22 = vcombine.high %v105_v16, %v109_v17  ;;  %v113_v24 = vld [vmem:[%s7245_s1 + $0x2c0] sm:$0xff]  ;;  %v118_v27 = vld [vmem:[%s7245_s1 + $0x2e8] sm:$0xff]  ;;  %v4639_v28 = vcombine.low %v105_v16, %v109_v17 }
  0x19   :  { %v117_v25 = vld [vmem:[%s7245_s1 + $0x2e0] sm:$0xff]  ;;  %v4650_v31 = vcombine.high %v114_v26, %v118_v27  ;;  %v122_v34 = vld [vmem:[%s7245_s1 + $0x308] sm:$0xff]  ;;  %v4649_v37 = vcombine.low %v114_v26, %v118_v27 }
  0x1a   :  { %3178 = vmatpush1.bf16.msra.mxu0 %v4599_v50  ;;  %3342 = vmatpush1.bf16.msra.mxu1 %v4601_v51  ;;  %v4648_v30 = vcombine.high %v113_v24, %v117_v25  ;;  %v121_v32 = vld [vmem:[%s7245_s1 + $0x300] sm:$0xff]  ;;  %v126_v35 = vld [vmem:[%s7245_s1 + $0x328] sm:$0xff]  ;;  %v4647_v36 = vcombine.low %v113_v24, %v117_v25 }
  0x1b   :  { %3179 = vmatprep.subr.bf16.mxu0 %v4608_v52  ;;  %3343 = vmatprep.subr.bf16.mxu1 %v4610_v54  ;;  %v125_v33 = vld [vmem:[%s7245_s1 + $0x320] sm:$0xff]  ;;  %v4658_v39 = vcombine.high %v122_v34, %v126_v35  ;;  %v130_v42 = vld [vmem:[%s7245_s1 + $0x348] sm:$0xff]  ;;  %v4657_v45 = vcombine.low %v122_v34, %v126_v35 }
  0x1c   :  { %v4656_v38 = vcombine.high %v121_v32, %v125_v33  ;;  %v129_v40 = vld [vmem:[%s7245_s1 + $0x340] sm:$0xff]  ;;  %v134_v43 = vld [vmem:[%s7245_s1 + $0x368] sm:$0xff]  ;;  %v4655_v44 = vcombine.low %v121_v32, %v125_v33 }
  0x1d   :  { %v133_v41 = vld [vmem:[%s7245_s1 + $0x360] sm:$0xff]  ;;  %v4666_v47 = vcombine.high %v130_v42, %v134_v43  ;;  %v138_v50 = vld [vmem:[%s7245_s1 + $0x388] sm:$0xff]  ;;  %v4665_v54 = vcombine.low %v130_v42, %v134_v43 }
  0x1e   :  { %3180 = vmatpush1.bf16.msra.mxu0 %v4607_v60  ;;  %3344 = vmatpush1.bf16.msra.mxu1 %v4609_v61  ;;  %v4664_v46 = vcombine.high %v129_v40, %v133_v41  ;;  %v137_v48 = vld [vmem:[%s7245_s1 + $0x380] sm:$0xff]  ;;  %v142_v51 = vld [vmem:[%s7245_s1 + $0x3a8] sm:$0xff]  ;;  %v4663_v52 = vcombine.low %v129_v40, %v133_v41 }
  0x1f   :  { %3181 = vmatprep.subr.bf16.mxu0 %v4616_v62  ;;  %3345 = vmatprep.subr.bf16.mxu1 %v4618_v63  ;;  %v141_v49 = vld [vmem:[%s7245_s1 + $0x3a0] sm:$0xff]  ;;  %v4674_v56 = vcombine.high %v138_v50, %v142_v51  ;;  %v146_v60 = vld [vmem:[%s7245_s1 + $0x3c8] sm:$0xff]  ;;  %v4673_v63 = vcombine.low %v138_v50, %v142_v51 }
  0x20   :  { %v4672_v55 = vcombine.high %v137_v48, %v141_v49  ;;  %v145_v58 = vld [vmem:[%s7245_s1 + $0x3c0] sm:$0xff]  ;;  %v150_v61 = vld [vmem:[%s7245_s1 + $0x3e8] sm:$0xff]  ;;  %v4671_v62 = vcombine.low %v137_v48, %v141_v49 }
  0x21   :  { %v149_v59 = vld [vmem:[%s7245_s1 + $0x3e0] sm:$0xff]  ;;  %v4682_v1 = vcombine.high %v146_v60, %v150_v61 }
  0x22   :  { %3182 = vmatpush1.bf16.msra.mxu0 %v4615_v4  ;;  %3346 = vmatpush1.bf16.msra.mxu1 %v4617_v5  ;;  %v4680_v0 = vcombine.high %v145_v58, %v149_v59  ;;  %v153_v2 = vld [vmem:[%s7245_s1 + $0x400] sm:$0xff]  ;;  %v154_v4 = vld [vmem:[%s7245_s1 + $0x408] sm:$0xff] }
  0x23   :  { %3183 = vmatprep.subr.bf16.mxu0 %v4624_v6  ;;  %3347 = vmatprep.subr.bf16.mxu1 %v4626_v7  ;;  %v157_v3 = vld [vmem:[%s7245_s1 + $0x420] sm:$0xff]  ;;  %v158_v5 = vld [vmem:[%s7245_s1 + $0x428] sm:$0xff]  ;;  %v4679_v6 = vcombine.low %v145_v58, %v149_v59  ;;  %v4681_v7 = vcombine.low %v146_v60, %v150_v61 }
  0x24   :  { %v4688_v8 = vcombine.high %v153_v2, %v157_v3  ;;  %v4690_v9 = vcombine.high %v154_v4, %v158_v5  ;;  %v161_v10 = vld [vmem:[%s7245_s1 + $0x440] sm:$0xff]  ;;  %v4687_v16 = vcombine.low %v153_v2, %v157_v3  ;;  %v4689_v17 = vcombine.low %v154_v4, %v158_v5 }
  0x25   :  { %v165_v11 = vld [vmem:[%s7245_s1 + $0x460] sm:$0xff] }
  0x26   :  { %3184 = vmatpush1.bf16.msra.mxu0 %v4623_v12  ;;  %3348 = vmatpush1.bf16.msra.mxu1 %v4625_v13  ;;  %v5609_v12 = vcombine.low %v5473_v53, %v5473_v53  ;;  %v162_v13 = vld [vmem:[%s7245_s1 + $0x448] sm:$0xff]  ;;  %v4696_v53 = vcombine.high %v161_v10, %v165_v11  ;;  %v169_v19 = vld [vmem:[%s7245_s1 + $0x480] sm:$0xff]  ;;  %v4695_v24 = vcombine.low %v161_v10, %v165_v11 }
  0x27   :  { %3185 = vmatprep.subr.bf16.mxu0 %v4632_v14  ;;  %3349 = vmatprep.subr.bf16.mxu1 %v4634_v15  ;;  %v166_v14 = vld [vmem:[%s7245_s1 + $0x468] sm:$0xff] }
  0x28   :  { %v5620_v15 = vld [vmem:[%s7246_s0 + $0x8] sm:$0xff]  ;;  %v4698_v18 = vcombine.high %v162_v13, %v166_v14  ;;  %v4697_v25 = vcombine.low %v162_v13, %v166_v14 }
  0x2a   :  { %3186 = vmatpush1.bf16.msra.mxu0 %v4631_v20  ;;  %3350 = vmatpush1.bf16.msra.mxu1 %v4633_v21  ;;  %v173_v20 = vld [vmem:[%s7245_s1 + $0x4a0] sm:$0xff]  ;;  %v5630_v21 = vcombine.high %v5620_v15, %v5620_v15 }
  0x2b   :  { %3187 = vmatprep.subr.bf16.mxu0 %v4640_v22  ;;  %3351 = vmatprep.subr.bf16.mxu1 %v4642_v23  ;;  %v170_v22 = vld [vmem:[%s7245_s1 + $0x488] sm:$0xff]  ;;  %v4704_v26 = vcombine.high %v169_v19, %v173_v20  ;;  %v4703_v32 = vcombine.low %v169_v19, %v173_v20 }
  0x2c   :  { %v174_v23 = vld [vmem:[%s7245_s1 + $0x4a8] sm:$0xff] }
  0x2d   :  { %v4706_v27 = vcombine.high %v170_v22, %v174_v23  ;;  %v4705_v33 = vcombine.low %v170_v22, %v174_v23 }
  0x2e   :  { %3188 = vmatpush1.bf16.msra.mxu0 %v4639_v28  ;;  %3352 = vmatpush1.bf16.msra.mxu1 %v4641_v29  ;;  %v177_v28 = vld [vmem:[%s7245_s1 + $0x4c0] sm:$0xff] }
  0x2f   :  { %3189 = vmatprep.subr.bf16.mxu0 %v4648_v30  ;;  %3353 = vmatprep.subr.bf16.mxu1 %v4650_v31  ;;  %v181_v29 = vld [vmem:[%s7245_s1 + $0x4e0] sm:$0xff]  ;;  %v178_v30 = vld [vmem:[%s7245_s1 + $0x4c8] sm:$0xff] }
  0x30   :  { %v182_v31 = vld [vmem:[%s7245_s1 + $0x4e8] sm:$0xff]  ;;  %v4712_v34 = vcombine.high %v177_v28, %v181_v29  ;;  %v4711_v40 = vcombine.low %v177_v28, %v181_v29 }
  0x31   :  { %v4714_v35 = vcombine.high %v178_v30, %v182_v31  ;;  %v4713_v41 = vcombine.low %v178_v30, %v182_v31 }
  0x32   :  { %3190 = vmatpush1.bf16.msra.mxu0 %v4647_v36  ;;  %3354 = vmatpush1.bf16.msra.mxu1 %v4649_v37  ;;  %v185_v36 = vld [vmem:[%s7245_s1 + $0x500] sm:$0xff] }
  0x33   :  { %3191 = vmatprep.subr.bf16.mxu0 %v4656_v38  ;;  %3355 = vmatprep.subr.bf16.mxu1 %v4658_v39  ;;  %v189_v37 = vld [vmem:[%s7245_s1 + $0x520] sm:$0xff]  ;;  %v186_v38 = vld [vmem:[%s7245_s1 + $0x508] sm:$0xff] }
  0x34   :  { %v190_v39 = vld [vmem:[%s7245_s1 + $0x528] sm:$0xff]  ;;  %v4720_v42 = vcombine.high %v185_v36, %v189_v37  ;;  %v4719_v48 = vcombine.low %v185_v36, %v189_v37 }
  0x35   :  { %v4722_v43 = vcombine.high %v186_v38, %v190_v39  ;;  %v4721_v49 = vcombine.low %v186_v38, %v190_v39 }
  0x36   :  { %3192 = vmatpush1.bf16.msra.mxu0 %v4655_v44  ;;  %3356 = vmatpush1.bf16.msra.mxu1 %v4657_v45  ;;  %v193_v44 = vld [vmem:[%s7245_s1 + $0x540] sm:$0xff] }
  0x37   :  { %3193 = vmatprep.subr.bf16.mxu0 %v4664_v46  ;;  %3357 = vmatprep.subr.bf16.mxu1 %v4666_v47  ;;  %v197_v45 = vld [vmem:[%s7245_s1 + $0x560] sm:$0xff]  ;;  %v194_v46 = vld [vmem:[%s7245_s1 + $0x548] sm:$0xff] }
  0x38   :  { %v198_v47 = vld [vmem:[%s7245_s1 + $0x568] sm:$0xff]  ;;  %v4728_v50 = vcombine.high %v193_v44, %v197_v45  ;;  %v4727_v58 = vcombine.low %v193_v44, %v197_v45 }
  0x39   :  { %v4730_v51 = vcombine.high %v194_v46, %v198_v47  ;;  %v4729_v59 = vcombine.low %v194_v46, %v198_v47 }
  0x3a   :  { %3194 = vmatpush1.bf16.msra.mxu0 %v4663_v52  ;;  %3358 = vmatpush1.bf16.msra.mxu1 %v4665_v54  ;;  %v201_v52 = vld [vmem:[%s7245_s1 + $0x580] sm:$0xff] }
  0x3b   :  { %3195 = vmatprep.subr.bf16.mxu0 %v4672_v55  ;;  %3359 = vmatprep.subr.bf16.mxu1 %v4674_v56  ;;  %v205_v54 = vld [vmem:[%s7245_s1 + $0x5a0] sm:$0xff]  ;;  %v202_v55 = vld [vmem:[%s7245_s1 + $0x588] sm:$0xff] }
  0x3c   :  { %v206_v56 = vld [vmem:[%s7245_s1 + $0x5a8] sm:$0xff]  ;;  %v4736_v60 = vcombine.high %v201_v52, %v205_v54  ;;  %v4735_v2 = vcombine.low %v201_v52, %v205_v54 }
  0x3d   :  { %v4738_v61 = vcombine.high %v202_v55, %v206_v56  ;;  %v4737_v3 = vcombine.low %v202_v55, %v206_v56 }
  0x3e   :  { %3196 = vmatpush1.bf16.msra.mxu0 %v4671_v62  ;;  %3360 = vmatpush1.bf16.msra.mxu1 %v4673_v63  ;;  %v209_v62 = vld [vmem:[%s7245_s1 + $0x5c0] sm:$0xff] }
  0x3f   :  { %3197 = vmatprep.subr.bf16.mxu0 %v4680_v0  ;;  %3361 = vmatprep.subr.bf16.mxu1 %v4682_v1  ;;  %v213_v63 = vld [vmem:[%s7245_s1 + $0x5e0] sm:$0xff]  ;;  %v210_v0 = vld [vmem:[%s7245_s1 + $0x5c8] sm:$0xff] }
  0x40   :  { %v214_v1 = vld [vmem:[%s7245_s1 + $0x5e8] sm:$0xff]  ;;  %v4744_v4 = vcombine.high %v209_v62, %v213_v63  ;;  %v4743_v10 = vcombine.low %v209_v62, %v213_v63 }
  0x41   :  { %v4746_v5 = vcombine.high %v210_v0, %v214_v1  ;;  %v4745_v11 = vcombine.low %v210_v0, %v214_v1 }
  0x42   :  { %3198 = vmatpush1.bf16.msra.mxu0 %v4679_v6  ;;  %3362 = vmatpush1.bf16.msra.mxu1 %v4681_v7  ;;  %v217_v6 = vld [vmem:[%s7245_s1 + $0x600] sm:$0xff] }
  0x43   :  { %3208 = vmatprep.subr.bf16.mxu0 %v4688_v8  ;;  %3372 = vmatprep.subr.bf16.mxu1 %v4690_v9  ;;  %v221_v7 = vld [vmem:[%s7245_s1 + $0x620] sm:$0xff]  ;;  %v218_v8 = vld [vmem:[%s7245_s1 + $0x608] sm:$0xff] }
  0x44   :  { %v222_v9 = vld [vmem:[%s7245_s1 + $0x628] sm:$0xff]  ;;  %v4752_v13 = vcombine.high %v217_v6, %v221_v7  ;;  %v4751_v19 = vcombine.low %v217_v6, %v221_v7 }
  0x45   :  { %3200 = vmatmul.mubr.bf16.vlgmr.msra.gmra.mrb[0].mxu0 %v5609_v12  ;;  %3364 = vmatmul.mubr.bf16.vlgmr.msra.gmra.mrb[0].mxu1 %v5609_v12  ;;  %v4754_v14 = vcombine.high %v218_v8, %v222_v9  ;;  %v4753_v20 = vcombine.low %v218_v8, %v222_v9 }
  0x46   :  { %3209 = vmatpush1.bf16.msra.mxu0 %v4687_v16  ;;  %3373 = vmatpush1.bf16.msra.mxu1 %v4689_v17  ;;  %v225_v16 = vld [vmem:[%s7245_s1 + $0x640] sm:$0xff] }
  0x47   :  { %3210 = vmatprep.subr.bf16.mxu0 %v4696_v53  ;;  %3374 = vmatprep.subr.bf16.mxu1 %v4698_v18  ;;  %v229_v17 = vld [vmem:[%s7245_s1 + $0x660] sm:$0xff]  ;;  %v226_v53 = vld [vmem:[%s7245_s1 + $0x648] sm:$0xff] }
  0x48   :  { %3240 = vmatprep.mubr.bf16.mxu0 %v5630_v21  ;;  %3404 = vmatprep.mubr.bf16.mxu1 %v5630_v21  ;;  %v230_v18 = vld [vmem:[%s7245_s1 + $0x668] sm:$0xff]  ;;  %v4760_v22 = vcombine.high %v225_v16, %v229_v17  ;;  %v4759_v28 = vcombine.low %v225_v16, %v229_v17 }
  0x49   :  { %v4762_v23 = vcombine.high %v226_v53, %v230_v18  ;;  %v4761_v29 = vcombine.low %v226_v53, %v230_v18 }
  0x4a   :  { %3211 = vmatpush1.bf16.msra.mxu0 %v4695_v24  ;;  %3375 = vmatpush1.bf16.msra.mxu1 %v4697_v25  ;;  %v233_v24 = vld [vmem:[%s7245_s1 + $0x680] sm:$0xff] }
  0x4b   :  { %3212 = vmatprep.subr.bf16.mxu0 %v4704_v26  ;;  %3376 = vmatprep.subr.bf16.mxu1 %v4706_v27  ;;  %v237_v25 = vld [vmem:[%s7245_s1 + $0x6a0] sm:$0xff]  ;;  %v234_v26 = vld [vmem:[%s7245_s1 + $0x688] sm:$0xff] }
  0x4c   :  { %v238_v27 = vld [vmem:[%s7245_s1 + $0x6a8] sm:$0xff]  ;;  %v4768_v30 = vcombine.high %v233_v24, %v237_v25  ;;  %v4767_v36 = vcombine.low %v233_v24, %v237_v25  ;;  %v5829_v25 = vld [vmem:[%s7246_s0 + $0x10] sm:$0xff] }
  0x4d   :  { %v4770_v31 = vcombine.high %v234_v26, %v238_v27  ;;  %v4769_v37 = vcombine.low %v234_v26, %v238_v27  ;;  %v294_v24 = vld [vmem:[%s7245_s1 + $0x868] sm:$0xff] }
  0x4e   :  { %3213 = vmatpush1.bf16.msra.mxu0 %v4703_v32  ;;  %3377 = vmatpush1.bf16.msra.mxu1 %v4705_v33  ;;  %v241_v32 = vld [vmem:[%s7245_s1 + $0x6c0] sm:$0xff] }
  0x4f   :  { %3214 = vmatprep.subr.bf16.mxu0 %v4712_v34  ;;  %3378 = vmatprep.subr.bf16.mxu1 %v4714_v35  ;;  %v245_v33 = vld [vmem:[%s7245_s1 + $0x6e0] sm:$0xff]  ;;  %v242_v34 = vld [vmem:[%s7245_s1 + $0x6c8] sm:$0xff] }
  0x50   :  { %v246_v35 = vld [vmem:[%s7245_s1 + $0x6e8] sm:$0xff]  ;;  %v4776_v38 = vcombine.high %v241_v32, %v245_v33  ;;  %v4775_v44 = vcombine.low %v241_v32, %v245_v33 }
  0x51   :  { %v4778_v39 = vcombine.high %v242_v34, %v246_v35  ;;  %v4777_v45 = vcombine.low %v242_v34, %v246_v35  ;;  %v298_v32 = vld [vmem:[%s7245_s1 + $0x888] sm:$0xff] }
  0x52   :  { %3215 = vmatpush1.bf16.msra.mxu0 %v4711_v40  ;;  %3379 = vmatpush1.bf16.msra.mxu1 %v4713_v41  ;;  %v249_v40 = vld [vmem:[%s7245_s1 + $0x700] sm:$0xff]  ;;  %v302_v33 = vld [vmem:[%s7245_s1 + $0x8a8] sm:$0xff] }
  0x53   :  { %3216 = vmatprep.subr.bf16.mxu0 %v4720_v42  ;;  %3380 = vmatprep.subr.bf16.mxu1 %v4722_v43  ;;  %v253_v41 = vld [vmem:[%s7245_s1 + $0x720] sm:$0xff]  ;;  %v250_v42 = vld [vmem:[%s7245_s1 + $0x708] sm:$0xff] }
  0x54   :  { %v254_v43 = vld [vmem:[%s7245_s1 + $0x728] sm:$0xff]  ;;  %v4784_v46 = vcombine.high %v249_v40, %v253_v41  ;;  %v4783_v52 = vcombine.low %v249_v40, %v253_v41 }
  0x55   :  { %v4786_v47 = vcombine.high %v250_v42, %v254_v43  ;;  %v4785_v54 = vcombine.low %v250_v42, %v254_v43  ;;  %v306_v40 = vld [vmem:[%s7245_s1 + $0x8c8] sm:$0xff]  ;;  %v4833_v43 = vcombine.low %v298_v32, %v302_v33 }
  0x56   :  { %3217 = vmatpush1.bf16.msra.mxu0 %v4719_v48  ;;  %3381 = vmatpush1.bf16.msra.mxu1 %v4721_v49  ;;  %v257_v48 = vld [vmem:[%s7245_s1 + $0x740] sm:$0xff]  ;;  %v310_v41 = vld [vmem:[%s7245_s1 + $0x8e8] sm:$0xff] }
  0x57   :  { %3218 = vmatprep.subr.bf16.mxu0 %v4728_v50  ;;  %3382 = vmatprep.subr.bf16.mxu1 %v4730_v51  ;;  %v261_v49 = vld [vmem:[%s7245_s1 + $0x760] sm:$0xff]  ;;  %v258_v50 = vld [vmem:[%s7245_s1 + $0x748] sm:$0xff] }
  0x58   :  { %v262_v51 = vld [vmem:[%s7245_s1 + $0x768] sm:$0xff]  ;;  %v4792_v55 = vcombine.high %v257_v48, %v261_v49  ;;  %v4791_v62 = vcombine.low %v257_v48, %v261_v49 }
  0x59   :  { %v4794_v56 = vcombine.high %v258_v50, %v262_v51  ;;  %v4793_v63 = vcombine.low %v258_v50, %v262_v51  ;;  %v314_v48 = vld [vmem:[%s7245_s1 + $0x908] sm:$0xff]  ;;  %v4841_v51 = vcombine.low %v306_v40, %v310_v41 }
  0x5a   :  { %3219 = vmatpush1.bf16.msra.mxu0 %v4727_v58  ;;  %3383 = vmatpush1.bf16.msra.mxu1 %v4729_v59  ;;  %v265_v58 = vld [vmem:[%s7245_s1 + $0x780] sm:$0xff]  ;;  %v318_v49 = vld [vmem:[%s7245_s1 + $0x928] sm:$0xff] }
  0x5b   :  { %3220 = vmatprep.subr.bf16.mxu0 %v4736_v60  ;;  %3384 = vmatprep.subr.bf16.mxu1 %v4738_v61  ;;  %v269_v59 = vld [vmem:[%s7245_s1 + $0x7a0] sm:$0xff]  ;;  %v266_v60 = vld [vmem:[%s7245_s1 + $0x788] sm:$0xff] }
  0x5c   :  { %v270_v61 = vld [vmem:[%s7245_s1 + $0x7a8] sm:$0xff]  ;;  %v4800_v0 = vcombine.high %v265_v58, %v269_v59  ;;  %v4799_v6 = vcombine.low %v265_v58, %v269_v59 }
  0x5d   :  { %v4802_v1 = vcombine.high %v266_v60, %v270_v61  ;;  %v4801_v7 = vcombine.low %v266_v60, %v270_v61  ;;  %v322_v58 = vld [vmem:[%s7245_s1 + $0x948] sm:$0xff]  ;;  %v4849_v61 = vcombine.low %v314_v48, %v318_v49 }
  0x5e   :  { %3221 = vmatpush1.bf16.msra.mxu0 %v4735_v2  ;;  %3385 = vmatpush1.bf16.msra.mxu1 %v4737_v3  ;;  %v273_v2 = vld [vmem:[%s7245_s1 + $0x7c0] sm:$0xff]  ;;  %v326_v59 = vld [vmem:[%s7245_s1 + $0x968] sm:$0xff] }
  0x5f   :  { %3222 = vmatprep.subr.bf16.mxu0 %v4744_v4  ;;  %3386 = vmatprep.subr.bf16.mxu1 %v4746_v5  ;;  %v277_v3 = vld [vmem:[%s7245_s1 + $0x7e0] sm:$0xff]  ;;  %v274_v4 = vld [vmem:[%s7245_s1 + $0x7c8] sm:$0xff] }
  0x60   :  { %v278_v5 = vld [vmem:[%s7245_s1 + $0x7e8] sm:$0xff]  ;;  %v4808_v8 = vcombine.high %v273_v2, %v277_v3  ;;  %v4807_v16 = vcombine.low %v273_v2, %v277_v3 }
  0x61   :  { %v4810_v9 = vcombine.high %v274_v4, %v278_v5  ;;  %v4809_v17 = vcombine.low %v274_v4, %v278_v5  ;;  %v330_v2 = vld [vmem:[%s7245_s1 + $0x988] sm:$0xff]  ;;  %v4857_v5 = vcombine.low %v322_v58, %v326_v59 }
  0x62   :  { %3223 = vmatpush1.bf16.msra.mxu0 %v4743_v10  ;;  %3387 = vmatpush1.bf16.msra.mxu1 %v4745_v11  ;;  %v281_v10 = vld [vmem:[%s7245_s1 + $0x800] sm:$0xff]  ;;  %v334_v3 = vld [vmem:[%s7245_s1 + $0x9a8] sm:$0xff] }
  0x63   :  { %3224 = vmatprep.subr.bf16.mxu0 %v4752_v13  ;;  %3388 = vmatprep.subr.bf16.mxu1 %v4754_v14  ;;  %v285_v11 = vld [vmem:[%s7245_s1 + $0x820] sm:$0xff]  ;;  %v282_v13 = vld [vmem:[%s7245_s1 + $0x808] sm:$0xff] }
  0x64   :  { %v286_v14 = vld [vmem:[%s7245_s1 + $0x828] sm:$0xff]  ;;  %v4816_v53 = vcombine.high %v281_v10, %v285_v11  ;;  %v4815_v26 = vcombine.low %v281_v10, %v285_v11 }
  0x65   :  { %v4818_v18 = vcombine.high %v282_v13, %v286_v14  ;;  %v4817_v27 = vcombine.low %v282_v13, %v286_v14  ;;  %v338_v10 = vld [vmem:[%s7245_s1 + $0x9c8] sm:$0xff]  ;;  %v4865_v14 = vcombine.low %v330_v2, %v334_v3 }
  0x66   :  { %3225 = vmatpush1.bf16.msra.mxu0 %v4751_v19  ;;  %3389 = vmatpush1.bf16.msra.mxu1 %v4753_v20  ;;  %v289_v19 = vld [vmem:[%s7245_s1 + $0x840] sm:$0xff]  ;;  %v342_v11 = vld [vmem:[%s7245_s1 + $0x9e8] sm:$0xff] }
  0x67   :  { %3226 = vmatprep.subr.bf16.mxu0 %v4760_v22  ;;  %3390 = vmatprep.subr.bf16.mxu1 %v4762_v23  ;;  %v293_v20 = vld [vmem:[%s7245_s1 + $0x860] sm:$0xff]  ;;  %v5818_v22 = vcombine.low %v5620_v15, %v5620_v15  ;;  %v290_v23 = vld [vmem:[%s7245_s1 + $0x848] sm:$0xff] }
  0x68   :  { %v4824_v15 = vcombine.high %v289_v19, %v293_v20  ;;  %v4823_v34 = vcombine.low %v289_v19, %v293_v20  ;;  %v4825_v35 = vcombine.low %v290_v23, %v294_v24  ;;  %v346_v19 = vld [vmem:[%s7245_s1 + $0xa08] sm:$0xff] }
  0x69   :  { %v350_v20 = vld [vmem:[%s7245_s1 + $0xa28] sm:$0xff] }
  0x6a   :  { %3227 = vmatpush1.bf16.msra.mxu0 %v4759_v28  ;;  %3391 = vmatpush1.bf16.msra.mxu1 %v4761_v29  ;;  %v4826_v28 = vcombine.high %v290_v23, %v294_v24  ;;  %v297_v29 = vld [vmem:[%s7245_s1 + $0x880] sm:$0xff]  ;;  %v4873_v24 = vcombine.low %v338_v10, %v342_v11 }
  0x6b   :  { %3228 = vmatprep.subr.bf16.mxu0 %v4768_v30  ;;  %3392 = vmatprep.subr.bf16.mxu1 %v4770_v31  ;;  %v301_v30 = vld [vmem:[%s7245_s1 + $0x8a0] sm:$0xff]  ;;  %v5839_v31 = vcombine.high %v5829_v25, %v5829_v25 }
  0x6c   :  { %v4831_v42 = vcombine.low %v297_v29, %v301_v30 }
  0x6e   :  { %3229 = vmatpush1.bf16.msra.mxu0 %v4767_v36  ;;  %3393 = vmatpush1.bf16.msra.mxu1 %v4769_v37  ;;  %v4832_v36 = vcombine.high %v297_v29, %v301_v30  ;;  %v4834_v37 = vcombine.high %v298_v32, %v302_v33  ;;  %v354_v29 = vld [vmem:[%s7245_s1 + $0xa48] sm:$0xff]  ;;  %v4881_v33 = vcombine.low %v346_v19, %v350_v20 }
  0x6f   :  { %3230 = vmatprep.subr.bf16.mxu0 %v4776_v38  ;;  %3394 = vmatprep.subr.bf16.mxu1 %v4778_v39  ;;  %v305_v38 = vld [vmem:[%s7245_s1 + $0x8c0] sm:$0xff]  ;;  %v358_v30 = vld [vmem:[%s7245_s1 + $0xa68] sm:$0xff] }
  0x70   :  { %v309_v39 = vld [vmem:[%s7245_s1 + $0x8e0] sm:$0xff] }
  0x71   :  { %v4839_v50 = vcombine.low %v305_v38, %v309_v39 }
  0x72   :  { %3231 = vmatpush1.bf16.msra.mxu0 %v4775_v44  ;;  %3395 = vmatpush1.bf16.msra.mxu1 %v4777_v45  ;;  %v4840_v44 = vcombine.high %v305_v38, %v309_v39  ;;  %v4842_v45 = vcombine.high %v306_v40, %v310_v41  ;;  %v362_v38 = vld [vmem:[%s7245_s1 + $0xa88] sm:$0xff]  ;;  %v4889_v41 = vcombine.low %v354_v29, %v358_v30 }
  0x73   :  { %3232 = vmatprep.subr.bf16.mxu0 %v4784_v46  ;;  %3396 = vmatprep.subr.bf16.mxu1 %v4786_v47  ;;  %v313_v46 = vld [vmem:[%s7245_s1 + $0x900] sm:$0xff]  ;;  %v366_v39 = vld [vmem:[%s7245_s1 + $0xaa8] sm:$0xff] }
  0x74   :  { %v317_v47 = vld [vmem:[%s7245_s1 + $0x920] sm:$0xff] }
  0x75   :  { %v4847_v60 = vcombine.low %v313_v46, %v317_v47 }
  0x76   :  { %3233 = vmatpush1.bf16.msra.mxu0 %v4783_v52  ;;  %3397 = vmatpush1.bf16.msra.mxu1 %v4785_v54  ;;  %v4848_v52 = vcombine.high %v313_v46, %v317_v47  ;;  %v4850_v54 = vcombine.high %v314_v48, %v318_v49  ;;  %v370_v46 = vld [vmem:[%s7245_s1 + $0xac8] sm:$0xff]  ;;  %v4897_v49 = vcombine.low %v362_v38, %v366_v39 }
  0x77   :  { %3234 = vmatprep.subr.bf16.mxu0 %v4792_v55  ;;  %3398 = vmatprep.subr.bf16.mxu1 %v4794_v56  ;;  %v321_v55 = vld [vmem:[%s7245_s1 + $0x940] sm:$0xff]  ;;  %v374_v47 = vld [vmem:[%s7245_s1 + $0xae8] sm:$0xff] }
  0x78   :  { %v325_v56 = vld [vmem:[%s7245_s1 + $0x960] sm:$0xff] }
  0x79   :  { %v4855_v4 = vcombine.low %v321_v55, %v325_v56 }
  0x7a   :  { %3235 = vmatpush1.bf16.msra.mxu0 %v4791_v62  ;;  %3399 = vmatpush1.bf16.msra.mxu1 %v4793_v63  ;;  %v4856_v62 = vcombine.high %v321_v55, %v325_v56  ;;  %v4858_v63 = vcombine.high %v322_v58, %v326_v59  ;;  %v378_v55 = vld [vmem:[%s7245_s1 + $0xb08] sm:$0xff]  ;;  %v4905_v59 = vcombine.low %v370_v46, %v374_v47 }
  0x7b   :  { %3236 = vmatprep.subr.bf16.mxu0 %v4800_v0  ;;  %3400 = vmatprep.subr.bf16.mxu1 %v4802_v1  ;;  %v329_v0 = vld [vmem:[%s7245_s1 + $0x980] sm:$0xff]  ;;  %v382_v56 = vld [vmem:[%s7245_s1 + $0xb28] sm:$0xff] }
  0x7c   :  { %v333_v1 = vld [vmem:[%s7245_s1 + $0x9a0] sm:$0xff] }
  0x7d   :  { %v4863_v13 = vcombine.low %v329_v0, %v333_v1 }
  0x7e   :  { %3237 = vmatpush1.bf16.msra.mxu0 %v4799_v6  ;;  %3401 = vmatpush1.bf16.msra.mxu1 %v4801_v7  ;;  %v4864_v6 = vcombine.high %v329_v0, %v333_v1  ;;  %v4866_v7 = vcombine.high %v330_v2, %v334_v3  ;;  %v386_v0 = vld [vmem:[%s7245_s1 + $0xb48] sm:$0xff]  ;;  %v4913_v3 = vcombine.low %v378_v55, %v382_v56 }
  0x7f   :  { %3238 = vmatprep.subr.bf16.mxu0 %v4808_v8  ;;  %3402 = vmatprep.subr.bf16.mxu1 %v4810_v9  ;;  %v337_v8 = vld [vmem:[%s7245_s1 + $0x9c0] sm:$0xff]  ;;  %v390_v1 = vld [vmem:[%s7245_s1 + $0xb68] sm:$0xff] }
  0x80   :  { %v341_v9 = vld [vmem:[%s7245_s1 + $0x9e0] sm:$0xff] }
  0x81   :  { %v4871_v23 = vcombine.low %v337_v8, %v341_v9 }
  0x82   :  { %3239 = vmatpush1.bf16.msra.mxu0 %v4807_v16  ;;  %3403 = vmatpush1.bf16.msra.mxu1 %v4809_v17  ;;  %v4872_v16 = vcombine.high %v337_v8, %v341_v9  ;;  %v4874_v17 = vcombine.high %v338_v10, %v342_v11  ;;  %v394_v8 = vld [vmem:[%s7245_s1 + $0xb88] sm:$0xff]  ;;  %v4921_v11 = vcombine.low %v386_v0, %v390_v1 }
  0x83   :  { %3249 = vmatprep.subr.bf16.mxu0 %v4816_v53  ;;  %3413 = vmatprep.subr.bf16.mxu1 %v4818_v18  ;;  %v345_v53 = vld [vmem:[%s7245_s1 + $0xa00] sm:$0xff]  ;;  %v398_v9 = vld [vmem:[%s7245_s1 + $0xba8] sm:$0xff] }
  0x84   :  { %v349_v18 = vld [vmem:[%s7245_s1 + $0xa20] sm:$0xff] }
  0x85   :  { %3241 = vmatmul.mubr.bf16.vlgmr.msra.gmra.mrb[0].mxu0 %v5818_v22  ;;  %3405 = vmatmul.mubr.bf16.vlgmr.msra.gmra.mrb[0].mxu1 %v5818_v22  ;;  %v4879_v32 = vcombine.low %v345_v53, %v349_v18 }
  0x86   :  { %3250 = vmatpush1.bf16.msra.mxu0 %v4815_v26  ;;  %3414 = vmatpush1.bf16.msra.mxu1 %v4817_v27  ;;  %v4880_v26 = vcombine.high %v345_v53, %v349_v18  ;;  %v4882_v27 = vcombine.high %v346_v19, %v350_v20  ;;  %v402_v53 = vld [vmem:[%s7245_s1 + $0xbc8] sm:$0xff]  ;;  %v4929_v20 = vcombine.low %v394_v8, %v398_v9 }
  0x87   :  { %3251 = vmatprep.subr.bf16.mxu0 %v4824_v15  ;;  %3415 = vmatprep.subr.bf16.mxu1 %v4826_v28  ;;  %v353_v15 = vld [vmem:[%s7245_s1 + $0xa40] sm:$0xff]  ;;  %v406_v18 = vld [vmem:[%s7245_s1 + $0xbe8] sm:$0xff] }
  0x88   :  { %3281 = vmatprep.mubr.bf16.mxu0 %v5839_v31  ;;  %3445 = vmatprep.mubr.bf16.mxu1 %v5839_v31  ;;  %v357_v28 = vld [vmem:[%s7245_s1 + $0xa60] sm:$0xff] }
  0x89   :  { %v4887_v40 = vcombine.low %v353_v15, %v357_v28 }
  0x8a   :  { %3252 = vmatpush1.bf16.msra.mxu0 %v4823_v34  ;;  %3416 = vmatpush1.bf16.msra.mxu1 %v4825_v35  ;;  %v4888_v34 = vcombine.high %v353_v15, %v357_v28  ;;  %v4890_v35 = vcombine.high %v354_v29, %v358_v30  ;;  %v410_v15 = vld [vmem:[%s7245_s1 + $0xc08] sm:$0xff]  ;;  %v4937_v30 = vcombine.low %v402_v53, %v406_v18 }
  0x8b   :  { %3253 = vmatprep.subr.bf16.mxu0 %v4832_v36  ;;  %3417 = vmatprep.subr.bf16.mxu1 %v4834_v37  ;;  %v361_v36 = vld [vmem:[%s7245_s1 + $0xa80] sm:$0xff]  ;;  %v414_v28 = vld [vmem:[%s7245_s1 + $0xc28] sm:$0xff] }
  0x8c   :  { %v365_v37 = vld [vmem:[%s7245_s1 + $0xaa0] sm:$0xff] }
  0x8d   :  { %v4895_v48 = vcombine.low %v361_v36, %v365_v37 }
  0x8e   :  { %3254 = vmatpush1.bf16.msra.mxu0 %v4831_v42  ;;  %3418 = vmatpush1.bf16.msra.mxu1 %v4833_v43  ;;  %v4896_v42 = vcombine.high %v361_v36, %v365_v37  ;;  %v4898_v43 = vcombine.high %v362_v38, %v366_v39  ;;  %v6027_v36 = vcombine.low %v5829_v25, %v5829_v25  ;;  %v418_v37 = vld [vmem:[%s7245_s1 + $0xc48] sm:$0xff]  ;;  %v6038_v39 = vld [vmem:[%s7246_s0 + $0x18] sm:$0xff] }
  0x8f   :  { %3255 = vmatprep.subr.bf16.mxu0 %v4840_v44  ;;  %3419 = vmatprep.subr.bf16.mxu1 %v4842_v45  ;;  %v369_v44 = vld [vmem:[%s7245_s1 + $0xac0] sm:$0xff]  ;;  %v422_v38 = vld [vmem:[%s7245_s1 + $0xc68] sm:$0xff] }
  0x90   :  { %v373_v45 = vld [vmem:[%s7245_s1 + $0xae0] sm:$0xff] }
  0x91   :  { %v4903_v58 = vcombine.low %v369_v44, %v373_v45 }
  0x92   :  { %3256 = vmatpush1.bf16.msra.mxu0 %v4839_v50  ;;  %3420 = vmatpush1.bf16.msra.mxu1 %v4841_v51  ;;  %v4904_v50 = vcombine.high %v369_v44, %v373_v45  ;;  %v4906_v51 = vcombine.high %v370_v46, %v374_v47  ;;  %v429_v44 = vld [vmem:[%s7245_s1 + $0xca0] sm:$0xff]  ;;  %v6048_v45 = vcombine.high %v6038_v39, %v6038_v39  ;;  %v426_v46 = vld [vmem:[%s7245_s1 + $0xc88] sm:$0xff] }
  0x93   :  { %3257 = vmatprep.subr.bf16.mxu0 %v4848_v52  ;;  %3421 = vmatprep.subr.bf16.mxu1 %v4850_v54  ;;  %v377_v52 = vld [vmem:[%s7245_s1 + $0xb00] sm:$0xff]  ;;  %v430_v47 = vld [vmem:[%s7245_s1 + $0xca8] sm:$0xff] }
  0x94   :  { %v381_v54 = vld [vmem:[%s7245_s1 + $0xb20] sm:$0xff] }
  0x95   :  { %v4911_v2 = vcombine.low %v377_v52, %v381_v54 }
  0x96   :  { %3258 = vmatpush1.bf16.msra.mxu0 %v4847_v60  ;;  %3422 = vmatpush1.bf16.msra.mxu1 %v4849_v61  ;;  %v4912_v60 = vcombine.high %v377_v52, %v381_v54  ;;  %v4914_v61 = vcombine.high %v378_v55, %v382_v56  ;;  %v433_v52 = vld [vmem:[%s7245_s1 + $0xcc0] sm:$0xff]  ;;  %v434_v55 = vld [vmem:[%s7245_s1 + $0xcc8] sm:$0xff] }
  0x97   :  { %3259 = vmatprep.subr.bf16.mxu0 %v4856_v62  ;;  %3423 = vmatprep.subr.bf16.mxu1 %v4858_v63  ;;  %v385_v62 = vld [vmem:[%s7245_s1 + $0xb40] sm:$0xff]  ;;  %v438_v56 = vld [vmem:[%s7245_s1 + $0xce8] sm:$0xff] }
  0x98   :  { %v389_v63 = vld [vmem:[%s7245_s1 + $0xb60] sm:$0xff] }
  0x99   :  { %v4919_v10 = vcombine.low %v385_v62, %v389_v63  ;;  %v437_v54 = vld [vmem:[%s7245_s1 + $0xce0] sm:$0xff] }
  0x9a   :  { %3260 = vmatpush1.bf16.msra.mxu0 %v4855_v4  ;;  %3424 = vmatpush1.bf16.msra.mxu1 %v4857_v5  ;;  %v4920_v4 = vcombine.high %v385_v62, %v389_v63  ;;  %v4922_v5 = vcombine.high %v386_v0, %v390_v1  ;;  %v441_v62 = vld [vmem:[%s7245_s1 + $0xd00] sm:$0xff]  ;;  %v442_v0 = vld [vmem:[%s7245_s1 + $0xd08] sm:$0xff] }
  0x9b   :  { %3261 = vmatprep.subr.bf16.mxu0 %v4864_v6  ;;  %3425 = vmatprep.subr.bf16.mxu1 %v4866_v7  ;;  %v393_v6 = vld [vmem:[%s7245_s1 + $0xb80] sm:$0xff]  ;;  %v446_v1 = vld [vmem:[%s7245_s1 + $0xd28] sm:$0xff] }
  0x9c   :  { %v397_v7 = vld [vmem:[%s7245_s1 + $0xba0] sm:$0xff] }
  0x9d   :  { %v4927_v19 = vcombine.low %v393_v6, %v397_v7  ;;  %v445_v63 = vld [vmem:[%s7245_s1 + $0xd20] sm:$0xff] }
  0x9e   :  { %3262 = vmatpush1.bf16.msra.mxu0 %v4863_v13  ;;  %3426 = vmatpush1.bf16.msra.mxu1 %v4865_v14  ;;  %v4928_v13 = vcombine.high %v393_v6, %v397_v7  ;;  %v4930_v14 = vcombine.high %v394_v8, %v398_v9  ;;  %v449_v6 = vld [vmem:[%s7245_s1 + $0xd40] sm:$0xff]  ;;  %v450_v8 = vld [vmem:[%s7245_s1 + $0xd48] sm:$0xff] }
  0x9f   :  { %3263 = vmatprep.subr.bf16.mxu0 %v4872_v16  ;;  %3427 = vmatprep.subr.bf16.mxu1 %v4874_v17  ;;  %v401_v16 = vld [vmem:[%s7245_s1 + $0xbc0] sm:$0xff]  ;;  %v454_v9 = vld [vmem:[%s7245_s1 + $0xd68] sm:$0xff] }
  0xa0   :  { %v405_v17 = vld [vmem:[%s7245_s1 + $0xbe0] sm:$0xff] }
  0xa1   :  { %v4935_v29 = vcombine.low %v401_v16, %v405_v17  ;;  %v453_v7 = vld [vmem:[%s7245_s1 + $0xd60] sm:$0xff] }
  0xa2   :  { %3264 = vmatpush1.bf16.msra.mxu0 %v4871_v23  ;;  %3428 = vmatpush1.bf16.msra.mxu1 %v4873_v24  ;;  %v4936_v23 = vcombine.high %v401_v16, %v405_v17  ;;  %v4938_v24 = vcombine.high %v402_v53, %v406_v18  ;;  %v457_v16 = vld [vmem:[%s7245_s1 + $0xd80] sm:$0xff]  ;;  %v458_v53 = vld [vmem:[%s7245_s1 + $0xd88] sm:$0xff] }
  0xa3   :  { %3265 = vmatprep.subr.bf16.mxu0 %v4880_v26  ;;  %3429 = vmatprep.subr.bf16.mxu1 %v4882_v27  ;;  %v409_v26 = vld [vmem:[%s7245_s1 + $0xc00] sm:$0xff]  ;;  %v462_v18 = vld [vmem:[%s7245_s1 + $0xda8] sm:$0xff] }
  0xa4   :  { %v413_v27 = vld [vmem:[%s7245_s1 + $0xc20] sm:$0xff] }
  0xa5   :  { %v461_v17 = vld [vmem:[%s7245_s1 + $0xda0] sm:$0xff] }
  0xa6   :  { %3266 = vmatpush1.bf16.msra.mxu0 %v4879_v32  ;;  %3430 = vmatpush1.bf16.msra.mxu1 %v4881_v33  ;;  %v4944_v32 = vcombine.high %v409_v26, %v413_v27  ;;  %v4946_v33 = vcombine.high %v410_v15, %v414_v28 }
  0xa7   :  { %3267 = vmatprep.subr.bf16.mxu0 %v4888_v34  ;;  %3431 = vmatprep.subr.bf16.mxu1 %v4890_v35  ;;  %v417_v34 = vld [vmem:[%s7245_s1 + $0xc40] sm:$0xff] }
  0xa8   :  { %v421_v35 = vld [vmem:[%s7245_s1 + $0xc60] sm:$0xff] }
  0xa9   :  { %v4952_v25 = vcombine.high %v417_v34, %v421_v35 }
  0xaa   :  { %3268 = vmatpush1.bf16.msra.mxu0 %v4887_v40  ;;  %3432 = vmatpush1.bf16.msra.mxu1 %v4889_v41  ;;  %v4943_v40 = vcombine.low %v409_v26, %v413_v27  ;;  %v4945_v41 = vcombine.low %v410_v15, %v414_v28  ;;  %v465_v26 = vld [vmem:[%s7245_s1 + $0xdc0] sm:$0xff]  ;;  %v466_v15 = vld [vmem:[%s7245_s1 + $0xdc8] sm:$0xff] }
  0xab   :  { %3269 = vmatprep.subr.bf16.mxu0 %v4896_v42  ;;  %3433 = vmatprep.subr.bf16.mxu1 %v4898_v43  ;;  %v4954_v42 = vcombine.high %v418_v37, %v422_v38  ;;  %v425_v43 = vld [vmem:[%s7245_s1 + $0xc80] sm:$0xff]  ;;  %v470_v28 = vld [vmem:[%s7245_s1 + $0xde8] sm:$0xff] }
  0xac   :  { %v469_v27 = vld [vmem:[%s7245_s1 + $0xde0] sm:$0xff] }
  0xae   :  { %3270 = vmatpush1.bf16.msra.mxu0 %v4895_v48  ;;  %3434 = vmatpush1.bf16.msra.mxu1 %v4897_v49  ;;  %v4951_v48 = vcombine.low %v417_v34, %v421_v35  ;;  %v4953_v49 = vcombine.low %v418_v37, %v422_v38  ;;  %v473_v34 = vld [vmem:[%s7245_s1 + $0xe00] sm:$0xff]  ;;  %v474_v37 = vld [vmem:[%s7245_s1 + $0xe08] sm:$0xff] }
  0xaf   :  { %3271 = vmatprep.subr.bf16.mxu0 %v4904_v50  ;;  %3435 = vmatprep.subr.bf16.mxu1 %v4906_v51  ;;  %v4960_v50 = vcombine.high %v425_v43, %v429_v44  ;;  %v4962_v51 = vcombine.high %v426_v46, %v430_v47  ;;  %v477_v35 = vld [vmem:[%s7245_s1 + $0xe20] sm:$0xff]  ;;  %v478_v38 = vld [vmem:[%s7245_s1 + $0xe28] sm:$0xff] }
  0xb2   :  { %3272 = vmatpush1.bf16.msra.mxu0 %v4903_v58  ;;  %3436 = vmatpush1.bf16.msra.mxu1 %v4905_v59  ;;  %v4959_v58 = vcombine.low %v425_v43, %v429_v44  ;;  %v4961_v59 = vcombine.low %v426_v46, %v430_v47  ;;  %v481_v43 = vld [vmem:[%s7245_s1 + $0xe40] sm:$0xff]  ;;  %v482_v46 = vld [vmem:[%s7245_s1 + $0xe48] sm:$0xff] }
  0xb3   :  { %3273 = vmatprep.subr.bf16.mxu0 %v4912_v60  ;;  %3437 = vmatprep.subr.bf16.mxu1 %v4914_v61  ;;  %v4968_v60 = vcombine.high %v433_v52, %v437_v54  ;;  %v4970_v61 = vcombine.high %v434_v55, %v438_v56  ;;  %v485_v44 = vld [vmem:[%s7245_s1 + $0xe60] sm:$0xff]  ;;  %v486_v47 = vld [vmem:[%s7245_s1 + $0xe68] sm:$0xff] }
  0xb6   :  { %3274 = vmatpush1.bf16.msra.mxu0 %v4911_v2  ;;  %3438 = vmatpush1.bf16.msra.mxu1 %v4913_v3  ;;  %v4967_v2 = vcombine.low %v433_v52, %v437_v54  ;;  %v4969_v3 = vcombine.low %v434_v55, %v438_v56  ;;  %v489_v52 = vld [vmem:[%s7245_s1 + $0xe80] sm:$0xff]  ;;  %v490_v55 = vld [vmem:[%s7245_s1 + $0xe88] sm:$0xff] }
  0xb7   :  { %3275 = vmatprep.subr.bf16.mxu0 %v4920_v4  ;;  %3439 = vmatprep.subr.bf16.mxu1 %v4922_v5  ;;  %v4976_v4 = vcombine.high %v441_v62, %v445_v63  ;;  %v4978_v5 = vcombine.high %v442_v0, %v446_v1  ;;  %v493_v54 = vld [vmem:[%s7245_s1 + $0xea0] sm:$0xff]  ;;  %v494_v56 = vld [vmem:[%s7245_s1 + $0xea8] sm:$0xff] }
  0xba   :  { %3276 = vmatpush1.bf16.msra.mxu0 %v4919_v10  ;;  %3440 = vmatpush1.bf16.msra.mxu1 %v4921_v11  ;;  %v4975_v10 = vcombine.low %v441_v62, %v445_v63  ;;  %v4977_v11 = vcombine.low %v442_v0, %v446_v1  ;;  %v497_v62 = vld [vmem:[%s7245_s1 + $0xec0] sm:$0xff]  ;;  %v498_v0 = vld [vmem:[%s7245_s1 + $0xec8] sm:$0xff] }
  0xbb   :  { %3277 = vmatprep.subr.bf16.mxu0 %v4928_v13  ;;  %3441 = vmatprep.subr.bf16.mxu1 %v4930_v14  ;;  %v4984_v13 = vcombine.high %v449_v6, %v453_v7  ;;  %v4986_v14 = vcombine.high %v450_v8, %v454_v9  ;;  %v501_v63 = vld [vmem:[%s7245_s1 + $0xee0] sm:$0xff]  ;;  %v502_v1 = vld [vmem:[%s7245_s1 + $0xee8] sm:$0xff] }
  0xbe   :  { %3278 = vmatpush1.bf16.msra.mxu0 %v4927_v19  ;;  %3442 = vmatpush1.bf16.msra.mxu1 %v4929_v20  ;;  %v4983_v19 = vcombine.low %v449_v6, %v453_v7  ;;  %v4985_v20 = vcombine.low %v450_v8, %v454_v9  ;;  %v505_v6 = vld [vmem:[%s7245_s1 + $0xf00] sm:$0xff]  ;;  %v506_v8 = vld [vmem:[%s7245_s1 + $0xf08] sm:$0xff] }
  0xbf   :  { %3279 = vmatprep.subr.bf16.mxu0 %v4936_v23  ;;  %3443 = vmatprep.subr.bf16.mxu1 %v4938_v24  ;;  %v4992_v23 = vcombine.high %v457_v16, %v461_v17  ;;  %v4994_v24 = vcombine.high %v458_v53, %v462_v18  ;;  %v509_v7 = vld [vmem:[%s7245_s1 + $0xf20] sm:$0xff]  ;;  %v510_v9 = vld [vmem:[%s7245_s1 + $0xf28] sm:$0xff] }
  0xc2   :  { %3280 = vmatpush1.bf16.msra.mxu0 %v4935_v29  ;;  %3444 = vmatpush1.bf16.msra.mxu1 %v4937_v30  ;;  %v4991_v29 = vcombine.low %v457_v16, %v461_v17  ;;  %v4993_v30 = vcombine.low %v458_v53, %v462_v18  ;;  %v513_v16 = vld [vmem:[%s7245_s1 + $0xf40] sm:$0xff]  ;;  %v514_v53 = vld [vmem:[%s7245_s1 + $0xf48] sm:$0xff] }
  0xc3   :  { %3290 = vmatprep.subr.bf16.mxu0 %v4944_v32  ;;  %3454 = vmatprep.subr.bf16.mxu1 %v4946_v33  ;;  %v5000_v32 = vcombine.high %v465_v26, %v469_v27  ;;  %v5002_v33 = vcombine.high %v466_v15, %v470_v28  ;;  %v517_v17 = vld [vmem:[%s7245_s1 + $0xf60] sm:$0xff]  ;;  %v518_v18 = vld [vmem:[%s7245_s1 + $0xf68] sm:$0xff] }
  0xc5   :  { %3282 = vmatmul.mubr.bf16.vlgmr.msra.gmra.mrb[0].mxu0 %v6027_v36  ;;  %3446 = vmatmul.mubr.bf16.vlgmr.msra.gmra.mrb[0].mxu1 %v6027_v36 }
  0xc6   :  { %3291 = vmatpush1.bf16.msra.mxu0 %v4943_v40  ;;  %3455 = vmatpush1.bf16.msra.mxu1 %v4945_v41  ;;  %v4999_v40 = vcombine.low %v465_v26, %v469_v27  ;;  %v5001_v41 = vcombine.low %v466_v15, %v470_v28  ;;  %v521_v26 = vld [vmem:[%s7245_s1 + $0xf80] sm:$0xff]  ;;  %v522_v15 = vld [vmem:[%s7245_s1 + $0xf88] sm:$0xff] }
  0xc7   :  { %3292 = vmatprep.subr.bf16.mxu0 %v4952_v25  ;;  %3456 = vmatprep.subr.bf16.mxu1 %v4954_v42  ;;  %v5008_v25 = vcombine.high %v473_v34, %v477_v35  ;;  %v5010_v42 = vcombine.high %v474_v37, %v478_v38  ;;  %v525_v27 = vld [vmem:[%s7245_s1 + $0xfa0] sm:$0xff]  ;;  %v526_v28 = vld [vmem:[%s7245_s1 + $0xfa8] sm:$0xff] }
  0xc8   :  { %3322 = vmatprep.mubr.bf16.mxu0 %v6048_v45  ;;  %3486 = vmatprep.mubr.bf16.mxu1 %v6048_v45 }
  0xca   :  { %3293 = vmatpush1.bf16.msra.mxu0 %v4951_v48  ;;  %3457 = vmatpush1.bf16.msra.mxu1 %v4953_v49  ;;  %v5007_v48 = vcombine.low %v473_v34, %v477_v35  ;;  %v5009_v49 = vcombine.low %v474_v37, %v478_v38  ;;  %v529_v34 = vld [vmem:[%s7245_s1 + $0xfc0] sm:$0xff]  ;;  %v530_v37 = vld [vmem:[%s7245_s1 + $0xfc8] sm:$0xff] }
  0xcb   :  { %3294 = vmatprep.subr.bf16.mxu0 %v4960_v50  ;;  %3458 = vmatprep.subr.bf16.mxu1 %v4962_v51  ;;  %v5016_v50 = vcombine.high %v481_v43, %v485_v44  ;;  %v5018_v51 = vcombine.high %v482_v46, %v486_v47  ;;  %v533_v35 = vld [vmem:[%s7245_s1 + $0xfe0] sm:$0xff]  ;;  %v534_v38 = vld [vmem:[%s7245_s1 + $0xfe8] sm:$0xff] }
  0xce   :  { %3295 = vmatpush1.bf16.msra.mxu0 %v4959_v58  ;;  %3459 = vmatpush1.bf16.msra.mxu1 %v4961_v59  ;;  %v5015_v58 = vcombine.low %v481_v43, %v485_v44  ;;  %v5017_v59 = vcombine.low %v482_v46, %v486_v47  ;;  %v27_v43 = vld [vmem:[%s7245_s1 + $0x10] sm:$0xff]  ;;  %v28_v46 = vld [vmem:[%s7245_s1 + $0x18] sm:$0xff] }
  0xcf   :  { %3296 = vmatprep.subr.bf16.mxu0 %v4968_v60  ;;  %3460 = vmatprep.subr.bf16.mxu1 %v4970_v61  ;;  %v5024_v60 = vcombine.high %v489_v52, %v493_v54  ;;  %v5026_v61 = vcombine.high %v490_v55, %v494_v56  ;;  %v31_v44 = vld [vmem:[%s7245_s1 + $0x30] sm:$0xff]  ;;  %v32_v47 = vld [vmem:[%s7245_s1 + $0x38] sm:$0xff] }
  0xd2   :  { %3297 = vmatpush1.bf16.msra.mxu0 %v4967_v2  ;;  %3461 = vmatpush1.bf16.msra.mxu1 %v4969_v3  ;;  %v5023_v2 = vcombine.low %v489_v52, %v493_v54  ;;  %v5025_v3 = vcombine.low %v490_v55, %v494_v56  ;;  %v35_v52 = vld [vmem:[%s7245_s1 + $0x50] sm:$0xff]  ;;  %v6236_v55 = vcombine.low %v6038_v39, %v6038_v39  ;;  %v36_v56 = vld [vmem:[%s7245_s1 + $0x58] sm:$0xff] }
  0xd3   :  { %3298 = vmatprep.subr.bf16.mxu0 %v4976_v4  ;;  %3462 = vmatprep.subr.bf16.mxu1 %v4978_v5  ;;  %v5032_v4 = vcombine.high %v497_v62, %v501_v63  ;;  %v5034_v5 = vcombine.high %v498_v0, %v502_v1  ;;  %v39_v54 = vld [vmem:[%s7245_s1 + $0x70] sm:$0xff] }
  0xd4   :  { %v43_v39 = vld [vmem:[%s7245_s1 + $0x90] sm:$0xff] }
  0xd6   :  { %3299 = vmatpush1.bf16.msra.mxu0 %v4975_v10  ;;  %3463 = vmatpush1.bf16.msra.mxu1 %v4977_v11  ;;  %v5031_v10 = vcombine.low %v497_v62, %v501_v63  ;;  %v5033_v11 = vcombine.low %v498_v0, %v502_v1  ;;  %v47_v63 = vld [vmem:[%s7245_s1 + $0xb0] sm:$0xff]  ;;  %v44_v0 = vld [vmem:[%s7245_s1 + $0x98] sm:$0xff] }
  0xd7   :  { %3300 = vmatprep.subr.bf16.mxu0 %v4984_v13  ;;  %3464 = vmatprep.subr.bf16.mxu1 %v4986_v14  ;;  %v5040_v13 = vcombine.high %v505_v6, %v509_v7  ;;  %v5042_v14 = vcombine.high %v506_v8, %v510_v9  ;;  %v48_v1 = vld [vmem:[%s7245_s1 + $0xb8] sm:$0xff] }
  0xda   :  { %3301 = vmatpush1.bf16.msra.mxu0 %v4983_v19  ;;  %3465 = vmatpush1.bf16.msra.mxu1 %v4985_v20  ;;  %v5039_v19 = vcombine.low %v505_v6, %v509_v7  ;;  %v5041_v20 = vcombine.low %v506_v8, %v510_v9  ;;  %v51_v6 = vld [vmem:[%s7245_s1 + $0xd0] sm:$0xff]  ;;  %v52_v8 = vld [vmem:[%s7245_s1 + $0xd8] sm:$0xff] }
  0xdb   :  { %3302 = vmatprep.subr.bf16.mxu0 %v4992_v23  ;;  %3466 = vmatprep.subr.bf16.mxu1 %v4994_v24  ;;  %v5048_v23 = vcombine.high %v513_v16, %v517_v17  ;;  %v5050_v24 = vcombine.high %v514_v53, %v518_v18  ;;  %v55_v7 = vld [vmem:[%s7245_s1 + $0xf0] sm:$0xff]  ;;  %v56_v9 = vld [vmem:[%s7245_s1 + $0xf8] sm:$0xff] }
  0xde   :  { %3303 = vmatpush1.bf16.msra.mxu0 %v4991_v29  ;;  %3467 = vmatpush1.bf16.msra.mxu1 %v4993_v30  ;;  %v5047_v29 = vcombine.low %v513_v16, %v517_v17  ;;  %v5049_v30 = vcombine.low %v514_v53, %v518_v18  ;;  %v59_v16 = vld [vmem:[%s7245_s1 + $0x110] sm:$0xff]  ;;  %v64_v53 = vld [vmem:[%s7245_s1 + $0x138] sm:$0xff]  ;;  %v4587_v18 = vcombine.low %v51_v6, %v55_v7 }
  0xdf   :  { %3304 = vmatprep.subr.bf16.mxu0 %v5000_v32  ;;  %3468 = vmatprep.subr.bf16.mxu1 %v5002_v33  ;;  %v5056_v32 = vcombine.high %v521_v26, %v525_v27  ;;  %v5058_v33 = vcombine.high %v522_v15, %v526_v28  ;;  %v63_v17 = vld [vmem:[%s7245_s1 + $0x130] sm:$0xff] }
  0xe2   :  { %3305 = vmatpush1.bf16.msra.mxu0 %v4999_v40  ;;  %3469 = vmatpush1.bf16.msra.mxu1 %v5001_v41  ;;  %v5055_v40 = vcombine.low %v521_v26, %v525_v27  ;;  %v5057_v41 = vcombine.low %v522_v15, %v526_v28  ;;  %v71_v26 = vld [vmem:[%s7245_s1 + $0x170] sm:$0xff]  ;;  %v68_v27 = vld [vmem:[%s7245_s1 + $0x158] sm:$0xff]  ;;  %v4595_v28 = vcombine.low %v59_v16, %v63_v17 }
  0xe3   :  { %3306 = vmatprep.subr.bf16.mxu0 %v5008_v25  ;;  %3470 = vmatprep.subr.bf16.mxu1 %v5010_v42  ;;  %v5064_v25 = vcombine.high %v529_v34, %v533_v35  ;;  %v5066_v42 = vcombine.high %v530_v37, %v534_v38  ;;  %v72_v15 = vld [vmem:[%s7245_s1 + $0x178] sm:$0xff] }
  0xe6   :  { %3307 = vmatpush1.bf16.msra.mxu0 %v5007_v48  ;;  %3471 = vmatpush1.bf16.msra.mxu1 %v5009_v49  ;;  %v5063_v48 = vcombine.low %v529_v34, %v533_v35  ;;  %v5065_v49 = vcombine.low %v530_v37, %v534_v38  ;;  %v79_v34 = vld [vmem:[%s7245_s1 + $0x1b0] sm:$0xff]  ;;  %v76_v35 = vld [vmem:[%s7245_s1 + $0x198] sm:$0xff] }
  0xe7   :  { %3308 = vmatprep.subr.bf16.mxu0 %v5016_v50  ;;  %3472 = vmatprep.subr.bf16.mxu1 %v5018_v51  ;;  %v4564_v50 = vcombine.high %v27_v43, %v31_v44  ;;  %v4566_v51 = vcombine.high %v28_v46, %v32_v47  ;;  %v80_v37 = vld [vmem:[%s7245_s1 + $0x1b8] sm:$0xff] }
  0xea   :  { %3309 = vmatpush1.bf16.msra.mxu0 %v5015_v58  ;;  %3473 = vmatpush1.bf16.msra.mxu1 %v5017_v59  ;;  %v40_v58 = vld [vmem:[%s7245_s1 + $0x78] sm:$0xff]  ;;  %v4563_v59 = vcombine.low %v27_v43, %v31_v44  ;;  %v87_v43 = vld [vmem:[%s7245_s1 + $0x1f0] sm:$0xff] }
  0xeb   :  { %3310 = vmatprep.subr.bf16.mxu0 %v5024_v60  ;;  %3474 = vmatprep.subr.bf16.mxu1 %v5026_v61  ;;  %v4565_v60 = vcombine.low %v28_v46, %v32_v47  ;;  %v4572_v61 = vcombine.high %v35_v52, %v39_v54  ;;  %v4574_v62 = vcombine.high %v36_v56, %v40_v58  ;;  %v84_v44 = vld [vmem:[%s7245_s1 + $0x1d8] sm:$0xff] }
  0xec   :  { %v88_v46 = vld [vmem:[%s7245_s1 + $0x1f8] sm:$0xff] }
  0xee   :  { %3311 = vmatpush1.bf16.msra.mxu0 %v5023_v2  ;;  %3475 = vmatpush1.bf16.msra.mxu1 %v5025_v3  ;;  %v4571_v2 = vcombine.low %v35_v52, %v39_v54  ;;  %v4573_v3 = vcombine.low %v36_v56, %v40_v58  ;;  %v95_v52 = vld [vmem:[%s7245_s1 + $0x230] sm:$0xff]  ;;  %v92_v54 = vld [vmem:[%s7245_s1 + $0x218] sm:$0xff] }
  0xef   :  { %3312 = vmatprep.subr.bf16.mxu0 %v5032_v4  ;;  %3476 = vmatprep.subr.bf16.mxu1 %v5034_v5  ;;  %v4580_v4 = vcombine.high %v43_v39, %v47_v63  ;;  %v4582_v5 = vcombine.high %v44_v0, %v48_v1  ;;  %v96_v56 = vld [vmem:[%s7245_s1 + $0x238] sm:$0xff] }
  0xf2   :  { %3313 = vmatpush1.bf16.msra.mxu0 %v5031_v10  ;;  %3477 = vmatpush1.bf16.msra.mxu1 %v5033_v11  ;;  %v4579_v10 = vcombine.low %v43_v39, %v47_v63  ;;  %v4581_v11 = vcombine.low %v44_v0, %v48_v1  ;;  %v103_v39 = vld [vmem:[%s7245_s1 + $0x270] sm:$0xff]  ;;  %v100_v63 = vld [vmem:[%s7245_s1 + $0x258] sm:$0xff] }
  0xf3   :  { %3314 = vmatprep.subr.bf16.mxu0 %v5040_v13  ;;  %3478 = vmatprep.subr.bf16.mxu1 %v5042_v14  ;;  %v4588_v13 = vcombine.high %v51_v6, %v55_v7  ;;  %v4590_v14 = vcombine.high %v52_v8, %v56_v9  ;;  %v104_v0 = vld [vmem:[%s7245_s1 + $0x278] sm:$0xff]  ;;  %v111_v6 = vld [vmem:[%s7245_s1 + $0x2b0] sm:$0xff] }
  0xf4   :  { %v108_v7 = vld [vmem:[%s7245_s1 + $0x298] sm:$0xff] }
  0xf6   :  { %3315 = vmatpush1.bf16.msra.mxu0 %v5039_v19  ;;  %3479 = vmatpush1.bf16.msra.mxu1 %v5041_v20  ;;  %v4589_v19 = vcombine.low %v52_v8, %v56_v9  ;;  %v4596_v20 = vcombine.high %v59_v16, %v63_v17  ;;  %v112_v8 = vld [vmem:[%s7245_s1 + $0x2b8] sm:$0xff]  ;;  %v119_v16 = vld [vmem:[%s7245_s1 + $0x2f0] sm:$0xff] }
  0xf7   :  { %3316 = vmatprep.subr.bf16.mxu0 %v5048_v23  ;;  %3480 = vmatprep.subr.bf16.mxu1 %v5050_v24  ;;  %v67_v24 = vld [vmem:[%s7245_s1 + $0x150] sm:$0xff]  ;;  %v116_v17 = vld [vmem:[%s7245_s1 + $0x2d8] sm:$0xff] }
  0xf8   :  { %v4603_v38 = vcombine.low %v67_v24, %v71_v26 }
  0xfa   :  { %3317 = vmatpush1.bf16.msra.mxu0 %v5047_v29  ;;  %3481 = vmatpush1.bf16.msra.mxu1 %v5049_v30  ;;  %v4604_v30 = vcombine.high %v67_v24, %v71_v26  ;;  %v127_v24 = vld [vmem:[%s7245_s1 + $0x330] sm:$0xff]  ;;  %v124_v26 = vld [vmem:[%s7245_s1 + $0x318] sm:$0xff] }
  0xfb   :  { %3318 = vmatprep.subr.bf16.mxu0 %v5056_v32  ;;  %3482 = vmatprep.subr.bf16.mxu1 %v5058_v33  ;;  %v4606_v32 = vcombine.high %v68_v27, %v72_v15  ;;  %v75_v33 = vld [vmem:[%s7245_s1 + $0x190] sm:$0xff] }
  0xfc   :  { %v4611_v47 = vcombine.low %v75_v33, %v79_v34 }
  0xfe   :  { %3319 = vmatpush1.bf16.msra.mxu0 %v5055_v40  ;;  %3483 = vmatpush1.bf16.msra.mxu1 %v5057_v41  ;;  %v4605_v40 = vcombine.low %v68_v27, %v72_v15  ;;  %v4612_v41 = vcombine.high %v75_v33, %v79_v34  ;;  %v128_v27 = vld [vmem:[%s7245_s1 + $0x338] sm:$0xff]  ;;  %v135_v33 = vld [vmem:[%s7245_s1 + $0x370] sm:$0xff] }
  0xff   :  { %3320 = vmatprep.subr.bf16.mxu0 %v5064_v25  ;;  %3484 = vmatprep.subr.bf16.mxu1 %v5066_v42  ;;  %v4614_v25 = vcombine.high %v76_v35, %v80_v37  ;;  %v83_v42 = vld [vmem:[%s7245_s1 + $0x1d0] sm:$0xff]  ;;  %v132_v34 = vld [vmem:[%s7245_s1 + $0x358] sm:$0xff] }
 0x100   :  { %v4619_v58 = vcombine.low %v83_v42, %v87_v43 }
 0x102   :  { %3321 = vmatpush1.bf16.msra.mxu0 %v5063_v48  ;;  %3485 = vmatpush1.bf16.msra.mxu1 %v5065_v49  ;;  %v4613_v48 = vcombine.low %v76_v35, %v80_v37  ;;  %v4620_v49 = vcombine.high %v83_v42, %v87_v43  ;;  %v136_v35 = vld [vmem:[%s7245_s1 + $0x378] sm:$0xff]  ;;  %v143_v42 = vld [vmem:[%s7245_s1 + $0x3b0] sm:$0xff] }
 0x103   :  { %3495 = vmatprep.subr.bf16.mxu0 %v4564_v50  ;;  %3659 = vmatprep.subr.bf16.mxu1 %v4566_v51  ;;  %v4622_v50 = vcombine.high %v84_v44, %v88_v46  ;;  %v91_v51 = vld [vmem:[%s7245_s1 + $0x210] sm:$0xff]  ;;  %v140_v43 = vld [vmem:[%s7245_s1 + $0x398] sm:$0xff] }
 0x104   :  { %v4627_v1 = vcombine.low %v91_v51, %v95_v52 }
 0x105   :  { %3323 = vmatmul.mubr.bf16.vlgmr.msra.gmra.mrb[0].mxu0 %v6236_v55  ;;  %3487 = vmatmul.mubr.bf16.vlgmr.msra.gmra.mrb[0].mxu1 %v6236_v55 }
 0x106   :  { %3496 = vmatpush1.bf16.msra.mxu0 %v4563_v59  ;;  %3660 = vmatpush1.bf16.msra.mxu1 %v4565_v60  ;;  %v4621_v59 = vcombine.low %v84_v44, %v88_v46  ;;  %v4628_v60 = vcombine.high %v91_v51, %v95_v52  ;;  %v144_v44 = vld [vmem:[%s7245_s1 + $0x3b8] sm:$0xff]  ;;  %v151_v51 = vld [vmem:[%s7245_s1 + $0x3f0] sm:$0xff] }
 0x107   :  { %3497 = vmatprep.subr.bf16.mxu0 %v4572_v61  ;;  %3661 = vmatprep.subr.bf16.mxu1 %v4574_v62  ;;  %v4630_v61 = vcombine.high %v92_v54, %v96_v56  ;;  %v99_v62 = vld [vmem:[%s7245_s1 + $0x250] sm:$0xff]  ;;  %v148_v52 = vld [vmem:[%s7245_s1 + $0x3d8] sm:$0xff] }
 0x108   :  { %3527 = vmatprep.mubr.bf16.mxu0 %v5483_v57  ;;  %3691 = vmatprep.mubr.bf16.mxu1 %v5483_v57  ;;  %v60_v57 = vld [vmem:[%s7245_s1 + $0x118] sm:$0xff]  ;;  %v4635_v9 = vcombine.low %v99_v62, %v103_v39 }
 0x109   :  { %v4598_v23 = vcombine.high %v60_v57, %v64_v53  ;;  %v4597_v29 = vcombine.low %v60_v57, %v64_v53  ;;  %v120_v57 = vld [vmem:[%s7245_s1 + $0x2f8] sm:$0xff] }
 0x10a   :  { %3498 = vmatpush1.bf16.msra.mxu0 %v4571_v2  ;;  %3662 = vmatpush1.bf16.msra.mxu1 %v4573_v3  ;;  %v4629_v2 = vcombine.low %v92_v54, %v96_v56  ;;  %v4636_v3 = vcombine.high %v99_v62, %v103_v39  ;;  %v152_v54 = vld [vmem:[%s7245_s1 + $0x3f8] sm:$0xff]  ;;  %v159_v62 = vld [vmem:[%s7245_s1 + $0x430] sm:$0xff] }
 0x10b   :  { %3499 = vmatprep.subr.bf16.mxu0 %v4580_v4  ;;  %3663 = vmatprep.subr.bf16.mxu1 %v4582_v5  ;;  %v4638_v4 = vcombine.high %v100_v63, %v104_v0  ;;  %v107_v5 = vld [vmem:[%s7245_s1 + $0x290] sm:$0xff]  ;;  %v156_v39 = vld [vmem:[%s7245_s1 + $0x418] sm:$0xff] }
 0x10c   :  { %v4643_v53 = vcombine.low %v107_v5, %v111_v6 }
 0x10e   :  { %3500 = vmatpush1.bf16.msra.mxu0 %v4579_v10  ;;  %3664 = vmatpush1.bf16.msra.mxu1 %v4581_v11  ;;  %v4637_v10 = vcombine.low %v100_v63, %v104_v0  ;;  %v4644_v11 = vcombine.high %v107_v5, %v111_v6  ;;  %v160_v63 = vld [vmem:[%s7245_s1 + $0x438] sm:$0xff]  ;;  %v167_v5 = vld [vmem:[%s7245_s1 + $0x470] sm:$0xff] }
 0x10f   :  { %3501 = vmatprep.subr.bf16.mxu0 %v4588_v13  ;;  %3665 = vmatprep.subr.bf16.mxu1 %v4590_v14  ;;  %v4646_v13 = vcombine.high %v108_v7, %v112_v8  ;;  %v115_v14 = vld [vmem:[%s7245_s1 + $0x2d0] sm:$0xff]  ;;  %v164_v6 = vld [vmem:[%s7245_s1 + $0x458] sm:$0xff] }
 0x110   :  { %v4651_v15 = vcombine.low %v115_v14, %v119_v16 }
 0x112   :  { %3502 = vmatpush1.bf16.msra.mxu0 %v4587_v18  ;;  %3666 = vmatpush1.bf16.msra.mxu1 %v4589_v19  ;;  %v4645_v18 = vcombine.low %v108_v7, %v112_v8  ;;  %v4652_v19 = vcombine.high %v115_v14, %v119_v16  ;;  %v168_v7 = vld [vmem:[%s7245_s1 + $0x478] sm:$0xff]  ;;  %v175_v14 = vld [vmem:[%s7245_s1 + $0x4b0] sm:$0xff] }
 0x113   :  { %3503 = vmatprep.subr.bf16.mxu0 %v4596_v20  ;;  %3667 = vmatprep.subr.bf16.mxu1 %v4598_v23  ;;  %v4654_v20 = vcombine.high %v116_v17, %v120_v57  ;;  %v123_v23 = vld [vmem:[%s7245_s1 + $0x310] sm:$0xff]  ;;  %v172_v16 = vld [vmem:[%s7245_s1 + $0x498] sm:$0xff] }
 0x114   :  { %v4659_v37 = vcombine.low %v123_v23, %v127_v24 }
 0x116   :  { %3504 = vmatpush1.bf16.msra.mxu0 %v4595_v28  ;;  %3668 = vmatpush1.bf16.msra.mxu1 %v4597_v29  ;;  %v4653_v28 = vcombine.low %v116_v17, %v120_v57  ;;  %v4660_v29 = vcombine.high %v123_v23, %v127_v24  ;;  %v176_v17 = vld [vmem:[%s7245_s1 + $0x4b8] sm:$0xff]  ;;  %v183_v23 = vld [vmem:[%s7245_s1 + $0x4f0] sm:$0xff] }
 0x117   :  { %3505 = vmatprep.subr.bf16.mxu0 %v4604_v30  ;;  %3669 = vmatprep.subr.bf16.mxu1 %v4606_v32  ;;  %v4662_v30 = vcombine.high %v124_v26, %v128_v27  ;;  %v131_v32 = vld [vmem:[%s7245_s1 + $0x350] sm:$0xff]  ;;  %v184_v24 = vld [vmem:[%s7245_s1 + $0x4f8] sm:$0xff] }
 0x118   :  { %v4667_v46 = vcombine.low %v131_v32, %v135_v33 }
 0x11a   :  { %3506 = vmatpush1.bf16.msra.mxu0 %v4603_v38  ;;  %3670 = vmatpush1.bf16.msra.mxu1 %v4605_v40  ;;  %v4661_v38 = vcombine.low %v124_v26, %v128_v27  ;;  %v4668_v40 = vcombine.high %v131_v32, %v135_v33  ;;  %v4709_v27 = vcombine.low %v172_v16, %v176_v17  ;;  %v192_v32 = vld [vmem:[%s7245_s1 + $0x538] sm:$0xff] }
 0x11b   :  { %3507 = vmatprep.subr.bf16.mxu0 %v4612_v41  ;;  %3671 = vmatprep.subr.bf16.mxu1 %v4614_v25  ;;  %v4670_v41 = vcombine.high %v132_v34, %v136_v35  ;;  %v139_v25 = vld [vmem:[%s7245_s1 + $0x390] sm:$0xff] }
 0x11c   :  { %v4675_v56 = vcombine.low %v139_v25, %v143_v42 }
 0x11e   :  { %3508 = vmatpush1.bf16.msra.mxu0 %v4611_v47  ;;  %3672 = vmatpush1.bf16.msra.mxu1 %v4613_v48  ;;  %v4669_v47 = vcombine.low %v132_v34, %v136_v35  ;;  %v4676_v48 = vcombine.high %v139_v25, %v143_v42  ;;  %v200_v25 = vld [vmem:[%s7245_s1 + $0x578] sm:$0xff] }
 0x11f   :  { %3509 = vmatprep.subr.bf16.mxu0 %v4620_v49  ;;  %3673 = vmatprep.subr.bf16.mxu1 %v4622_v50  ;;  %v4678_v49 = vcombine.high %v140_v43, %v144_v44  ;;  %v147_v50 = vld [vmem:[%s7245_s1 + $0x3d0] sm:$0xff] }
 0x120   :  { %v4683_v0 = vcombine.low %v147_v50, %v151_v51 }
 0x122   :  { %3510 = vmatpush1.bf16.msra.mxu0 %v4619_v58  ;;  %3674 = vmatpush1.bf16.msra.mxu1 %v4621_v59  ;;  %v4677_v58 = vcombine.low %v140_v43, %v144_v44  ;;  %v4684_v59 = vcombine.high %v147_v50, %v151_v51  ;;  %v208_v50 = vld [vmem:[%s7245_s1 + $0x5b8] sm:$0xff] }
 0x123   :  { %3511 = vmatprep.subr.bf16.mxu0 %v4628_v60  ;;  %3675 = vmatprep.subr.bf16.mxu1 %v4630_v61  ;;  %v4686_v60 = vcombine.high %v148_v52, %v152_v54  ;;  %v155_v61 = vld [vmem:[%s7245_s1 + $0x410] sm:$0xff] }
 0x124   :  { %v4691_v8 = vcombine.low %v155_v61, %v159_v62 }
 0x126   :  { %3512 = vmatpush1.bf16.msra.mxu0 %v4627_v1  ;;  %3676 = vmatpush1.bf16.msra.mxu1 %v4629_v2  ;;  %v4685_v1 = vcombine.low %v148_v52, %v152_v54  ;;  %v4692_v2 = vcombine.high %v155_v61, %v159_v62  ;;  %v216_v61 = vld [vmem:[%s7245_s1 + $0x5f8] sm:$0xff] }
 0x127   :  { %3513 = vmatprep.subr.bf16.mxu0 %v4636_v3  ;;  %3677 = vmatprep.subr.bf16.mxu1 %v4638_v4  ;;  %v4694_v3 = vcombine.high %v156_v39, %v160_v63  ;;  %v163_v4 = vld [vmem:[%s7245_s1 + $0x450] sm:$0xff] }
 0x128   :  { %v4699_v57 = vcombine.low %v163_v4, %v167_v5 }
 0x12a   :  { %3514 = vmatpush1.bf16.msra.mxu0 %v4635_v9  ;;  %3678 = vmatpush1.bf16.msra.mxu1 %v4637_v10  ;;  %v4693_v9 = vcombine.low %v156_v39, %v160_v63  ;;  %v4700_v10 = vcombine.high %v163_v4, %v167_v5  ;;  %v224_v4 = vld [vmem:[%s7245_s1 + $0x638] sm:$0xff] }
 0x12b   :  { %3515 = vmatprep.subr.bf16.mxu0 %v4644_v11  ;;  %3679 = vmatprep.subr.bf16.mxu1 %v4646_v13  ;;  %v4702_v11 = vcombine.high %v164_v6, %v168_v7  ;;  %v171_v13 = vld [vmem:[%s7245_s1 + $0x490] sm:$0xff] }
 0x12c   :  { %v4707_v26 = vcombine.low %v171_v13, %v175_v14 }
 0x12e   :  { %3516 = vmatpush1.bf16.msra.mxu0 %v4643_v53  ;;  %3680 = vmatpush1.bf16.msra.mxu1 %v4645_v18  ;;  %v4701_v53 = vcombine.low %v164_v6, %v168_v7  ;;  %v4708_v18 = vcombine.high %v171_v13, %v175_v14  ;;  %v232_v13 = vld [vmem:[%s7245_s1 + $0x678] sm:$0xff] }
 0x12f   :  { %3517 = vmatprep.subr.bf16.mxu0 %v4652_v19  ;;  %3681 = vmatprep.subr.bf16.mxu1 %v4654_v20  ;;  %v4710_v19 = vcombine.high %v172_v16, %v176_v17  ;;  %v179_v20 = vld [vmem:[%s7245_s1 + $0x4d0] sm:$0xff] }
 0x130   :  { %v4715_v33 = vcombine.low %v179_v20, %v183_v23 }
 0x132   :  { %3518 = vmatpush1.bf16.msra.mxu0 %v4651_v15  ;;  %3682 = vmatpush1.bf16.msra.mxu1 %v4653_v28  ;;  %v4716_v15 = vcombine.high %v179_v20, %v183_v23  ;;  %v240_v20 = vld [vmem:[%s7245_s1 + $0x6b8] sm:$0xff] }
 0x133   :  { %3519 = vmatprep.subr.bf16.mxu0 %v4660_v29  ;;  %3683 = vmatprep.subr.bf16.mxu1 %v4662_v30  ;;  %v187_v29 = vld [vmem:[%s7245_s1 + $0x510] sm:$0xff] }
 0x134   :  { %v191_v30 = vld [vmem:[%s7245_s1 + $0x530] sm:$0xff] }
 0x135   :  { %v4724_v35 = vcombine.high %v187_v29, %v191_v30  ;;  %v4723_v42 = vcombine.low %v187_v29, %v191_v30  ;;  %v248_v29 = vld [vmem:[%s7245_s1 + $0x6f8] sm:$0xff] }
 0x136   :  { %3520 = vmatpush1.bf16.msra.mxu0 %v4659_v37  ;;  %3684 = vmatpush1.bf16.msra.mxu1 %v4661_v38  ;;  %v195_v38 = vld [vmem:[%s7245_s1 + $0x550] sm:$0xff] }
 0x137   :  { %3521 = vmatprep.subr.bf16.mxu0 %v4668_v40  ;;  %3685 = vmatprep.subr.bf16.mxu1 %v4670_v41  ;;  %v199_v40 = vld [vmem:[%s7245_s1 + $0x570] sm:$0xff]  ;;  %v196_v41 = vld [vmem:[%s7245_s1 + $0x558] sm:$0xff] }
 0x138   :  { %v4732_v44 = vcombine.high %v195_v38, %v199_v40  ;;  %v4731_v51 = vcombine.low %v195_v38, %v199_v40  ;;  %v4733_v52 = vcombine.low %v196_v41, %v200_v25  ;;  %v256_v38 = vld [vmem:[%s7245_s1 + $0x738] sm:$0xff] }
 0x13a   :  { %3522 = vmatpush1.bf16.msra.mxu0 %v4667_v46  ;;  %3686 = vmatpush1.bf16.msra.mxu1 %v4669_v47  ;;  %v4734_v46 = vcombine.high %v196_v41, %v200_v25  ;;  %v203_v47 = vld [vmem:[%s7245_s1 + $0x590] sm:$0xff] }
 0x13b   :  { %3523 = vmatprep.subr.bf16.mxu0 %v4676_v48  ;;  %3687 = vmatprep.subr.bf16.mxu1 %v4678_v49  ;;  %v207_v48 = vld [vmem:[%s7245_s1 + $0x5b0] sm:$0xff]  ;;  %v204_v49 = vld [vmem:[%s7245_s1 + $0x598] sm:$0xff] }
 0x13c   :  { %v4740_v54 = vcombine.high %v203_v47, %v207_v48  ;;  %v4739_v62 = vcombine.low %v203_v47, %v207_v48  ;;  %v4741_v39 = vcombine.low %v204_v49, %v208_v50  ;;  %v264_v47 = vld [vmem:[%s7245_s1 + $0x778] sm:$0xff] }
 0x13e   :  { %3524 = vmatpush1.bf16.msra.mxu0 %v4675_v56  ;;  %3688 = vmatpush1.bf16.msra.mxu1 %v4677_v58  ;;  %v4742_v56 = vcombine.high %v204_v49, %v208_v50  ;;  %v211_v58 = vld [vmem:[%s7245_s1 + $0x5d0] sm:$0xff] }
 0x13f   :  { %3525 = vmatprep.subr.bf16.mxu0 %v4684_v59  ;;  %3689 = vmatprep.subr.bf16.mxu1 %v4686_v60  ;;  %v215_v59 = vld [vmem:[%s7245_s1 + $0x5f0] sm:$0xff]  ;;  %v212_v60 = vld [vmem:[%s7245_s1 + $0x5d8] sm:$0xff] }
 0x140   :  { %v4748_v63 = vcombine.high %v211_v58, %v215_v59  ;;  %v4747_v5 = vcombine.low %v211_v58, %v215_v59  ;;  %v4749_v6 = vcombine.low %v212_v60, %v216_v61  ;;  %v272_v58 = vld [vmem:[%s7245_s1 + $0x7b8] sm:$0xff] }
 0x142   :  { %3526 = vmatpush1.bf16.msra.mxu0 %v4683_v0  ;;  %3690 = vmatpush1.bf16.msra.mxu1 %v4685_v1  ;;  %v4750_v0 = vcombine.high %v212_v60, %v216_v61  ;;  %v219_v1 = vld [vmem:[%s7245_s1 + $0x610] sm:$0xff] }
 0x143   :  { %3536 = vmatprep.subr.bf16.mxu0 %v4692_v2  ;;  %3700 = vmatprep.subr.bf16.mxu1 %v4694_v3  ;;  %v223_v2 = vld [vmem:[%s7245_s1 + $0x630] sm:$0xff]  ;;  %v220_v3 = vld [vmem:[%s7245_s1 + $0x618] sm:$0xff] }
 0x144   :  { %v4756_v7 = vcombine.high %v219_v1, %v223_v2  ;;  %v4755_v14 = vcombine.low %v219_v1, %v223_v2  ;;  %v4757_v16 = vcombine.low %v220_v3, %v224_v4  ;;  %v280_v1 = vld [vmem:[%s7245_s1 + $0x7f8] sm:$0xff] }
 0x145   :  { %3528 = vmatmul.mubr.bf16.vlgmr.msra.gmra.mrb[4].mxu0 %v5609_v12  ;;  %3692 = vmatmul.mubr.bf16.vlgmr.msra.gmra.mrb[4].mxu1 %v5609_v12  ;;  %v180_v12 = vld [vmem:[%s7245_s1 + $0x4d8] sm:$0xff] }
 0x146   :  { %3537 = vmatpush1.bf16.msra.mxu0 %v4691_v8  ;;  %3701 = vmatpush1.bf16.msra.mxu1 %v4693_v9  ;;  %v4718_v28 = vcombine.high %v180_v12, %v184_v24  ;;  %v4717_v34 = vcombine.low %v180_v12, %v184_v24  ;;  %v4758_v8 = vcombine.high %v220_v3, %v224_v4  ;;  %v227_v9 = vld [vmem:[%s7245_s1 + $0x650] sm:$0xff] }
 0x147   :  { %3538 = vmatprep.subr.bf16.mxu0 %v4700_v10  ;;  %3702 = vmatprep.subr.bf16.mxu1 %v4702_v11  ;;  %v231_v10 = vld [vmem:[%s7245_s1 + $0x670] sm:$0xff]  ;;  %v228_v11 = vld [vmem:[%s7245_s1 + $0x658] sm:$0xff] }
 0x148   :  { %3568 = vmatprep.mubr.bf16.mxu0 %v5630_v21  ;;  %3732 = vmatprep.mubr.bf16.mxu1 %v5630_v21  ;;  %v188_v21 = vld [vmem:[%s7245_s1 + $0x518] sm:$0xff]  ;;  %v4764_v17 = vcombine.high %v227_v9, %v231_v10  ;;  %v4763_v23 = vcombine.low %v227_v9, %v231_v10  ;;  %v4765_v12 = vcombine.low %v228_v11, %v232_v13 }
 0x149   :  { %v4726_v37 = vcombine.high %v188_v21, %v192_v32  ;;  %v4725_v43 = vcombine.low %v188_v21, %v192_v32  ;;  %v288_v9 = vld [vmem:[%s7245_s1 + $0x838] sm:$0xff] }
 0x14a   :  { %3539 = vmatpush1.bf16.msra.mxu0 %v4699_v57  ;;  %3703 = vmatpush1.bf16.msra.mxu1 %v4701_v53  ;;  %v4766_v57 = vcombine.high %v228_v11, %v232_v13  ;;  %v235_v53 = vld [vmem:[%s7245_s1 + $0x690] sm:$0xff] }
 0x14b   :  { %3540 = vmatprep.subr.bf16.mxu0 %v4708_v18  ;;  %3704 = vmatprep.subr.bf16.mxu1 %v4710_v19  ;;  %v239_v18 = vld [vmem:[%s7245_s1 + $0x6b0] sm:$0xff]  ;;  %v236_v19 = vld [vmem:[%s7245_s1 + $0x698] sm:$0xff] }
 0x14c   :  { %v4772_v24 = vcombine.high %v235_v53, %v239_v18  ;;  %v4771_v30 = vcombine.low %v235_v53, %v239_v18  ;;  %v4773_v21 = vcombine.low %v236_v19, %v240_v20  ;;  %v296_v53 = vld [vmem:[%s7245_s1 + $0x878] sm:$0xff] }
 0x14e   :  { %3541 = vmatpush1.bf16.msra.mxu0 %v4707_v26  ;;  %3705 = vmatpush1.bf16.msra.mxu1 %v4709_v27  ;;  %v4774_v26 = vcombine.high %v236_v19, %v240_v20  ;;  %v243_v27 = vld [vmem:[%s7245_s1 + $0x6d0] sm:$0xff] }
 0x14f   :  { %3542 = vmatprep.subr.bf16.mxu0 %v4716_v15  ;;  %3706 = vmatprep.subr.bf16.mxu1 %v4718_v28  ;;  %v247_v15 = vld [vmem:[%s7245_s1 + $0x6f0] sm:$0xff]  ;;  %v244_v28 = vld [vmem:[%s7245_s1 + $0x6d8] sm:$0xff] }
 0x150   :  { %v4780_v32 = vcombine.high %v243_v27, %v247_v15  ;;  %v4779_v40 = vcombine.low %v243_v27, %v247_v15  ;;  %v4781_v41 = vcombine.low %v244_v28, %v248_v29  ;;  %v304_v27 = vld [vmem:[%s7245_s1 + $0x8b8] sm:$0xff] }
 0x152   :  { %3543 = vmatpush1.bf16.msra.mxu0 %v4715_v33  ;;  %3707 = vmatpush1.bf16.msra.mxu1 %v4717_v34  ;;  %v4782_v33 = vcombine.high %v244_v28, %v248_v29  ;;  %v251_v34 = vld [vmem:[%s7245_s1 + $0x710] sm:$0xff] }
 0x153   :  { %3544 = vmatprep.subr.bf16.mxu0 %v4724_v35  ;;  %3708 = vmatprep.subr.bf16.mxu1 %v4726_v37  ;;  %v255_v35 = vld [vmem:[%s7245_s1 + $0x730] sm:$0xff]  ;;  %v252_v37 = vld [vmem:[%s7245_s1 + $0x718] sm:$0xff] }
 0x154   :  { %v4788_v25 = vcombine.high %v251_v34, %v255_v35  ;;  %v4787_v48 = vcombine.low %v251_v34, %v255_v35  ;;  %v4789_v49 = vcombine.low %v252_v37, %v256_v38  ;;  %v307_v28 = vld [vmem:[%s7245_s1 + $0x8d0] sm:$0xff] }
 0x155   :  { %v315_v35 = vld [vmem:[%s7245_s1 + $0x910] sm:$0xff] }
 0x156   :  { %3545 = vmatpush1.bf16.msra.mxu0 %v4723_v42  ;;  %3709 = vmatpush1.bf16.msra.mxu1 %v4725_v43  ;;  %v4790_v42 = vcombine.high %v252_v37, %v256_v38  ;;  %v259_v43 = vld [vmem:[%s7245_s1 + $0x750] sm:$0xff] }
 0x157   :  { %3546 = vmatprep.subr.bf16.mxu0 %v4732_v44  ;;  %3710 = vmatprep.subr.bf16.mxu1 %v4734_v46  ;;  %v263_v44 = vld [vmem:[%s7245_s1 + $0x770] sm:$0xff]  ;;  %v260_v46 = vld [vmem:[%s7245_s1 + $0x758] sm:$0xff] }
 0x158   :  { %v4796_v50 = vcombine.high %v259_v43, %v263_v44  ;;  %v4795_v59 = vcombine.low %v259_v43, %v263_v44  ;;  %v4797_v60 = vcombine.low %v260_v46, %v264_v47  ;;  %v323_v43 = vld [vmem:[%s7245_s1 + $0x950] sm:$0xff] }
 0x15a   :  { %3547 = vmatpush1.bf16.msra.mxu0 %v4731_v51  ;;  %3711 = vmatpush1.bf16.msra.mxu1 %v4733_v52  ;;  %v4798_v51 = vcombine.high %v260_v46, %v264_v47  ;;  %v267_v52 = vld [vmem:[%s7245_s1 + $0x790] sm:$0xff] }
 0x15b   :  { %3548 = vmatprep.subr.bf16.mxu0 %v4740_v54  ;;  %3712 = vmatprep.subr.bf16.mxu1 %v4742_v56  ;;  %v271_v54 = vld [vmem:[%s7245_s1 + $0x7b0] sm:$0xff]  ;;  %v268_v56 = vld [vmem:[%s7245_s1 + $0x798] sm:$0xff] }
 0x15c   :  { %v4804_v61 = vcombine.high %v267_v52, %v271_v54  ;;  %v4803_v2 = vcombine.low %v267_v52, %v271_v54  ;;  %v4805_v3 = vcombine.low %v268_v56, %v272_v58  ;;  %v327_v47 = vld [vmem:[%s7245_s1 + $0x970] sm:$0xff] }
 0x15d   :  { %v331_v52 = vld [vmem:[%s7245_s1 + $0x990] sm:$0xff] }
 0x15e   :  { %3549 = vmatpush1.bf16.msra.mxu0 %v4739_v62  ;;  %3713 = vmatpush1.bf16.msra.mxu1 %v4741_v39  ;;  %v4806_v62 = vcombine.high %v268_v56, %v272_v58  ;;  %v275_v39 = vld [vmem:[%s7245_s1 + $0x7d0] sm:$0xff]  ;;  %v4860_v56 = vcombine.high %v323_v43, %v327_v47 }
 0x15f   :  { %3550 = vmatprep.subr.bf16.mxu0 %v4748_v63  ;;  %3714 = vmatprep.subr.bf16.mxu1 %v4750_v0  ;;  %v279_v63 = vld [vmem:[%s7245_s1 + $0x7f0] sm:$0xff]  ;;  %v276_v0 = vld [vmem:[%s7245_s1 + $0x7d8] sm:$0xff] }
 0x160   :  { %v4812_v4 = vcombine.high %v275_v39, %v279_v63  ;;  %v4811_v10 = vcombine.low %v275_v39, %v279_v63  ;;  %v4813_v11 = vcombine.low %v276_v0, %v280_v1  ;;  %v335_v58 = vld [vmem:[%s7245_s1 + $0x9b0] sm:$0xff] }
 0x161   :  { %v339_v39 = vld [vmem:[%s7245_s1 + $0x9d0] sm:$0xff] }
 0x162   :  { %3551 = vmatpush1.bf16.msra.mxu0 %v4747_v5  ;;  %3715 = vmatpush1.bf16.msra.mxu1 %v4749_v6  ;;  %v4814_v5 = vcombine.high %v276_v0, %v280_v1  ;;  %v283_v6 = vld [vmem:[%s7245_s1 + $0x810] sm:$0xff]  ;;  %v4868_v0 = vcombine.high %v331_v52, %v335_v58 }
 0x163   :  { %3552 = vmatprep.subr.bf16.mxu0 %v4756_v7  ;;  %3716 = vmatprep.subr.bf16.mxu1 %v4758_v8  ;;  %v287_v7 = vld [vmem:[%s7245_s1 + $0x830] sm:$0xff]  ;;  %v284_v8 = vld [vmem:[%s7245_s1 + $0x818] sm:$0xff] }
 0x164   :  { %v4820_v13 = vcombine.high %v283_v6, %v287_v7  ;;  %v4819_v18 = vcombine.low %v283_v6, %v287_v7  ;;  %v4821_v19 = vcombine.low %v284_v8, %v288_v9  ;;  %v343_v1 = vld [vmem:[%s7245_s1 + $0x9f0] sm:$0xff] }
 0x165   :  { %v347_v6 = vld [vmem:[%s7245_s1 + $0xa10] sm:$0xff] }
 0x166   :  { %3553 = vmatpush1.bf16.msra.mxu0 %v4755_v14  ;;  %3717 = vmatpush1.bf16.msra.mxu1 %v4757_v16  ;;  %v4822_v14 = vcombine.high %v284_v8, %v288_v9  ;;  %v291_v16 = vld [vmem:[%s7245_s1 + $0x850] sm:$0xff]  ;;  %v4876_v8 = vcombine.high %v339_v39, %v343_v1 }
 0x167   :  { %3554 = vmatprep.subr.bf16.mxu0 %v4764_v17  ;;  %3718 = vmatprep.subr.bf16.mxu1 %v4766_v57  ;;  %v295_v17 = vld [vmem:[%s7245_s1 + $0x870] sm:$0xff]  ;;  %v292_v57 = vld [vmem:[%s7245_s1 + $0x858] sm:$0xff] }
 0x168   :  { %v4828_v20 = vcombine.high %v291_v16, %v295_v17  ;;  %v4827_v15 = vcombine.low %v291_v16, %v295_v17  ;;  %v4829_v29 = vcombine.low %v292_v57, %v296_v53  ;;  %v351_v9 = vld [vmem:[%s7245_s1 + $0xa30] sm:$0xff] }
 0x169   :  { %v355_v16 = vld [vmem:[%s7245_s1 + $0xa50] sm:$0xff] }
 0x16a   :  { %3555 = vmatpush1.bf16.msra.mxu0 %v4763_v23  ;;  %3719 = vmatpush1.bf16.msra.mxu1 %v4765_v12  ;;  %v299_v23 = vld [vmem:[%s7245_s1 + $0x890] sm:$0xff] }
 0x16b   :  { %3556 = vmatprep.subr.bf16.mxu0 %v4772_v24  ;;  %3720 = vmatprep.subr.bf16.mxu1 %v4774_v26  ;;  %v303_v12 = vld [vmem:[%s7245_s1 + $0x8b0] sm:$0xff]  ;;  %v4830_v24 = vcombine.high %v292_v57, %v296_v53  ;;  %v300_v26 = vld [vmem:[%s7245_s1 + $0x898] sm:$0xff]  ;;  %v4884_v57 = vcombine.high %v347_v6, %v351_v9 }
 0x16c   :  { %v4835_v34 = vcombine.low %v299_v23, %v303_v12  ;;  %v4837_v37 = vcombine.low %v300_v26, %v304_v27  ;;  %v359_v53 = vld [vmem:[%s7245_s1 + $0xa70] sm:$0xff] }
 0x16e   :  { %3557 = vmatpush1.bf16.msra.mxu0 %v4771_v30  ;;  %3721 = vmatpush1.bf16.msra.mxu1 %v4773_v21  ;;  %v4836_v30 = vcombine.high %v299_v23, %v303_v12  ;;  %v311_v21 = vld [vmem:[%s7245_s1 + $0x8f0] sm:$0xff]  ;;  %v4883_v23 = vcombine.low %v347_v6, %v351_v9  ;;  %v404_v6 = vld [vmem:[%s7245_s1 + $0xbd8] sm:$0xff] }
 0x16f   :  { %3558 = vmatprep.subr.bf16.mxu0 %v4780_v32  ;;  %3722 = vmatprep.subr.bf16.mxu1 %v4782_v33  ;;  %v4838_v32 = vcombine.high %v300_v26, %v304_v27  ;;  %v308_v33 = vld [vmem:[%s7245_s1 + $0x8d8] sm:$0xff]  ;;  %v4844_v38 = vcombine.high %v307_v28, %v311_v21  ;;  %v363_v12 = vld [vmem:[%s7245_s1 + $0xa90] sm:$0xff]  ;;  %v4892_v27 = vcombine.high %v355_v16, %v359_v53 }
 0x170   :  { %v411_v9 = vld [vmem:[%s7245_s1 + $0xc10] sm:$0xff] }
 0x172   :  { %3559 = vmatpush1.bf16.msra.mxu0 %v4779_v40  ;;  %3723 = vmatpush1.bf16.msra.mxu1 %v4781_v41  ;;  %v319_v40 = vld [vmem:[%s7245_s1 + $0x930] sm:$0xff] }
 0x173   :  { %3560 = vmatprep.subr.bf16.mxu0 %v4788_v25  ;;  %3724 = vmatprep.subr.bf16.mxu1 %v4790_v42  ;;  %v320_v25 = vld [vmem:[%s7245_s1 + $0x938] sm:$0xff]  ;;  %v4843_v42 = vcombine.low %v307_v28, %v311_v21  ;;  %v4852_v46 = vcombine.high %v315_v35, %v319_v40  ;;  %v371_v21 = vld [vmem:[%s7245_s1 + $0xad0] sm:$0xff] }
 0x174   :  { %v368_v28 = vld [vmem:[%s7245_s1 + $0xab8] sm:$0xff] }
 0x176   :  { %3561 = vmatpush1.bf16.msra.mxu0 %v4787_v48  ;;  %3725 = vmatpush1.bf16.msra.mxu1 %v4789_v49  ;;  %v324_v49 = vld [vmem:[%s7245_s1 + $0x958] sm:$0xff] }
 0x177   :  { %3562 = vmatprep.subr.bf16.mxu0 %v4796_v50  ;;  %3726 = vmatprep.subr.bf16.mxu1 %v4798_v51  ;;  %v328_v50 = vld [vmem:[%s7245_s1 + $0x978] sm:$0xff]  ;;  %v4851_v51 = vcombine.low %v315_v35, %v319_v40  ;;  %v379_v40 = vld [vmem:[%s7245_s1 + $0xb10] sm:$0xff] }
 0x178   :  { %v4861_v63 = vcombine.low %v324_v49, %v328_v50  ;;  %v372_v35 = vld [vmem:[%s7245_s1 + $0xad8] sm:$0xff] }
 0x17a   :  { %3563 = vmatpush1.bf16.msra.mxu0 %v4795_v59  ;;  %3727 = vmatpush1.bf16.msra.mxu1 %v4797_v60  ;;  %v4862_v59 = vcombine.high %v324_v49, %v328_v50  ;;  %v332_v60 = vld [vmem:[%s7245_s1 + $0x998] sm:$0xff]  ;;  %v391_v50 = vld [vmem:[%s7245_s1 + $0xb70] sm:$0xff] }
 0x17b   :  { %3564 = vmatprep.subr.bf16.mxu0 %v4804_v61  ;;  %3728 = vmatprep.subr.bf16.mxu1 %v4806_v62  ;;  %v336_v61 = vld [vmem:[%s7245_s1 + $0x9b8] sm:$0xff]  ;;  %v4859_v62 = vcombine.low %v323_v43, %v327_v47  ;;  %v387_v47 = vld [vmem:[%s7245_s1 + $0xb50] sm:$0xff] }
 0x17c   :  { %v4869_v7 = vcombine.low %v332_v60, %v336_v61  ;;  %v380_v43 = vld [vmem:[%s7245_s1 + $0xb18] sm:$0xff] }
 0x17e   :  { %3565 = vmatpush1.bf16.msra.mxu0 %v4803_v2  ;;  %3729 = vmatpush1.bf16.msra.mxu1 %v4805_v3  ;;  %v4870_v2 = vcombine.high %v332_v60, %v336_v61  ;;  %v340_v3 = vld [vmem:[%s7245_s1 + $0x9d8] sm:$0xff]  ;;  %v4924_v60 = vcombine.high %v387_v47, %v391_v50  ;;  %v399_v61 = vld [vmem:[%s7245_s1 + $0xbb0] sm:$0xff] }
 0x17f   :  { %3566 = vmatprep.subr.bf16.mxu0 %v4812_v4  ;;  %3730 = vmatprep.subr.bf16.mxu1 %v4814_v5  ;;  %v344_v4 = vld [vmem:[%s7245_s1 + $0x9f8] sm:$0xff]  ;;  %v4867_v5 = vcombine.low %v331_v52, %v335_v58  ;;  %v395_v58 = vld [vmem:[%s7245_s1 + $0xb90] sm:$0xff] }
 0x180   :  { %v4877_v17 = vcombine.low %v340_v3, %v344_v4  ;;  %v388_v52 = vld [vmem:[%s7245_s1 + $0xb58] sm:$0xff] }
 0x182   :  { %3567 = vmatpush1.bf16.msra.mxu0 %v4811_v10  ;;  %3731 = vmatpush1.bf16.msra.mxu1 %v4813_v11  ;;  %v4878_v10 = vcombine.high %v340_v3, %v344_v4  ;;  %v348_v11 = vld [vmem:[%s7245_s1 + $0xa18] sm:$0xff]  ;;  %v4932_v3 = vcombine.high %v395_v58, %v399_v61  ;;  %v407_v4 = vld [vmem:[%s7245_s1 + $0xbf0] sm:$0xff] }
 0x183   :  { %3577 = vmatprep.subr.bf16.mxu0 %v4820_v13  ;;  %3741 = vmatprep.subr.bf16.mxu1 %v4822_v14  ;;  %v352_v13 = vld [vmem:[%s7245_s1 + $0xa38] sm:$0xff]  ;;  %v4875_v14 = vcombine.low %v339_v39, %v343_v1  ;;  %v403_v1 = vld [vmem:[%s7245_s1 + $0xbd0] sm:$0xff] }
 0x184   :  { %v4885_v26 = vcombine.low %v348_v11, %v352_v13  ;;  %v396_v39 = vld [vmem:[%s7245_s1 + $0xb98] sm:$0xff] }
 0x185   :  { %3569 = vmatmul.mubr.bf16.vlgmr.msra.gmra.mrb[4].mxu0 %v5818_v22  ;;  %3733 = vmatmul.mubr.bf16.vlgmr.msra.gmra.mrb[4].mxu1 %v5818_v22  ;;  %v312_v22 = vld [vmem:[%s7245_s1 + $0x8f8] sm:$0xff] }
 0x186   :  { %3578 = vmatpush1.bf16.msra.mxu0 %v4819_v18  ;;  %3742 = vmatpush1.bf16.msra.mxu1 %v4821_v19  ;;  %v4846_v41 = vcombine.high %v308_v33, %v312_v22  ;;  %v4845_v44 = vcombine.low %v308_v33, %v312_v22  ;;  %v4886_v18 = vcombine.high %v348_v11, %v352_v13  ;;  %v356_v19 = vld [vmem:[%s7245_s1 + $0xa58] sm:$0xff]  ;;  %v375_v22 = vld [vmem:[%s7245_s1 + $0xaf0] sm:$0xff] }
 0x187   :  { %3579 = vmatprep.subr.bf16.mxu0 %v4828_v20  ;;  %3743 = vmatprep.subr.bf16.mxu1 %v4830_v24  ;;  %v360_v20 = vld [vmem:[%s7245_s1 + $0xa78] sm:$0xff]  ;;  %v367_v24 = vld [vmem:[%s7245_s1 + $0xab0] sm:$0xff]  ;;  %v4940_v13 = vcombine.high %v403_v1, %v407_v4 }
 0x188   :  { %3609 = vmatprep.mubr.bf16.mxu0 %v5839_v31  ;;  %3773 = vmatprep.mubr.bf16.mxu1 %v5839_v31  ;;  %v316_v31 = vld [vmem:[%s7245_s1 + $0x918] sm:$0xff]  ;;  %v4900_v33 = vcombine.high %v363_v12, %v367_v24 }
 0x189   :  { %v4854_v48 = vcombine.high %v316_v31, %v320_v25  ;;  %v4853_v54 = vcombine.low %v316_v31, %v320_v25  ;;  %v4908_v31 = vcombine.high %v371_v21, %v375_v22  ;;  %v383_v25 = vld [vmem:[%s7245_s1 + $0xb30] sm:$0xff] }
 0x18a   :  { %3580 = vmatpush1.bf16.msra.mxu0 %v4827_v15  ;;  %3744 = vmatpush1.bf16.msra.mxu1 %v4829_v29  ;;  %v364_v15 = vld [vmem:[%s7245_s1 + $0xa98] sm:$0xff]  ;;  %v4894_v29 = vcombine.high %v356_v19, %v360_v20  ;;  %v4916_v49 = vcombine.high %v379_v40, %v383_v25 }
 0x18b   :  { %3581 = vmatprep.subr.bf16.mxu0 %v4836_v30  ;;  %3745 = vmatprep.subr.bf16.mxu1 %v4838_v32  ;;  %v4891_v30 = vcombine.low %v355_v16, %v359_v53  ;;  %v4893_v32 = vcombine.low %v356_v19, %v360_v20  ;;  %v416_v16 = vld [vmem:[%s7245_s1 + $0xc38] sm:$0xff]  ;;  %v419_v53 = vld [vmem:[%s7245_s1 + $0xc50] sm:$0xff] }
 0x18e   :  { %3582 = vmatpush1.bf16.msra.mxu0 %v4835_v34  ;;  %3746 = vmatpush1.bf16.msra.mxu1 %v4837_v37  ;;  %v4902_v34 = vcombine.high %v364_v15, %v368_v28  ;;  %v376_v37 = vld [vmem:[%s7245_s1 + $0xaf8] sm:$0xff] }
 0x18f   :  { %3583 = vmatprep.subr.bf16.mxu0 %v4844_v38  ;;  %3747 = vmatprep.subr.bf16.mxu1 %v4846_v41  ;;  %v4899_v38 = vcombine.low %v363_v12, %v367_v24  ;;  %v4901_v41 = vcombine.low %v364_v15, %v368_v28  ;;  %v420_v12 = vld [vmem:[%s7245_s1 + $0xc58] sm:$0xff] }
 0x190   :  { %v424_v24 = vld [vmem:[%s7245_s1 + $0xc78] sm:$0xff] }
 0x191   :  { %v4958_v28 = vcombine.high %v420_v12, %v424_v24 }
 0x192   :  { %3584 = vmatpush1.bf16.msra.mxu0 %v4843_v42  ;;  %3748 = vmatpush1.bf16.msra.mxu1 %v4845_v44  ;;  %v4910_v42 = vcombine.high %v372_v35, %v376_v37  ;;  %v384_v44 = vld [vmem:[%s7245_s1 + $0xb38] sm:$0xff] }
 0x193   :  { %3585 = vmatprep.subr.bf16.mxu0 %v4852_v46  ;;  %3749 = vmatprep.subr.bf16.mxu1 %v4854_v48  ;;  %v4907_v46 = vcombine.low %v371_v21, %v375_v22  ;;  %v4909_v48 = vcombine.low %v372_v35, %v376_v37  ;;  %v428_v21 = vld [vmem:[%s7245_s1 + $0xc98] sm:$0xff]  ;;  %v4957_v22 = vcombine.low %v420_v12, %v424_v24  ;;  %v435_v37 = vld [vmem:[%s7245_s1 + $0xcd0] sm:$0xff] }
 0x194   :  { %v479_v12 = vld [vmem:[%s7245_s1 + $0xe30] sm:$0xff]  ;;  %v476_v24 = vld [vmem:[%s7245_s1 + $0xe18] sm:$0xff] }
 0x196   :  { %3586 = vmatpush1.bf16.msra.mxu0 %v4851_v51  ;;  %3750 = vmatpush1.bf16.msra.mxu1 %v4853_v54  ;;  %v4918_v51 = vcombine.high %v380_v43, %v384_v44  ;;  %v392_v54 = vld [vmem:[%s7245_s1 + $0xb78] sm:$0xff] }
 0x197   :  { %3587 = vmatprep.subr.bf16.mxu0 %v4860_v56  ;;  %3751 = vmatprep.subr.bf16.mxu1 %v4862_v59  ;;  %v4915_v56 = vcombine.low %v379_v40, %v383_v25  ;;  %v4917_v59 = vcombine.low %v380_v43, %v384_v44  ;;  %v440_v40 = vld [vmem:[%s7245_s1 + $0xcf8] sm:$0xff]  ;;  %v443_v43 = vld [vmem:[%s7245_s1 + $0xd10] sm:$0xff] }
 0x198   :  { %v447_v44 = vld [vmem:[%s7245_s1 + $0xd30] sm:$0xff] }
 0x19a   :  { %3588 = vmatpush1.bf16.msra.mxu0 %v4859_v62  ;;  %3752 = vmatpush1.bf16.msra.mxu1 %v4861_v63  ;;  %v4926_v62 = vcombine.high %v388_v52, %v392_v54  ;;  %v400_v63 = vld [vmem:[%s7245_s1 + $0xbb8] sm:$0xff] }
 0x19b   :  { %3589 = vmatprep.subr.bf16.mxu0 %v4868_v0  ;;  %3753 = vmatprep.subr.bf16.mxu1 %v4870_v2  ;;  %v4923_v0 = vcombine.low %v387_v47, %v391_v50  ;;  %v4925_v2 = vcombine.low %v388_v52, %v392_v54  ;;  %v4933_v11 = vcombine.low %v396_v39, %v400_v63  ;;  %v455_v52 = vld [vmem:[%s7245_s1 + $0xd70] sm:$0xff]  ;;  %v452_v54 = vld [vmem:[%s7245_s1 + $0xd58] sm:$0xff] }
 0x19e   :  { %3590 = vmatpush1.bf16.msra.mxu0 %v4867_v5  ;;  %3754 = vmatpush1.bf16.msra.mxu1 %v4869_v7  ;;  %v4934_v5 = vcombine.high %v396_v39, %v400_v63  ;;  %v408_v7 = vld [vmem:[%s7245_s1 + $0xbf8] sm:$0xff]  ;;  %v463_v39 = vld [vmem:[%s7245_s1 + $0xdb0] sm:$0xff] }
 0x19f   :  { %3591 = vmatprep.subr.bf16.mxu0 %v4876_v8  ;;  %3755 = vmatprep.subr.bf16.mxu1 %v4878_v10  ;;  %v4931_v8 = vcombine.low %v395_v58, %v399_v61  ;;  %v415_v10 = vld [vmem:[%s7245_s1 + $0xc30] sm:$0xff]  ;;  %v4941_v19 = vcombine.low %v404_v6, %v408_v7  ;;  %v4979_v58 = vcombine.low %v443_v43, %v447_v44  ;;  %v460_v63 = vld [vmem:[%s7245_s1 + $0xd98] sm:$0xff] }
 0x1a0   :  { %v4948_v20 = vcombine.high %v411_v9, %v415_v10 }
 0x1a2   :  { %3592 = vmatpush1.bf16.msra.mxu0 %v4875_v14  ;;  %3756 = vmatpush1.bf16.msra.mxu1 %v4877_v17  ;;  %v412_v14 = vld [vmem:[%s7245_s1 + $0xc18] sm:$0xff]  ;;  %v4942_v17 = vcombine.high %v404_v6, %v408_v7  ;;  %v467_v6 = vld [vmem:[%s7245_s1 + $0xdd0] sm:$0xff] }
 0x1a3   :  { %3593 = vmatprep.subr.bf16.mxu0 %v4884_v57  ;;  %3757 = vmatprep.subr.bf16.mxu1 %v4886_v18  ;;  %v4939_v57 = vcombine.low %v403_v1, %v407_v4  ;;  %v423_v18 = vld [vmem:[%s7245_s1 + $0xc70] sm:$0xff] }
 0x1a4   :  { %v4956_v15 = vcombine.high %v419_v53, %v423_v18  ;;  %v471_v7 = vld [vmem:[%s7245_s1 + $0xdf0] sm:$0xff] }
 0x1a6   :  { %3594 = vmatpush1.bf16.msra.mxu0 %v4883_v23  ;;  %3758 = vmatpush1.bf16.msra.mxu1 %v4885_v26  ;;  %v4950_v23 = vcombine.high %v412_v14, %v416_v16  ;;  %v4947_v26 = vcombine.low %v411_v9, %v415_v10  ;;  %v468_v10 = vld [vmem:[%s7245_s1 + $0xdd8] sm:$0xff] }
 0x1a7   :  { %3595 = vmatprep.subr.bf16.mxu0 %v4892_v27  ;;  %3759 = vmatprep.subr.bf16.mxu1 %v4894_v29  ;;  %v4949_v27 = vcombine.low %v412_v14, %v416_v16  ;;  %v427_v29 = vld [vmem:[%s7245_s1 + $0xc90] sm:$0xff] }
 0x1aa   :  { %3596 = vmatpush1.bf16.msra.mxu0 %v4891_v30  ;;  %3760 = vmatpush1.bf16.msra.mxu1 %v4893_v32  ;;  %v431_v30 = vld [vmem:[%s7245_s1 + $0xcb0] sm:$0xff]  ;;  %v432_v32 = vld [vmem:[%s7245_s1 + $0xcb8] sm:$0xff] }
 0x1ab   :  { %3597 = vmatprep.subr.bf16.mxu0 %v4900_v33  ;;  %3761 = vmatprep.subr.bf16.mxu1 %v4902_v34  ;;  %v4955_v33 = vcombine.low %v419_v53, %v423_v18  ;;  %v4964_v34 = vcombine.high %v427_v29, %v431_v30  ;;  %v4966_v35 = vcombine.high %v428_v21, %v432_v32 }
 0x1ac   :  { %v5004_v18 = vcombine.high %v467_v6, %v471_v7 }
 0x1ae   :  { %3598 = vmatpush1.bf16.msra.mxu0 %v4899_v38  ;;  %3762 = vmatpush1.bf16.msra.mxu1 %v4901_v41  ;;  %v439_v38 = vld [vmem:[%s7245_s1 + $0xcf0] sm:$0xff]  ;;  %v4963_v41 = vcombine.low %v427_v29, %v431_v30 }
 0x1af   :  { %3599 = vmatprep.subr.bf16.mxu0 %v4908_v31  ;;  %3763 = vmatprep.subr.bf16.mxu1 %v4910_v42  ;;  %v4965_v31 = vcombine.low %v428_v21, %v432_v32  ;;  %v4972_v25 = vcombine.high %v435_v37, %v439_v38  ;;  %v4971_v47 = vcombine.low %v435_v37, %v439_v38  ;;  %v483_v30 = vld [vmem:[%s7245_s1 + $0xe50] sm:$0xff]  ;;  %v484_v32 = vld [vmem:[%s7245_s1 + $0xe58] sm:$0xff] }
 0x1b0   :  { %v487_v21 = vld [vmem:[%s7245_s1 + $0xe70] sm:$0xff] }
 0x1b1   :  { %v491_v38 = vld [vmem:[%s7245_s1 + $0xe90] sm:$0xff] }
 0x1b2   :  { %3600 = vmatpush1.bf16.msra.mxu0 %v4907_v46  ;;  %3764 = vmatpush1.bf16.msra.mxu1 %v4909_v48  ;;  %v448_v46 = vld [vmem:[%s7245_s1 + $0xd38] sm:$0xff] }
 0x1b3   :  { %3601 = vmatprep.subr.bf16.mxu0 %v4916_v49  ;;  %3765 = vmatprep.subr.bf16.mxu1 %v4918_v51  ;;  %v4980_v49 = vcombine.high %v443_v43, %v447_v44  ;;  %v451_v51 = vld [vmem:[%s7245_s1 + $0xd50] sm:$0xff] }
 0x1b4   :  { %v4987_v1 = vcombine.low %v451_v51, %v455_v52  ;;  %v499_v44 = vld [vmem:[%s7245_s1 + $0xed0] sm:$0xff] }
 0x1b6   :  { %3602 = vmatpush1.bf16.msra.mxu0 %v4915_v56  ;;  %3766 = vmatpush1.bf16.msra.mxu1 %v4917_v59  ;;  %v456_v56 = vld [vmem:[%s7245_s1 + $0xd78] sm:$0xff] }
 0x1b7   :  { %3603 = vmatprep.subr.bf16.mxu0 %v4924_v60  ;;  %3767 = vmatprep.subr.bf16.mxu1 %v4926_v62  ;;  %v4988_v60 = vcombine.high %v451_v51, %v455_v52  ;;  %v4990_v61 = vcombine.high %v452_v54, %v456_v56  ;;  %v459_v62 = vld [vmem:[%s7245_s1 + $0xd90] sm:$0xff] }
 0x1b8   :  { %v4995_v16 = vcombine.low %v459_v62, %v463_v39  ;;  %v507_v52 = vld [vmem:[%s7245_s1 + $0xf10] sm:$0xff] }
 0x1ba   :  { %3604 = vmatpush1.bf16.msra.mxu0 %v4923_v0  ;;  %3768 = vmatpush1.bf16.msra.mxu1 %v4925_v2  ;;  %v464_v0 = vld [vmem:[%s7245_s1 + $0xdb8] sm:$0xff]  ;;  %v4989_v2 = vcombine.low %v452_v54, %v456_v56  ;;  %v511_v54 = vld [vmem:[%s7245_s1 + $0xf30] sm:$0xff]  ;;  %v539_v56 = vlaneseq }
 0x1bb   :  { %3605 = vmatprep.subr.bf16.mxu0 %v4932_v3  ;;  %3769 = vmatprep.subr.bf16.mxu1 %v4934_v5  ;;  %v4996_v3 = vcombine.high %v459_v62, %v463_v39  ;;  %v4998_v5 = vcombine.high %v460_v63, %v464_v0  ;;  %v4997_v53 = vcombine.low %v460_v63, %v464_v0  ;;  %v515_v63 = vld [vmem:[%s7245_s1 + $0xf50] sm:$0xff] }
 0x1bc   :  { %v5044_v62 = vcombine.high %v507_v52, %v511_v54  ;;  %v519_v0 = vld [vmem:[%s7245_s1 + $0xf70] sm:$0xff] }
 0x1be   :  { %3606 = vmatpush1.bf16.msra.mxu0 %v4931_v8  ;;  %3770 = vmatpush1.bf16.msra.mxu1 %v4933_v11  ;;  %v472_v11 = vld [vmem:[%s7245_s1 + $0xdf8] sm:$0xff] }
 0x1bf   :  { %3607 = vmatprep.subr.bf16.mxu0 %v4940_v13  ;;  %3771 = vmatprep.subr.bf16.mxu1 %v4942_v17 }
 0x1c2   :  { %3608 = vmatpush1.bf16.msra.mxu0 %v4939_v57  ;;  %3772 = vmatpush1.bf16.msra.mxu1 %v4941_v19 }
 0x1c3   :  { %3618 = vmatprep.subr.bf16.mxu0 %v4948_v20  ;;  %3782 = vmatprep.subr.bf16.mxu1 %v4950_v23  ;;  %v5006_v20 = vcombine.high %v468_v10, %v472_v11  ;;  %v475_v23 = vld [vmem:[%s7245_s1 + $0xe10] sm:$0xff] }
 0x1c5   :  { %3610 = vmatmul.mubr.bf16.vlgmr.msra.gmra.mrb[4].mxu0 %v6027_v36  ;;  %3774 = vmatmul.mubr.bf16.vlgmr.msra.gmra.mrb[4].mxu1 %v6027_v36  ;;  %v436_v36 = vld [vmem:[%s7245_s1 + $0xcd8] sm:$0xff] }
 0x1c6   :  { %3619 = vmatpush1.bf16.msra.mxu0 %v4947_v26  ;;  %3783 = vmatpush1.bf16.msra.mxu1 %v4949_v27  ;;  %v4974_v42 = vcombine.high %v436_v36, %v440_v40  ;;  %v4973_v48 = vcombine.low %v436_v36, %v440_v40  ;;  %v480_v26 = vld [vmem:[%s7245_s1 + $0xe38] sm:$0xff]  ;;  %v5003_v27 = vcombine.low %v467_v6, %v471_v7  ;;  %v495_v36 = vld [vmem:[%s7245_s1 + $0xeb0] sm:$0xff] }
 0x1c7   :  { %3620 = vmatprep.subr.bf16.mxu0 %v4956_v15  ;;  %3784 = vmatprep.subr.bf16.mxu1 %v4958_v28  ;;  %v5005_v15 = vcombine.low %v468_v10, %v472_v11  ;;  %v5012_v28 = vcombine.high %v475_v23, %v479_v12  ;;  %v5014_v29 = vcombine.high %v476_v24, %v480_v26  ;;  %v492_v40 = vld [vmem:[%s7245_s1 + $0xe98] sm:$0xff]  ;;  %v523_v11 = vld [vmem:[%s7245_s1 + $0xf90] sm:$0xff] }
 0x1c8   :  { %3650 = vmatprep.mubr.bf16.mxu0 %v6048_v45  ;;  %3814 = vmatprep.mubr.bf16.mxu1 %v6048_v45  ;;  %v444_v45 = vld [vmem:[%s7245_s1 + $0xd18] sm:$0xff]  ;;  %v5052_v7 = vcombine.high %v515_v63, %v519_v0 }
 0x1c9   :  { %v4982_v50 = vcombine.high %v444_v45, %v448_v46  ;;  %v4981_v59 = vcombine.low %v444_v45, %v448_v46  ;;  %v503_v45 = vld [vmem:[%s7245_s1 + $0xef0] sm:$0xff]  ;;  %v500_v46 = vld [vmem:[%s7245_s1 + $0xed8] sm:$0xff] }
 0x1ca   :  { %3621 = vmatpush1.bf16.msra.mxu0 %v4955_v33  ;;  %3785 = vmatpush1.bf16.msra.mxu1 %v4957_v22  ;;  %v488_v33 = vld [vmem:[%s7245_s1 + $0xe78] sm:$0xff]  ;;  %v5011_v22 = vcombine.low %v475_v23, %v479_v12 }
 0x1cb   :  { %3622 = vmatprep.subr.bf16.mxu0 %v4964_v34  ;;  %3786 = vmatprep.subr.bf16.mxu1 %v4966_v35  ;;  %v5013_v34 = vcombine.low %v476_v24, %v480_v26  ;;  %v5020_v35 = vcombine.high %v483_v30, %v487_v21  ;;  %v5022_v37 = vcombine.high %v484_v32, %v488_v33  ;;  %v531_v24 = vld [vmem:[%s7245_s1 + $0xfd0] sm:$0xff] }
 0x1cc   :  { %v535_v26 = vld [vmem:[%s7245_s1 + $0xff0] sm:$0xff] }
 0x1ce   :  { %3623 = vmatpush1.bf16.msra.mxu0 %v4963_v41  ;;  %3787 = vmatpush1.bf16.msra.mxu1 %v4965_v31  ;;  %v496_v41 = vld [vmem:[%s7245_s1 + $0xeb8] sm:$0xff]  ;;  %v5019_v31 = vcombine.low %v483_v30, %v487_v21 }
 0x1cf   :  { %3624 = vmatprep.subr.bf16.mxu0 %v4972_v25  ;;  %3788 = vmatprep.subr.bf16.mxu1 %v4974_v42  ;;  %v5021_v25 = vcombine.low %v484_v32, %v488_v33  ;;  %v5028_v42 = vcombine.high %v491_v38, %v495_v36  ;;  %v5030_v43 = vcombine.high %v492_v40, %v496_v41 }
 0x1d0   :  { %v5068_v32 = vcombine.high %v531_v24, %v535_v26 }
 0x1d2   :  { %3625 = vmatpush1.bf16.msra.mxu0 %v4971_v47  ;;  %3789 = vmatpush1.bf16.msra.mxu1 %v4973_v48  ;;  %v504_v47 = vld [vmem:[%s7245_s1 + $0xef8] sm:$0xff]  ;;  %v5027_v48 = vcombine.low %v491_v38, %v495_v36  ;;  %v5288_v38 = vld [vmem:[%s7247_s3 + $0x40] sm:$0xff]  }
 0x1d3   :  { %3626 = vmatprep.subr.bf16.mxu0 %v4980_v49  ;;  %3790 = vmatprep.subr.bf16.mxu1 %v4982_v50  ;;  %v5029_v49 = vcombine.low %v492_v40, %v496_v41  ;;  %v5036_v50 = vcombine.high %v499_v44, %v503_v45  ;;  %v5038_v51 = vcombine.high %v500_v46, %v504_v47  ;;  %v5289_v36 = vld [vmem:[%s7247_s3 + $0xc0] sm:$0xff]  }
 0x1d6   :  { %3627 = vmatpush1.bf16.msra.mxu0 %v4979_v58  ;;  %3791 = vmatpush1.bf16.msra.mxu1 %v4981_v59  ;;  %v508_v58 = vld [vmem:[%s7245_s1 + $0xf18] sm:$0xff] }
 0x1d7   :  { %3628 = vmatprep.subr.bf16.mxu0 %v4988_v60  ;;  %3792 = vmatprep.subr.bf16.mxu1 %v4990_v61  ;;  %v512_v59 = vld [vmem:[%s7245_s1 + $0xf38] sm:$0xff]  ;;  %v5035_v60 = vcombine.low %v499_v44, %v503_v45  ;;  %v5037_v61 = vcombine.low %v500_v46, %v504_v47  ;;  %v5294_v44 = vld [vmem:[%s7247_s3 + $0x8] sm:$0xff]   ;;  %v5296_v46 = vld [vmem:[%s7247_s3 + $0x50] sm:$0xff]  }
 0x1d8   :  { %v6896_v4 = vpop.f32.mrb[0].mxu0  ;;  %v6904_v8 = vpop.f32.mrb[0].mxu1  ;;  %v5046_v39 = vcombine.high %v508_v58, %v512_v59  ;;  %v5045_v6 = vcombine.low %v508_v58, %v512_v59  ;;  %v5295_v45 = vld [vmem:[%s7247_s3 + $0x88] sm:$0xff]   ;;  %v5298_v47 = vld [vmem:[%s7247_s3 + $0x10] sm:$0xff]   ;;  %v5305_v58 = vld [vmem:[%s7247_s3 + $0xe0] sm:$0xff]  }
 0x1d9   :  { %v6906_v9 = vpop.f32.mrb[1].mxu0  ;;  %v6914_v13 = vpop.f32.mrb[1].mxu1  ;;  %v5306_v59 = vld [vmem:[%s7247_s3 + $0x20] sm:$0xff]  }
 0x1da   :  { %v3328_v14 = vpop.f32.mrb[2].mxu0  ;;  %3629 = vmatpush1.bf16.msra.mxu0 %v4987_v1  ;;  %v3492_v17 = vpop.f32.mrb[2].mxu1  ;;  %3793 = vmatpush1.bf16.msra.mxu1 %v4989_v2  ;;  %v6983_v1 = vshrl.u32 %v539_v56, 7  ;;  %v516_v2 = vld [vmem:[%s7245_s1 + $0xf58] sm:$0xff] }
 0x1db   :  { %v3329_v57 = vpop.f32.mrb[3].mxu0  ;;  %3630 = vmatprep.subr.bf16.mxu0 %v4996_v3  ;;  %v3493_v19 = vpop.f32.mrb[3].mxu1  ;;  %3794 = vmatprep.subr.bf16.mxu1 %v4998_v5  ;;  %v520_v3 = vld [vmem:[%s7245_s1 + $0xf78] sm:$0xff]  ;;  %v5043_v5 = vcombine.low %v507_v52, %v511_v54  ;;  %v527_v14 = vld [vmem:[%s7245_s1 + $0xfb0] sm:$0xff]  ;;  %v5304_v54 = vld [vmem:[%s7247_s3 + $0x60] sm:$0xff]  }
 0x1dc   :  { %v5054_v10 = vcombine.high %v516_v2, %v520_v3  ;;  %v524_v17 = vld [vmem:[%s7245_s1 + $0xf98] sm:$0xff]  ;;  %v5051_v19 = vcombine.low %v515_v63, %v519_v0  ;;  %v5060_v23 = vcombine.high %v523_v11, %v527_v14  ;;  %v5059_v30 = vcombine.low %v523_v11, %v527_v14  ;;  %v5309_v63 = vld [vmem:[%s7247_s3 + $0xe8] sm:$0xff]   ;;  %v5315_v14 = vld [vmem:[%s7247_s3 + $0xb0] sm:$0xff]  }
 0x1dd   :  { %v528_v57 = vld [vmem:[%s7245_s1 + $0xfb8] sm:$0xff]  ;;  %v5310_v0 = vld [vmem:[%s7247_s3 + $0x28] sm:$0xff]  }
 0x1de   :  { %3631 = vmatpush1.bf16.msra.mxu0 %v4995_v16  ;;  %3795 = vmatpush1.bf16.msra.mxu1 %v4997_v53  ;;  %v545_v16 = vsub.s32 1, %v6983_v1  ;;  %v7007_v53 = vld [vmem:[%s7248_s2] sm:$0xff]  ;;  %v5062_v12 = vcombine.high %v524_v17, %v528_v57  ;;  %v5061_v21 = vcombine.low %v524_v17, %v528_v57  ;;  %v5303_v52 = vld [vmem:[%s7247_s3 + $0x98] sm:$0xff]  }
 0x1df   :  { %3632 = vmatprep.subr.bf16.mxu0 %v5004_v18  ;;  %3796 = vmatprep.subr.bf16.mxu1 %v5006_v20  ;;  %v553_v18 = vsub.s32 3, %v6983_v1  ;;  %v5053_v20 = vcombine.low %v516_v2, %v520_v3  ;;  %v5311_v3 = vld [vmem:[%s7247_s3 + $0xa8] sm:$0xff]   ;;  %v5317_v57 = vld [vmem:[%s7247_s3 + $0xf8] sm:$0xff]  }
 0x1e2   :  { %3633 = vmatpush1.bf16.msra.mxu0 %v5003_v27  ;;  %3797 = vmatpush1.bf16.msra.mxu1 %v5005_v15  ;;  %v546_v27 = vrot.slane %v7007_v53, %v545_v16  ;;  %v532_v15 = vld [vmem:[%s7245_s1 + $0xfd8] sm:$0xff] }
 0x1e3   :  { %3634 = vmatprep.subr.bf16.mxu0 %v5012_v28  ;;  %3798 = vmatprep.subr.bf16.mxu1 %v5014_v29  ;;  %v536_v28 = vld [vmem:[%s7245_s1 + $0xff8] sm:$0xff]  ;;  %v554_v29 = vrot.slane %v7007_v53, %v553_v18 }
 0x1e4   :  { %v5070_v33 = vcombine.high %v532_v15, %v536_v28  ;;  %v5316_v16 = vld [vmem:[%s7247_s3 + $0x78] sm:$0xff]  }
 0x1e6   :  { %3635 = vmatpush1.bf16.msra.mxu0 %v5011_v22  ;;  %3799 = vmatpush1.bf16.msra.mxu1 %v5013_v34  ;;  %v5225_v22 = vadd.f32 %v6906_v9, %v546_v27  ;;  %v5227_v34 = vadd.f32 %v6914_v13, %v554_v29  ;;  %v5290_v9 = vld [vmem:[%s7247_s3] sm:$0xff]   ;;  %v5324_v27 = vld [vmem:[%s7247_s3 + $0x148] sm:$0xff]  }
 0x1e7   :  { %3636 = vmatprep.subr.bf16.mxu0 %v5020_v35  ;;  %3800 = vmatprep.subr.bf16.mxu1 %v5022_v37  ;;  %v5067_v35 = vcombine.low %v531_v24, %v535_v26  ;;  %v5069_v37 = vcombine.low %v532_v15, %v536_v28  ;;  %v5291_v13 = vld [vmem:[%s7247_s3 + $0x80] sm:$0xff]   ;;  %v5325_v28 = vld [vmem:[%s7247_s3 + $0x1c8] sm:$0xff]  }
 0x1e8   :  { %v3824_v40 = vmax.f32 %v5225_v22, 0.0  ;;  %v3826_v41 = vmax.f32 %v5227_v34, 0.0  ;;  %v5323_v26 = vld [vmem:[%s7247_s3 + $0x180] sm:$0xff]   ;;  %v5326_v29 = vld [vmem:[%s7247_s3 + $0x108] sm:$0xff]   ;;  %v5331_v22 = vld [vmem:[%s7247_s3 + $0x190] sm:$0xff]  }
 0x1e9   :  { %v5332_v34 = vld [vmem:[%s7247_s3 + $0x158] sm:$0xff]  }
 0x1ea   :  { %3637 = vmatpush1.bf16.msra.mxu0 %v5019_v31  ;;  %3801 = vmatpush1.bf16.msra.mxu1 %v5021_v25  ;;  %v5292_v31 = vld [vmem:[%s7247_s3 + $0x48] sm:$0xff]   ;;  %v3832_v25 = vpack.c.bf16 %v3824_v40, %v3824_v40  ;;  %v5337_v40 = vld [vmem:[%s7247_s3 + $0x1e0] sm:$0xff]  }
 0x1eb   :  { %3638 = vmatprep.subr.bf16.mxu0 %v5028_v42  ;;  %3802 = vmatprep.subr.bf16.mxu1 %v5030_v43  ;;  %v5293_v42 = vld [vmem:[%s7247_s3 + $0xc8] sm:$0xff]   ;;  %v3834_v43 = vpack.c.bf16 %v3826_v41, %v3826_v41  ;;  %v5338_v41 = vld [vmem:[%s7247_s3 + $0x120] sm:$0xff]  }
 0x1ee   :  { %3639 = vmatpush1.bf16.msra.mxu0 %v5027_v48  ;;  %3803 = vmatpush1.bf16.msra.mxu1 %v5029_v49  ;;  %v5299_v48 = vld [vmem:[%s7247_s3 + $0x90] sm:$0xff]   ;;  %v5300_v49 = vld [vmem:[%s7247_s3 + $0x58] sm:$0xff]  }
 0x1ef   :  { %3640 = vmatprep.subr.bf16.mxu0 %v5036_v50  ;;  %3804 = vmatprep.subr.bf16.mxu1 %v5038_v51  ;;  %v5301_v50 = vld [vmem:[%s7247_s3 + $0xd8] sm:$0xff]  }
 0x1f0   :  { %v5302_v51 = vld [vmem:[%s7247_s3 + $0x18] sm:$0xff]  }
 0x1f2   :  { %3641 = vmatpush1.bf16.msra.mxu0 %v5035_v60  ;;  %3805 = vmatpush1.bf16.msra.mxu1 %v5037_v61  ;;  %v541_v60 = vsub.s32 0, %v6983_v1  ;;  %v5307_v61 = vld [vmem:[%s7247_s3 + $0xa0] sm:$0xff]  }
 0x1f3   :  { %3642 = vmatprep.subr.bf16.mxu0 %v5044_v62  ;;  %3806 = vmatprep.subr.bf16.mxu1 %v5046_v39  ;;  %v5308_v62 = vld [vmem:[%s7247_s3 + $0x68] sm:$0xff]   ;;  %v549_v39 = vsub.s32 2, %v6983_v1 }
 0x1f4   :  { %v542_v2 = vrot.slane %v7007_v53, %v541_v60 }
 0x1f6   :  { %3643 = vmatpush1.bf16.msra.mxu0 %v5043_v5  ;;  %3807 = vmatpush1.bf16.msra.mxu1 %v5045_v6  ;;  %v5312_v5 = vld [vmem:[%s7247_s3 + $0x70] sm:$0xff]   ;;  %v550_v6 = vrot.slane %v7007_v53, %v549_v39  ;;  %v5224_v11 = vadd.f32 %v6896_v4, %v542_v2  ;;  %v5318_v4 = vld [vmem:[%s7247_s3 + $0x38] sm:$0xff]  }
 0x1f7   :  { %3644 = vmatprep.subr.bf16.mxu0 %v5052_v7  ;;  %3808 = vmatprep.subr.bf16.mxu1 %v5054_v10  ;;  %v5313_v7 = vld [vmem:[%s7247_s3 + $0xf0] sm:$0xff]  }
 0x1f8   :  { %v5314_v10 = vld [vmem:[%s7247_s3 + $0x30] sm:$0xff]   ;;  %v5226_v17 = vadd.f32 %v6904_v8, %v550_v6  ;;  %v3823_v18 = vmax.f32 %v5224_v11, 0.0  ;;  %v5320_v8 = vld [vmem:[%s7247_s3 + $0x140] sm:$0xff]  }
 0x1fa   :  { %3645 = vmatpush1.bf16.msra.mxu0 %v5051_v19  ;;  %3809 = vmatpush1.bf16.msra.mxu1 %v5053_v20  ;;  %v5319_v19 = vld [vmem:[%s7247_s3 + $0xb8] sm:$0xff]   ;;  %v3825_v20 = vmax.f32 %v5226_v17, 0.0  ;;  %v3831_v24 = vpack.c.bf16 %v3823_v18, %v3823_v18 }
 0x1fb   :  { %3646 = vmatprep.subr.bf16.mxu0 %v5060_v23  ;;  %3810 = vmatprep.subr.bf16.mxu1 %v5062_v12  ;;  %v5321_v23 = vld [vmem:[%s7247_s3 + $0x1c0] sm:$0xff]  }
 0x1fc   :  { %v5322_v12 = vld [vmem:[%s7247_s3 + $0x100] sm:$0xff]   ;;  %v3833_v15 = vpack.c.bf16 %v3825_v20, %v3825_v20 }
 0x1fe   :  { %3647 = vmatpush1.bf16.msra.mxu0 %v5059_v30  ;;  %3811 = vmatpush1.bf16.msra.mxu1 %v5061_v21  ;;  %v5327_v30 = vld [vmem:[%s7247_s3 + $0x188] sm:$0xff]   ;;  %v5328_v21 = vld [vmem:[%s7247_s3 + $0x150] sm:$0xff]  }
 0x1ff   :  { %3648 = vmatprep.subr.bf16.mxu0 %v5068_v32  ;;  %3812 = vmatprep.subr.bf16.mxu1 %v5070_v33  ;;  %v5329_v32 = vld [vmem:[%s7247_s3 + $0x1d0] sm:$0xff]  }
 0x200   :  { %v5330_v33 = vld [vmem:[%s7247_s3 + $0x110] sm:$0xff]  }
 0x202   :  { %3649 = vmatpush1.bf16.msra.mxu0 %v5067_v35  ;;  %3813 = vmatpush1.bf16.msra.mxu1 %v5069_v37  ;;  %v5333_v35 = vld [vmem:[%s7247_s3 + $0x1d8] sm:$0xff]  }
 0x203   :  { %5136 = vmatprep.subr.bf16.mxu0 %v5288_v38  ;;  %5158 = vmatprep.subr.bf16.mxu1 %v5289_v36  ;;  %v5334_v37 = vld [vmem:[%s7247_s3 + $0x118] sm:$0xff]   ;;  %v5336_v36 = vld [vmem:[%s7247_s3 + $0x160] sm:$0xff]  }
 0x204   :  { %v5335_v38 = vld [vmem:[%s7247_s3 + $0x198] sm:$0xff]  }
 0x205   :  { %3651 = vmatmul.mubr.bf16.vlgmr.msra.gmra.mrb[4].mxu0 %v6236_v55  ;;  %3815 = vmatmul.mubr.bf16.vlgmr.msra.gmra.mrb[4].mxu1 %v6236_v55  ;;  %v5297_v55 = vld [vmem:[%s7247_s3 + $0xd0] sm:$0xff]  }
 0x206   :  { %5137 = vmatpush3.bf16.msra.mxu0 %v5290_v9  ;;  %4390 = vmatprep.mubr.bf16.mxu0 %v3832_v25  ;;  %v5339_v9 = vld [vmem:[%s7247_s3 + $0x1a0] sm:$0xff]   ;;  %v5342_v25 = vld [vmem:[%s7247_s3 + $0x128] sm:$0xff]  }
 0x207   :  { %5159 = vmatpush3.bf16.msra.mxu1 %v5291_v13  ;;  %4430 = vmatprep.mubr.bf16.mxu1 %v3834_v43  ;;  %v5340_v13 = vld [vmem:[%s7247_s3 + $0x168] sm:$0xff]   ;;  %v5344_v43 = vld [vmem:[%s7247_s3 + $0x170] sm:$0xff]  }
 0x208   :  { %5138 = vmatprep.subr.bf16.mxu0 %v5292_v31  ;;  %5160 = vmatprep.subr.bf16.mxu1 %v5293_v42  ;;  %v5341_v31 = vld [vmem:[%s7247_s3 + $0x1e8] sm:$0xff]  }
 0x209   :  { %v5343_v42 = vld [vmem:[%s7247_s3 + $0x1a8] sm:$0xff]  }
 0x20a   :  { %5139 = vmatpush3.bf16.msra.mxu0 %v5294_v44  ;;  %v5345_v44 = vld [vmem:[%s7247_s3 + $0x1f0] sm:$0xff]  }
 0x20b   :  { %5161 = vmatpush3.bf16.msra.mxu1 %v5295_v45  ;;  %5140 = vmatprep.subr.bf16.mxu0 %v5296_v46  ;;  %v5346_v45 = vld [vmem:[%s7247_s3 + $0x130] sm:$0xff]  }
 0x20c   :  { %5162 = vmatprep.subr.bf16.mxu1 %v5297_v55  ;;  %v5347_v46 = vld [vmem:[%s7247_s3 + $0x1b0] sm:$0xff]   ;;  %v5348_v55 = vld [vmem:[%s7247_s3 + $0x178] sm:$0xff]  }
 0x20e   :  { %5141 = vmatpush3.bf16.msra.mxu0 %v5298_v47  ;;  %v5349_v47 = vld [vmem:[%s7247_s3 + $0x1f8] sm:$0xff]  }
 0x20f   :  { %5163 = vmatpush3.bf16.msra.mxu1 %v5299_v48  ;;  %5142 = vmatprep.subr.bf16.mxu0 %v5300_v49  ;;  %v5350_v48 = vld [vmem:[%s7247_s3 + $0x138] sm:$0xff]  }
 0x210   :  { %5164 = vmatprep.subr.bf16.mxu1 %v5301_v50  ;;  %v5351_v49 = vld [vmem:[%s7247_s3 + $0x1b8] sm:$0xff]   ;;  %v557_v50 = vsub.s32 4, %v6983_v1 }
 0x212   :  { %5143 = vmatpush3.bf16.msra.mxu0 %v5302_v51  ;;  %v565_v51 = vsub.s32 6, %v6983_v1 }
 0x213   :  { %5165 = vmatpush3.bf16.msra.mxu1 %v5303_v52  ;;  %5144 = vmatprep.subr.bf16.mxu0 %v5304_v54  ;;  %v561_v52 = vsub.s32 5, %v6983_v1  ;;  %v569_v54 = vsub.s32 7, %v6983_v1 }
 0x214   :  { %5166 = vmatprep.subr.bf16.mxu1 %v5305_v58  ;;  %v558_v58 = vrot.slane %v7007_v53, %v557_v50 }
 0x215   :  { %v562_v60 = vrot.slane %v7007_v53, %v561_v52 }
 0x216   :  { %5145 = vmatpush3.bf16.msra.mxu0 %v5306_v59  ;;  %v566_v59 = vrot.slane %v7007_v53, %v565_v51 }
 0x217   :  { %5167 = vmatpush3.bf16.msra.mxu1 %v5307_v61  ;;  %5146 = vmatprep.subr.bf16.mxu0 %v5308_v62  ;;  %v570_v61 = vrot.slane %v7007_v53, %v569_v54 }
 0x218   :  { %5168 = vmatprep.subr.bf16.mxu1 %v5309_v63 }
 0x21a   :  { %5147 = vmatpush3.bf16.msra.mxu0 %v5310_v0 }
 0x21b   :  { %5169 = vmatpush3.bf16.msra.mxu1 %v5311_v3  ;;  %5148 = vmatprep.subr.bf16.mxu0 %v5312_v5 }
 0x21c   :  { %5170 = vmatprep.subr.bf16.mxu1 %v5313_v7 }
 0x21e   :  { %5149 = vmatpush3.bf16.msra.mxu0 %v5314_v10 }
 0x21f   :  { %5171 = vmatpush3.bf16.msra.mxu1 %v5315_v14  ;;  %5150 = vmatprep.subr.bf16.mxu0 %v5316_v16 }
 0x220   :  { %5172 = vmatprep.subr.bf16.mxu1 %v5317_v57 }
 0x222   :  { %5151 = vmatpush3.bf16.msra.mxu0 %v5318_v4 }
 0x223   :  { %5173 = vmatpush3.bf16.msra.mxu1 %v5319_v19  ;;  %5180 = vmatprep.subr.bf16.mxu0 %v5320_v8 }
 0x224   :  { %5202 = vmatprep.subr.bf16.mxu1 %v5321_v23  ;;  %v5071_v23 = vld [vmem:[%s7249_s4] ss:$0 sm:$0xff] }
 0x225   :  { %4391 = vmatmul.mubr.bf16.vlgmr.msra.gmra.mrb[8].mxu0 %v3831_v24 }
 0x226   :  { %4431 = vmatmul.mubr.bf16.vlgmr.msra.gmra.mrb[8].mxu1 %v3833_v15  ;;  %5181 = vmatpush3.bf16.msra.mxu0 %v5322_v12 }
 0x227   :  { %5203 = vmatpush3.bf16.msra.mxu1 %v5323_v26  ;;  %5182 = vmatprep.subr.bf16.mxu0 %v5324_v27 }
 0x228   :  { %5204 = vmatprep.subr.bf16.mxu1 %v5325_v28 }
 0x22a   :  { %5183 = vmatpush3.bf16.msra.mxu0 %v5326_v29 }
 0x22b   :  { %5205 = vmatpush3.bf16.msra.mxu1 %v5327_v30  ;;  %5184 = vmatprep.subr.bf16.mxu0 %v5328_v21 }
 0x22c   :  { %5206 = vmatprep.subr.bf16.mxu1 %v5329_v32 }
 0x22e   :  { %5185 = vmatpush3.bf16.msra.mxu0 %v5330_v33 }
 0x22f   :  { %5207 = vmatpush3.bf16.msra.mxu1 %v5331_v22  ;;  %5186 = vmatprep.subr.bf16.mxu0 %v5332_v34 }
 0x230   :  { %5208 = vmatprep.subr.bf16.mxu1 %v5333_v35 }
 0x232   :  { %5187 = vmatpush3.bf16.msra.mxu0 %v5334_v37 }
 0x233   :  { %5209 = vmatpush3.bf16.msra.mxu1 %v5335_v38  ;;  %5188 = vmatprep.subr.bf16.mxu0 %v5336_v36 }
 0x234   :  { %5210 = vmatprep.subr.bf16.mxu1 %v5337_v40 }
 0x236   :  { %5189 = vmatpush3.bf16.msra.mxu0 %v5338_v41 }
 0x237   :  { %5211 = vmatpush3.bf16.msra.mxu1 %v5339_v9  ;;  %5190 = vmatprep.subr.bf16.mxu0 %v5340_v13 }
 0x238   :  { %5212 = vmatprep.subr.bf16.mxu1 %v5341_v31 }
 0x23a   :  { %5191 = vmatpush3.bf16.msra.mxu0 %v5342_v25 }
 0x23b   :  { %5213 = vmatpush3.bf16.msra.mxu1 %v5343_v42  ;;  %5192 = vmatprep.subr.bf16.mxu0 %v5344_v43 }
 0x23c   :  { %5214 = vmatprep.subr.bf16.mxu1 %v5345_v44 }
 0x23e   :  { %5193 = vmatpush3.bf16.msra.mxu0 %v5346_v45 }
 0x23f   :  { %5215 = vmatpush3.bf16.msra.mxu1 %v5347_v46  ;;  %5194 = vmatprep.subr.bf16.mxu0 %v5348_v55 }
 0x240   :  { %5216 = vmatprep.subr.bf16.mxu1 %v5349_v47  ;;  %v4531_v47 = vand.u32 127, %v539_v56 }
 0x242   :  { %5195 = vmatpush3.bf16.msra.mxu0 %v5350_v48  ;;  %vm4532_vm1 = vcmp.eq.s32.totalorder %v4531_v47, 3  ;;  %vm4537_vm2 = vcmp.eq.s32.totalorder %v4531_v47, 4 }
 0x243   :  { %5217 = vmatpush3.bf16.msra.mxu1 %v5351_v49 }
 0x2d8   :  { %v3652_v62 = vpop.f32.mrb[4].mxu0  ;;  %v3816_v63 = vpop.f32.mrb[4].mxu1 }
 0x2d9   :  { %v5228_v39 = vadd.f32 %v3652_v62, %v558_v58  ;;  %v3654_v0 = vpop.f32.mrb[5].mxu0  ;;  %v5230_v2 = vadd.f32 %v3816_v63, %v566_v59  ;;  %v3818_v5 = vpop.f32.mrb[5].mxu1 }
 0x2da   :  { %v5229_v3 = vadd.f32 %v3654_v0, %v562_v60  ;;  %v3656_v6 = vpop.f32.mrb[6].mxu0  ;;  %v5231_v10 = vadd.f32 %v3818_v5, %v570_v61  ;;  %v3820_v11 = vpop.f32.mrb[6].mxu1 }
 0x2db   :  { %v3827_v7 = vmax.f32 %v5228_v39, 0.0  ;;  %v3657_v1 = vpop.f32.mrb[7].mxu0  ;;  %v3829_v14 = vmax.f32 %v5230_v2, 0.0  ;;  %v3821_v17 = vpop.f32.mrb[7].mxu1 }
 0x2dc   :  { %v3828_v16 = vmax.f32 %v5229_v3, 0.0  ;;  %v3830_v57 = vmax.f32 %v5231_v10, 0.0 }
 0x2dd   :  { %v3835_v18 = vpack.c.bf16 %v3827_v7, %v3827_v7  ;;  %v3837_v53 = vpack.c.bf16 %v3829_v14, %v3829_v14 }
 0x2de   :  { %v3836_v4 = vpack.c.bf16 %v3828_v16, %v3828_v16  ;;  %v3838_v19 = vpack.c.bf16 %v3830_v57, %v3830_v57 }
 0x2e0   :  { %4470 = vmatprep.mubr.bf16.mxu0 %v3836_v4  ;;  %4510 = vmatprep.mubr.bf16.mxu1 %v3838_v19 }
 0x2e1   :  { %4471 = vmatmul.mubr.bf16.vlgmr.msra.gmra.mrb[12].mxu0 %v3835_v18  ;;  %4511 = vmatmul.mubr.bf16.vlgmr.msra.gmra.mrb[12].mxu1 %v3837_v53 }
 0x2f8   :  { %v5152_v8 = vpop.f32.mrb[8].mxu0 }
 0x2f9   :  { %v5174_v20 = vpop.f32.mrb[8].mxu1  ;;  %v5153_v12 = vpop.f32.mrb[9].mxu0 }
 0x2fa   :  { %v5154_v24 = vadd.f32 %v5153_v12, %v5152_v8  ;;  %v5175_v26 = vpop.f32.mrb[9].mxu1  ;;  %v5155_v27 = vpop.f32.mrb[10].mxu0 }
 0x2fb   :  { %v5176_v15 = vadd.f32 %v5175_v26, %v5174_v20  ;;  %v5177_v28 = vpop.f32.mrb[10].mxu1  ;;  %v5156_v29 = vpop.f32.mrb[11].mxu0 }
 0x2fc   :  { %v4393_v30 = vadd.f32 %v5154_v24, %v5071_v23  ;;  %v5178_v21 = vpop.f32.mrb[11].mxu1 }
 0x2fe   :  { %v4433_v32 = vadd.f32 %v5176_v15, %v4393_v30 }
 0x3b4   :  { %v5196_v33 = vpop.f32.mrb[12].mxu0  ;;  %v5218_v22 = vpop.f32.mrb[12].mxu1 }
 0x3b5   :  { %v5197_v34 = vpop.f32.mrb[13].mxu0  ;;  %v5219_v37 = vpop.f32.mrb[13].mxu1 }
 0x3b6   :  { %v5198_v35 = vadd.f32 %v5197_v34, %v5196_v33  ;;  %v5199_v38 = vpop.f32.mrb[14].mxu0  ;;  %v5220_v36 = vadd.f32 %v5219_v37, %v5218_v22  ;;  %v5221_v40 = vpop.f32.mrb[14].mxu1 }
 0x3b7   :  { %v5200_v41 = vpop.f32.mrb[15].mxu0  ;;  %v5222_v13 = vpop.f32.mrb[15].mxu1 }
 0x3b8   :  { %v4473_v9 = vadd.f32 %v5198_v35, %v4433_v32 }
 0x3ba   :  { %v4513_v31 = vadd.f32 %v5220_v36, %v4473_v9 }
 0x3bc   :  { %v4519_v25 = vsel %vm4518_vm0, %v4513_v31, -inf }
 0x3bd   :  { %4520 = vmax.xlane.f32.xlu0 %v4519_v25 }
 0x44a   :  { %v4521_v42 = vpop.xlane.xlu0 %4520 }
 0x44b   :  { %v4522_v43 = vsub.f32 %v4513_v31, %v4521_v42 }
 0x44d   :  { %v4523_v44 = vmul.f32 1.442695, %v4522_v43 }
 0x44f   :  { %5352 = vpow2.f32 %v4523_v44 }
 0x459   :  { %v5353_v45 = vpop.eup %5352 }
 0x45a   :  { %v4525_v46 = vsel %vm4518_vm0, %v5353_v45, 0.0 }
 0x45b   :  { %4526 = vadd.xlane.f32.xlu0 %v4525_v46 }
 0x4e8   :  { %v4527_v55 = vpop.xlane.xlu0 %4526 }
 0x4e9   :  { %5354 = vrcp.f32 %v4527_v55 }
 0x4f3   :  { %v5355_v48 = vpop.eup %5354 }
 0x4f4   :  { %v4529_v49 = vmul.f32 %v5355_v48, %v5353_v45 }
 0x4f6   :  { %v4533_v50 = vsel %vm4532_vm1, %v4529_v49, 0.0  ;;  %v4538_v52 = vsel %vm4537_vm2, %v4529_v49, 0.0 }
 0x4f7   :  { %v4534_v51 = vsel %vm4518_vm0, %v4533_v50, 0.0  ;;  %v4539_v54 = vsel %vm4518_vm0, %v4538_v52, 0.0 }
 0x4f8   :  { %4535 = vadd.xlane.f32.xlu1 %v4534_v51 }
 0x4fc   :  { %4540 = vadd.xlane.f32.xlu1 %v4539_v54 }
 0x585   :  { %v4536_v58 = vpop.xlane.xlu1 %4535 }
 0x586   :  { %v4542_v60 = vsub.f32 1.0, %v4536_v58 }
 0x589   :  { %v4541_v59 = vpop.xlane.xlu1 %4540 }
 0x58a   :  { %v4543_v61 = vsub.f32 1.0, %v4541_v59 }
 0x58c   :  { %v4544_v62 = vmul.f32 %v4543_v61, %v4542_v60 }
 0x58e   :  { %4546 = vst.msk [vmem:[%s7250_s5] sm:$0xff] %vm4545_vm3, %v4544_v62 }

</bundles_post_ra>
